<compile_context>
chip_gen: v7x
topology: tpu7x:2x2x1
jax: 0.10.0
libtpu: 0.0.40
codegen_flags: <defaults>
</compile_context>

<pallas_src>
import math
from functools import partial

import jax
import jax.numpy as jnp
from jax import lax
from jax.experimental import pallas as pl
from jax.experimental.pallas import tpu as pltpu


# ----------------------------- linear projection ---------------------------

def _linear_kernel(x_ref, w_ref, b_ref, o_ref):
    # o = x @ w + b ; bf16 MXU inputs, f32 accumulation.
    acc = jnp.dot(x_ref[...].astype(jnp.bfloat16), w_ref[...].astype(jnp.bfloat16),
                  preferred_element_type=jnp.float32)
    o_ref[...] = (acc + b_ref[...].astype(jnp.float32)).astype(o_ref.dtype)


def pallas_linear(x2d, w_t, b, out_dtype):
    """y = x2d @ w_t + b (w_t already transposed; weight block stays VMEM-resident)."""
    M, Cin = x2d.shape
    Cout = w_t.shape[1]
    tm = M                                      # fallback: single full block
    for cand in (512, 256, 128):
        if M % cand == 0:
            tm = cand
            break
    return pl.pallas_call(
        _linear_kernel,
        grid=(M // tm,),
        in_specs=[pl.BlockSpec((tm, Cin), lambda i: (i, 0)),
                  pl.BlockSpec((Cin, Cout), lambda i: (0, 0)),    # resident weight
                  pl.BlockSpec((1, Cout), lambda i: (0, 0))],     # resident bias
        out_specs=pl.BlockSpec((tm, Cout), lambda i: (i, 0)),
        out_shape=jax.ShapeDtypeStruct((M, Cout), out_dtype),
        compiler_params=pltpu.CompilerParams(dimension_semantics=("parallel",)),
    )(x2d, w_t, b.reshape(1, Cout))


# ------------------------- sparsity-metric kernel ---------------------------

def _metric_kernel(H, D, L_K, q_ref, k_ref, cnt_t_ref, m_ref):
    # Per batch element, all heads.  q_ref: (L_Q, C) f32, k_ref: (L_K, C) bf16,
    # cnt_t_ref: (L_K, L_Q) bf16 sample multiplicity (transposed -> L_Q on lanes),
    # m_ref: (H, L_Q) f32 output (lane-dense).
    cnt_t = cnt_t_ref[...].astype(jnp.float32)
    sampled = cnt_t > 0.0
    neg = jnp.float32(-1e30)
    inv_lk = jnp.float32(1.0 / L_K)
    rows = []
    for h in range(H):
        cols = slice(h * D, (h + 1) * D)
        qh = q_ref[:, cols].astype(jnp.bfloat16)          # (L_Q, D)
        kh = k_ref[:, cols]                               # (L_K, D) bf16
        # s_t[k, q] = K[k] . Q[q]  -> keeps L_Q on the lane axis throughout.
        s_t = lax.dot_general(kh, qh, (((1,), (1,)), ((), ())),
                              preferred_element_type=jnp.float32)   # (L_K, L_Q)
        smax = jnp.max(jnp.where(sampled, s_t, neg), axis=0, keepdims=True)  # (1, L_Q)
        ssum = jnp.sum(s_t * cnt_t, axis=0, keepdims=True)                   # (1, L_Q)
        rows.append(smax - ssum * inv_lk)
    m_ref[...] = jnp.concatenate(rows, axis=0)            # single (H, L_Q) store


# ----------------------------- context kernel -------------------------------

def _context_kernel(H, D, u, scale, idx_ref, q_ref, k_ref, v_ref, ctx_ref):
    # idx_ref: (B, H, u) int32 in SMEM (scalar prefetch).  q_ref: (L_Q, C) f32,
    # k_ref/v_ref: (L_K, C) bf16, ctx_ref: (L_Q, C) f32 in (B, L_Q, H, D) channel order.
    b = pl.program_id(0)
    L_Q, C = ctx_ref.shape

    v_all = v_ref[...]                                               # (L_K, C) bf16
    # Initial context: per-head mean of V broadcast to every query row (mask_flag=False).
    v_mean = jnp.mean(v_all.astype(jnp.float32), axis=0, keepdims=True)   # (1, C)
    ctx_ref[...] = jnp.broadcast_to(v_mean, (L_Q, C)).astype(ctx_ref.dtype)

    for h in range(H):
        cols = slice(h * D, (h + 1) * D)
        kh = k_ref[:, cols]                                          # (L_K, D) bf16
        vh = v_all[:, cols]                                          # (L_K, D) bf16

        idxs = [idx_ref[b, h, i] for i in range(u)]                  # SMEM scalar reads
        rows = [q_ref[pl.ds(idxs[i], 1), cols] for i in range(u)]    # u dynamic row loads
        q_top = jnp.concatenate(rows, axis=0).astype(jnp.bfloat16)   # (u, D)

        # scores of the u strongest queries against all keys, scaled, then softmax (f32).
        s = lax.dot_general(q_top, kh, (((1,), (1,)), ((), ())),
                            preferred_element_type=jnp.float32)      # (u, L_K)
        s = s * jnp.float32(scale)
        m = jnp.max(s, axis=-1, keepdims=True)
        p = jnp.exp(s - m)
        denom = jnp.sum(p, axis=-1, keepdims=True)
        upd = jnp.dot(p.astype(jnp.bfloat16), vh,
                      preferred_element_type=jnp.float32)            # (u, D)
        upd = (upd * pl.reciprocal(denom, approx=True)).astype(ctx_ref.dtype)

        # Scatter the u updated rows back (top-k indices are unique per head).
        for i in range(u):
            ctx_ref[pl.ds(idxs[i], 1), cols] = upd[i:i + 1, :]


# ------------------------------ forward glue -------------------------------

def prob_attention_forward(x, params, *, num_heads, factor=5, qk_scale=None,
                           mix=True, sample_key=None):
    B, N, C = x.shape
    H = num_heads
    D = C // H
    scale = float(qk_scale) if qk_scale is not None else float(D) ** (-0.5)

    x2d = x.reshape(B * N, C)
    wq = params["wq"].T.astype(jnp.bfloat16)
    wk = params["wk"].T.astype(jnp.bfloat16)
    wv = params["wv"].T.astype(jnp.bfloat16)
    wp = params["wproj"].T.astype(jnp.bfloat16)

    # Q stays f32 (dynamic row gather path); K/V are bf16 (half the DMA bytes).
    q = pallas_linear(x2d, wq, params["bq"], jnp.float32).reshape(B, N, C)
    k = pallas_linear(x2d, wk, params["bk"], jnp.bfloat16).reshape(B, N, C)
    v = pallas_linear(x2d, wv, params["bv"], jnp.bfloat16).reshape(B, N, C)

    L_Q = L_K = N
    U_part = min(factor * int(math.ceil(math.log(L_K))), L_K)   # sample_k
    u = min(factor * int(math.ceil(math.log(L_Q))), L_Q)        # n_top

    # Random key-sampling indices, shared across batch & heads (as in torch.randint).
    # TODO(synk): torch.randint sampling replaced with jax.random (different RNG stream).
    index_sample = jax.random.randint(sample_key, (L_Q, U_part), 0, L_K)
    cnt = jnp.zeros((L_Q, L_K), jnp.float32).at[
        jnp.arange(L_Q)[:, None], index_sample].add(1.0)         # sample multiplicity
    cnt_t = cnt.T.astype(jnp.bfloat16)                           # (L_K, L_Q)

    # Kernel 1: sparsity metric M only (no full-score HBM round trip).
    M = pl.pallas_call(
        partial(_metric_kernel, H, D, L_K),
        grid=(B,),
        in_specs=[
            pl.BlockSpec((None, N, C), lambda b: (b, 0, 0)),     # Q (f32)
            pl.BlockSpec((None, N, C), lambda b: (b, 0, 0)),     # K (bf16)
            pl.BlockSpec((L_K, L_Q), lambda b: (0, 0)),          # cnt^T, resident
        ],
        out_specs=pl.BlockSpec((None, H, L_Q), lambda b: (b, 0, 0)),
        out_shape=jax.ShapeDtypeStruct((B, H, L_Q), jnp.float32),
        compiler_params=pltpu.CompilerParams(dimension_semantics=("parallel",)),
    )(q, k, cnt_t)

    # Top-k query selection in plain JAX (tiny; sorted vs unsorted does not change result).
    _, index = lax.top_k(M, u)                                   # (B, H, u) int32

    # Kernel 2: context.  Top-k indices are scalar-prefetched; scores of the selected
    # queries are recomputed in-kernel; output is lane-dense (L_Q, C) per batch element.
    context = pl.pallas_call(
        partial(_context_kernel, H, D, u, scale),
        grid_spec=pltpu.PrefetchScalarGridSpec(
            num_scalar_prefetch=1,
            grid=(B,),
            in_specs=[
                pl.BlockSpec((None, N, C), lambda b, idx: (b, 0, 0)),   # Q (f32)
                pl.BlockSpec((None, N, C), lambda b, idx: (b, 0, 0)),   # K (bf16)
                pl.BlockSpec((None, N, C), lambda b, idx: (b, 0, 0)),   # V (bf16)
            ],
            out_specs=pl.BlockSpec((None, N, C), lambda b, idx: (b, 0, 0)),
        ),
        out_shape=jax.ShapeDtypeStruct((B, N, C), jnp.float32),
        compiler_params=pltpu.CompilerParams(dimension_semantics=("parallel",)),
    )(index, q, k, v)

    # context is in (B, L_Q, H, D) channel order.
    # PyTorch: ctx(B,H,L,D).transpose(2,1) [-> (B,L,H,D)]; if mix: transpose(2,1) again;
    # then reshape(B, N, C).
    if mix:
        context = jnp.swapaxes(context.reshape(B, N, H, D), 1, 2).reshape(B, N, C)
    # else: already in the (B, L_Q, H*D) layout the reshape expects.

    out = pallas_linear(context.reshape(B * N, C), wp, params["bproj"], jnp.float32)
    return out.reshape(B, N, C)


# --------------------------------- main ------------------------------------

def _init_linear(kw, kb, fan_in, fan_out):
    # PyTorch nn.Linear default init: U(-1/sqrt(fan_in), 1/sqrt(fan_in))
    bound = 1.0 / math.sqrt(fan_in)
    w = jax.random.uniform(kw, (fan_out, fan_in), jnp.float32, -bound, bound)
    b = jax.random.uniform(kb, (fan_out,), jnp.float32, -bound, bound)
    return w, b


if __name__ == "__main__":
    B, N, C, H = 2, 16, 32, 4   # batch, tokens, dim, heads  (D = 8)

    key = jax.random.PRNGKey(0)
    (kx, kqw, kqb, kkw, kkb, kvw, kvb, kpw, kpb, ksamp) = jax.random.split(key, 10)

    x = jax.random.normal(kx, (B, N, C), jnp.float32)

    wq, bq = _init_linear(kqw, kqb, C, C)
    wk, bk = _init_linear(kkw, kkb, C, C)
    wv, bv = _init_linear(kvw, kvb, C, C)
    wp, bp = _init_linear(kpw, kpb, C, C)
    params = {"wq": wq, "bq": bq, "wk": wk, "bk": bk,
              "wv": wv, "bv": bv, "wproj": wp, "bproj": bp}

    fwd = jax.jit(partial(prob_attention_forward, num_heads=H, factor=5,
                          qk_scale=None, mix=True))
    out = fwd(x, params, sample_key=ksamp)
    out = jax.block_until_ready(out)
    assert out.shape == (B, N, C) and out.dtype == jnp.float32
    assert bool(jnp.all(jnp.isfinite(out)))
    print("KERNEL_OK")
</pallas_src>

<mosaic_0001>
module attributes {stable_mosaic.version = 11 : i64} {
  func.func private @main(%arg0: i32) attributes {dimension_semantics = [#tpu.dimension_semantics<core_parallel>], iteration_bounds = array<i64: 2>, tpu.core_type = #tpu.core_type<sc_scalar_subcore>, window_params = []} {
    return
  }
}

module attributes {stable_mosaic.version = 11 : i64} {
  func.func private @main(%arg0: i32) attributes {dimension_semantics = [#tpu.dimension_semantics<core_parallel>], iteration_bounds = array<i64: 2>, tpu.core_type = #tpu.core_type<sc_scalar_subcore>, window_params = []} {
    return
  }
}

module attributes {stable_mosaic.version = 11 : i64} {
  func.func @_metric_kernel(%arg0: i32, %arg1: memref<1x16x32xf32, #tpu.memory_space<vmem>>, %arg2: memref<1x16x32xbf16, #tpu.memory_space<vmem>>, %arg3: memref<16x16xbf16, #tpu.memory_space<vmem>>, %arg4: memref<1x4x16xf32, #tpu.memory_space<vmem>>) attributes {dimension_semantics = [#tpu.dimension_semantics<parallel>], iteration_bounds = array<i64: 2>, scalar_prefetch = 0 : i64, scratch_operands = 0 : i64, tpu.core_type = #tpu.core_type<tc>, window_params = [{transform_indices = @transform_0, window_bounds = array<i64: 1, 16, 32>}, {transform_indices = @transform_1, window_bounds = array<i64: 1, 16, 32>}, {pipeline_mode = #tpu.pipeline_mode<synchronous>, transform_indices = @transform_2, window_bounds = array<i64: 16, 16>}, {transform_indices = @transform_3, window_bounds = array<i64: 1, 4, 16>}]} {
    %c0 = arith.constant 0 : index
    %c0_0 = arith.constant 0 : index
    %0 = vector.load %arg3[%c0, %c0_0] : memref<16x16xbf16, #tpu.memory_space<vmem>>, vector<16x16xbf16>
    %1 = arith.extf %0 : vector<16x16xbf16> to vector<16x16xf32>
    %cst = arith.constant 0.000000e+00 : f32
    %2 = vector.broadcast %cst : f32 to vector<16x16xf32>
    %3 = arith.cmpf ogt, %1, %2 : vector<16x16xf32>
    %c0_1 = arith.constant 0 : index
    %c0_2 = arith.constant 0 : index
    %c0_3 = arith.constant 0 : index
    %4 = vector.load %arg1[%c0_1, %c0_2, %c0_3] : memref<1x16x32xf32, #tpu.memory_space<vmem>>, vector<1x16x8xf32>
    %5 = vector.shape_cast %4 : vector<1x16x8xf32> to vector<16x8xf32>
    %6 = arith.truncf %5 : vector<16x8xf32> to vector<16x8xbf16>
    %c0_4 = arith.constant 0 : index
    %c0_5 = arith.constant 0 : index
    %c0_6 = arith.constant 0 : index
    %7 = vector.load %arg2[%c0_4, %c0_5, %c0_6] : memref<1x16x32xbf16, #tpu.memory_space<vmem>>, vector<1x16x8xbf16>
    %8 = vector.shape_cast %7 : vector<1x16x8xbf16> to vector<16x8xbf16>
    %cst_7 = arith.constant dense<0.000000e+00> : vector<16x16xf32>
    %9 = tpu.matmul %8, %6, %cst_7 {dimension_numbers = #tpu.dot_dimension_numbers<[1], [1], [0], [0], [0, 0, 1, 0], [], []>} : vector<16x8xbf16>, vector<16x8xbf16>, vector<16x16xf32> -> vector<16x16xf32>
    %cst_8 = arith.constant -1.000000e+30 : f32
    %10 = vector.broadcast %cst_8 : f32 to vector<16x16xf32>
    %11 = arith.select %3, %9, %10 : vector<16x16xi1>, vector<16x16xf32>
    %cst_9 = arith.constant dense<0xFF800000> : vector<16xf32>
    %12 = vector.multi_reduction <maximumf>, %11, %cst_9 [0] : vector<16x16xf32> to vector<16xf32>
    %13 = vector.shape_cast %12 : vector<16xf32> to vector<1x16xf32>
    %14 = arith.mulf %9, %1 : vector<16x16xf32>
    %cst_10 = arith.constant dense<0.000000e+00> : vector<16xf32>
    %15 = vector.multi_reduction <add>, %14, %cst_10 [0] : vector<16x16xf32> to vector<16xf32>
    %16 = vector.shape_cast %15 : vector<16xf32> to vector<1x16xf32>
    %cst_11 = arith.constant 6.250000e-02 : f32
    %17 = vector.broadcast %cst_11 : f32 to vector<1x16xf32>
    %18 = arith.mulf %16, %17 : vector<1x16xf32>
    %19 = arith.subf %13, %18 : vector<1x16xf32>
    %c0_12 = arith.constant 0 : index
    %c0_13 = arith.constant 0 : index
    %c8 = arith.constant 8 : index
    %20 = vector.load %arg1[%c0_12, %c0_13, %c8] : memref<1x16x32xf32, #tpu.memory_space<vmem>>, vector<1x16x8xf32>
    %21 = vector.shape_cast %20 : vector<1x16x8xf32> to vector<16x8xf32>
    %22 = arith.truncf %21 : vector<16x8xf32> to vector<16x8xbf16>
    %c0_14 = arith.constant 0 : index
    %c0_15 = arith.constant 0 : index
    %c8_16 = arith.constant 8 : index
    %23 = vector.load %arg2[%c0_14, %c0_15, %c8_16] : memref<1x16x32xbf16, #tpu.memory_space<vmem>>, vector<1x16x8xbf16>
    %24 = vector.shape_cast %23 : vector<1x16x8xbf16> to vector<16x8xbf16>
    %cst_17 = arith.constant dense<0.000000e+00> : vector<16x16xf32>
    %25 = tpu.matmul %24, %22, %cst_17 {dimension_numbers = #tpu.dot_dimension_numbers<[1], [1], [0], [0], [0, 0, 1, 0], [], []>} : vector<16x8xbf16>, vector<16x8xbf16>, vector<16x16xf32> -> vector<16x16xf32>
    %cst_18 = arith.constant -1.000000e+30 : f32
    %26 = vector.broadcast %cst_18 : f32 to vector<16x16xf32>
    %27 = arith.select %3, %25, %26 : vector<16x16xi1>, vector<16x16xf32>
    %cst_19 = arith.constant dense<0xFF800000> : vector<16xf32>
    %28 = vector.multi_reduction <maximumf>, %27, %cst_19 [0] : vector<16x16xf32> to vector<16xf32>
    %29 = vector.shape_cast %28 : vector<16xf32> to vector<1x16xf32>
    %30 = arith.mulf %25, %1 : vector<16x16xf32>
    %cst_20 = arith.constant dense<0.000000e+00> : vector<16xf32>
    %31 = vector.multi_reduction <add>, %30, %cst_20 [0] : vector<16x16xf32> to vector<16xf32>
    %32 = vector.shape_cast %31 : vector<16xf32> to vector<1x16xf32>
    %cst_21 = arith.constant 6.250000e-02 : f32
    %33 = vector.broadcast %cst_21 : f32 to vector<1x16xf32>
    %34 = arith.mulf %32, %33 : vector<1x16xf32>
    %35 = arith.subf %29, %34 : vector<1x16xf32>
    %c0_22 = arith.constant 0 : index
    %c0_23 = arith.constant 0 : index
    %c16 = arith.constant 16 : index
    %36 = vector.load %arg1[%c0_22, %c0_23, %c16] : memref<1x16x32xf32, #tpu.memory_space<vmem>>, vector<1x16x8xf32>
    %37 = vector.shape_cast %36 : vector<1x16x8xf32> to vector<16x8xf32>
    %38 = arith.truncf %37 : vector<16x8xf32> to vector<16x8xbf16>
    %c0_24 = arith.constant 0 : index
    %c0_25 = arith.constant 0 : index
    %c16_26 = arith.constant 16 : index
    %39 = vector.load %arg2[%c0_24, %c0_25, %c16_26] : memref<1x16x32xbf16, #tpu.memory_space<vmem>>, vector<1x16x8xbf16>
    %40 = vector.shape_cast %39 : vector<1x16x8xbf16> to vector<16x8xbf16>
    %cst_27 = arith.constant dense<0.000000e+00> : vector<16x16xf32>
    %41 = tpu.matmul %40, %38, %cst_27 {dimension_numbers = #tpu.dot_dimension_numbers<[1], [1], [0], [0], [0, 0, 1, 0], [], []>} : vector<16x8xbf16>, vector<16x8xbf16>, vector<16x16xf32> -> vector<16x16xf32>
    %cst_28 = arith.constant -1.000000e+30 : f32
    %42 = vector.broadcast %cst_28 : f32 to vector<16x16xf32>
    %43 = arith.select %3, %41, %42 : vector<16x16xi1>, vector<16x16xf32>
    %cst_29 = arith.constant dense<0xFF800000> : vector<16xf32>
    %44 = vector.multi_reduction <maximumf>, %43, %cst_29 [0] : vector<16x16xf32> to vector<16xf32>
    %45 = vector.shape_cast %44 : vector<16xf32> to vector<1x16xf32>
    %46 = arith.mulf %41, %1 : vector<16x16xf32>
    %cst_30 = arith.constant dense<0.000000e+00> : vector<16xf32>
    %47 = vector.multi_reduction <add>, %46, %cst_30 [0] : vector<16x16xf32> to vector<16xf32>
    %48 = vector.shape_cast %47 : vector<16xf32> to vector<1x16xf32>
    %cst_31 = arith.constant 6.250000e-02 : f32
    %49 = vector.broadcast %cst_31 : f32 to vector<1x16xf32>
    %50 = arith.mulf %48, %49 : vector<1x16xf32>
    %51 = arith.subf %45, %50 : vector<1x16xf32>
    %c0_32 = arith.constant 0 : index
    %c0_33 = arith.constant 0 : index
    %c24 = arith.constant 24 : index
    %52 = vector.load %arg1[%c0_32, %c0_33, %c24] : memref<1x16x32xf32, #tpu.memory_space<vmem>>, vector<1x16x8xf32>
    %53 = vector.shape_cast %52 : vector<1x16x8xf32> to vector<16x8xf32>
    %54 = arith.truncf %53 : vector<16x8xf32> to vector<16x8xbf16>
    %c0_34 = arith.constant 0 : index
    %c0_35 = arith.constant 0 : index
    %c24_36 = arith.constant 24 : index
    %55 = vector.load %arg2[%c0_34, %c0_35, %c24_36] : memref<1x16x32xbf16, #tpu.memory_space<vmem>>, vector<1x16x8xbf16>
    %56 = vector.shape_cast %55 : vector<1x16x8xbf16> to vector<16x8xbf16>
    %cst_37 = arith.constant dense<0.000000e+00> : vector<16x16xf32>
    %57 = tpu.matmul %56, %54, %cst_37 {dimension_numbers = #tpu.dot_dimension_numbers<[1], [1], [0], [0], [0, 0, 1, 0], [], []>} : vector<16x8xbf16>, vector<16x8xbf16>, vector<16x16xf32> -> vector<16x16xf32>
    %cst_38 = arith.constant -1.000000e+30 : f32
    %58 = vector.broadcast %cst_38 : f32 to vector<16x16xf32>
    %59 = arith.select %3, %57, %58 : vector<16x16xi1>, vector<16x16xf32>
    %cst_39 = arith.constant dense<0xFF800000> : vector<16xf32>
    %60 = vector.multi_reduction <maximumf>, %59, %cst_39 [0] : vector<16x16xf32> to vector<16xf32>
    %61 = vector.shape_cast %60 : vector<16xf32> to vector<1x16xf32>
    %62 = arith.mulf %57, %1 : vector<16x16xf32>
    %cst_40 = arith.constant dense<0.000000e+00> : vector<16xf32>
    %63 = vector.multi_reduction <add>, %62, %cst_40 [0] : vector<16x16xf32> to vector<16xf32>
    %64 = vector.shape_cast %63 : vector<16xf32> to vector<1x16xf32>
    %cst_41 = arith.constant 6.250000e-02 : f32
    %65 = vector.broadcast %cst_41 : f32 to vector<1x16xf32>
    %66 = arith.mulf %64, %65 : vector<1x16xf32>
    %67 = arith.subf %61, %66 : vector<1x16xf32>
    %68 = tpu.concatenate %19, %35, %51, %67 in 0 : vector<1x16xf32>, vector<1x16xf32>, vector<1x16xf32>, vector<1x16xf32> -> vector<4x16xf32>
    %c0_42 = arith.constant 0 : index
    %c0_43 = arith.constant 0 : index
    %c0_44 = arith.constant 0 : index
    %69 = vector.load %arg4[%c0_42, %c0_43, %c0_44] : memref<1x4x16xf32, #tpu.memory_space<vmem>>, vector<1x4x16xf32>
    %70 = vector.shape_cast %69 : vector<1x4x16xf32> to vector<4x16xf32>
    %71 = vector.shape_cast %68 : vector<4x16xf32> to vector<1x4x16xf32>
    tpu.vector_store %arg4[%c0_42, %c0_43, %c0_44], %71 {strides = array<i32>} : memref<1x4x16xf32, #tpu.memory_space<vmem>>, vector<1x4x16xf32>,
    return
  }
  func.func @transform_0(%arg0: i32) -> (i32, i32, i32) {
    %c0_i32 = arith.constant 0 : i32
    %c0_i32_0 = arith.constant 0 : i32
    %c0_i32_1 = arith.constant 0 : i32
    return %arg0, %c0_i32, %c0_i32_0 : i32, i32, i32
  }
  func.func @transform_1(%arg0: i32) -> (i32, i32, i32) {
    %c0_i32 = arith.constant 0 : i32
    %c0_i32_0 = arith.constant 0 : i32
    %c0_i32_1 = arith.constant 0 : i32
    return %arg0, %c0_i32, %c0_i32_0 : i32, i32, i32
  }
  func.func @transform_2(%arg0: i32) -> (i32, i32) {
    %c0_i32 = arith.constant 0 : i32
    %c0_i32_0 = arith.constant 0 : i32
    %c0_i32_1 = arith.constant 0 : i32
    return %c0_i32, %c0_i32_0 : i32, i32
  }
  func.func @transform_3(%arg0: i32) -> (i32, i32, i32) {
    %c0_i32 = arith.constant 0 : i32
    %c0_i32_0 = arith.constant 0 : i32
    %c0_i32_1 = arith.constant 0 : i32
    return %arg0, %c0_i32, %c0_i32_0 : i32, i32, i32
  }
}

module attributes {stable_mosaic.version = 11 : i64} {
  func.func @_linear_kernel(%arg0: i32, %arg1: memref<32x32xf32, #tpu.memory_space<vmem>>, %arg2: memref<32x32xbf16, #tpu.memory_space<vmem>>, %arg3: memref<1x32xf32, #tpu.memory_space<vmem>>, %arg4: memref<32x32xf32, #tpu.memory_space<vmem>>) attributes {dimension_semantics = [#tpu.dimension_semantics<parallel>], iteration_bounds = array<i64: 1>, scalar_prefetch = 0 : i64, scratch_operands = 0 : i64, tpu.core_type = #tpu.core_type<tc>, window_params = [{transform_indices = @transform_0, window_bounds = array<i64: 32, 32>}, {pipeline_mode = #tpu.pipeline_mode<synchronous>, transform_indices = @transform_1, window_bounds = array<i64: 32, 32>}, {pipeline_mode = #tpu.pipeline_mode<synchronous>, transform_indices = @transform_2, window_bounds = array<i64: 1, 32>}, {transform_indices = @transform_3, window_bounds = array<i64: 32, 32>}]} {
    %c0 = arith.constant 0 : index
    %c0_0 = arith.constant 0 : index
    %0 = vector.load %arg1[%c0, %c0_0] : memref<32x32xf32, #tpu.memory_space<vmem>>, vector<32x32xf32>
    %1 = arith.truncf %0 : vector<32x32xf32> to vector<32x32xbf16>
    %c0_1 = arith.constant 0 : index
    %c0_2 = arith.constant 0 : index
    %2 = vector.load %arg2[%c0_1, %c0_2] : memref<32x32xbf16, #tpu.memory_space<vmem>>, vector<32x32xbf16>
    %cst = arith.constant dense<0.000000e+00> : vector<32x32xf32>
    %3 = tpu.matmul %1, %2, %cst {dimension_numbers = #tpu.dot_dimension_numbers<[1], [0], [0], [1], [0, 0, 1, 1], [], []>} : vector<32x32xbf16>, vector<32x32xbf16>, vector<32x32xf32> -> vector<32x32xf32>
    %c0_3 = arith.constant 0 : index
    %c0_4 = arith.constant 0 : index
    %4 = vector.load %arg3[%c0_3, %c0_4] : memref<1x32xf32, #tpu.memory_space<vmem>>, vector<1x32xf32>
    %5 = vector.broadcast %4 : vector<1x32xf32> to vector<32x32xf32>
    %6 = arith.addf %3, %5 : vector<32x32xf32>
    %c0_5 = arith.constant 0 : index
    %c0_6 = arith.constant 0 : index
    %7 = vector.load %arg4[%c0_5, %c0_6] : memref<32x32xf32, #tpu.memory_space<vmem>>, vector<32x32xf32>
    tpu.vector_store %arg4[%c0_5, %c0_6], %6 {strides = array<i32>} : memref<32x32xf32, #tpu.memory_space<vmem>>, vector<32x32xf32>,
    return
  }
  func.func @transform_0(%arg0: i32) -> (i32, i32) {
    %c0_i32 = arith.constant 0 : i32
    %c0_i32_0 = arith.constant 0 : i32
    return %arg0, %c0_i32 : i32, i32
  }
  func.func @transform_1(%arg0: i32) -> (i32, i32) {
    %c0_i32 = arith.constant 0 : i32
    %c0_i32_0 = arith.constant 0 : i32
    %c0_i32_1 = arith.constant 0 : i32
    return %c0_i32, %c0_i32_0 : i32, i32
  }
  func.func @transform_2(%arg0: i32) -> (i32, i32) {
    %c0_i32 = arith.constant 0 : i32
    %c0_i32_0 = arith.constant 0 : i32
    %c0_i32_1 = arith.constant 0 : i32
    return %c0_i32, %c0_i32_0 : i32, i32
  }
  func.func @transform_3(%arg0: i32) -> (i32, i32) {
    %c0_i32 = arith.constant 0 : i32
    %c0_i32_0 = arith.constant 0 : i32
    return %arg0, %c0_i32 : i32, i32
  }
}

module attributes {stable_mosaic.version = 11 : i64} {
  func.func @_linear_kernel(%arg0: i32, %arg1: memref<32x32xf32, #tpu.memory_space<vmem>>, %arg2: memref<32x32xbf16, #tpu.memory_space<vmem>>, %arg3: memref<1x32xf32, #tpu.memory_space<vmem>>, %arg4: memref<32x32xbf16, #tpu.memory_space<vmem>>) attributes {dimension_semantics = [#tpu.dimension_semantics<parallel>], iteration_bounds = array<i64: 1>, scalar_prefetch = 0 : i64, scratch_operands = 0 : i64, tpu.core_type = #tpu.core_type<tc>, window_params = [{transform_indices = @transform_0, window_bounds = array<i64: 32, 32>}, {pipeline_mode = #tpu.pipeline_mode<synchronous>, transform_indices = @transform_1, window_bounds = array<i64: 32, 32>}, {pipeline_mode = #tpu.pipeline_mode<synchronous>, transform_indices = @transform_2, window_bounds = array<i64: 1, 32>}, {transform_indices = @transform_3, window_bounds = array<i64: 32, 32>}]} {
    %c0 = arith.constant 0 : index
    %c0_0 = arith.constant 0 : index
    %0 = vector.load %arg1[%c0, %c0_0] : memref<32x32xf32, #tpu.memory_space<vmem>>, vector<32x32xf32>
    %1 = arith.truncf %0 : vector<32x32xf32> to vector<32x32xbf16>
    %c0_1 = arith.constant 0 : index
    %c0_2 = arith.constant 0 : index
    %2 = vector.load %arg2[%c0_1, %c0_2] : memref<32x32xbf16, #tpu.memory_space<vmem>>, vector<32x32xbf16>
    %cst = arith.constant dense<0.000000e+00> : vector<32x32xf32>
    %3 = tpu.matmul %1, %2, %cst {dimension_numbers = #tpu.dot_dimension_numbers<[1], [0], [0], [1], [0, 0, 1, 1], [], []>} : vector<32x32xbf16>, vector<32x32xbf16>, vector<32x32xf32> -> vector<32x32xf32>
    %c0_3 = arith.constant 0 : index
    %c0_4 = arith.constant 0 : index
    %4 = vector.load %arg3[%c0_3, %c0_4] : memref<1x32xf32, #tpu.memory_space<vmem>>, vector<1x32xf32>
    %5 = vector.broadcast %4 : vector<1x32xf32> to vector<32x32xf32>
    %6 = arith.addf %3, %5 : vector<32x32xf32>
    %7 = arith.truncf %6 : vector<32x32xf32> to vector<32x32xbf16>
    %c0_5 = arith.constant 0 : index
    %c0_6 = arith.constant 0 : index
    %8 = vector.load %arg4[%c0_5, %c0_6] : memref<32x32xbf16, #tpu.memory_space<vmem>>, vector<32x32xbf16>
    tpu.vector_store %arg4[%c0_5, %c0_6], %7 {strides = array<i32>} : memref<32x32xbf16, #tpu.memory_space<vmem>>, vector<32x32xbf16>,
    return
  }
  func.func @transform_0(%arg0: i32) -> (i32, i32) {
    %c0_i32 = arith.constant 0 : i32
    %c0_i32_0 = arith.constant 0 : i32
    return %arg0, %c0_i32 : i32, i32
  }
  func.func @transform_1(%arg0: i32) -> (i32, i32) {
    %c0_i32 = arith.constant 0 : i32
    %c0_i32_0 = arith.constant 0 : i32
    %c0_i32_1 = arith.constant 0 : i32
    return %c0_i32, %c0_i32_0 : i32, i32
  }
  func.func @transform_2(%arg0: i32) -> (i32, i32) {
    %c0_i32 = arith.constant 0 : i32
    %c0_i32_0 = arith.constant 0 : i32
    %c0_i32_1 = arith.constant 0 : i32
    return %c0_i32, %c0_i32_0 : i32, i32
  }
  func.func @transform_3(%arg0: i32) -> (i32, i32) {
    %c0_i32 = arith.constant 0 : i32
    %c0_i32_0 = arith.constant 0 : i32
    return %arg0, %c0_i32 : i32, i32
  }
}

module attributes {stable_mosaic.version = 11 : i64} {
  func.func @_linear_kernel(%arg0: i32, %arg1: memref<32x32xf32, #tpu.memory_space<vmem>>, %arg2: memref<32x32xbf16, #tpu.memory_space<vmem>>, %arg3: memref<1x32xf32, #tpu.memory_space<vmem>>, %arg4: memref<32x32xf32, #tpu.memory_space<vmem>>) attributes {dimension_semantics = [#tpu.dimension_semantics<parallel>], iteration_bounds = array<i64: 1>, scalar_prefetch = 0 : i64, scratch_operands = 0 : i64, tpu.core_type = #tpu.core_type<tc>, window_params = [{transform_indices = @transform_0, window_bounds = array<i64: 32, 32>}, {pipeline_mode = #tpu.pipeline_mode<synchronous>, transform_indices = @transform_1, window_bounds = array<i64: 32, 32>}, {pipeline_mode = #tpu.pipeline_mode<synchronous>, transform_indices = @transform_2, window_bounds = array<i64: 1, 32>}, {transform_indices = @transform_3, window_bounds = array<i64: 32, 32>}]} {
    %c0 = arith.constant 0 : index
    %c0_0 = arith.constant 0 : index
    %0 = vector.load %arg1[%c0, %c0_0] : memref<32x32xf32, #tpu.memory_space<vmem>>, vector<32x32xf32>
    %1 = arith.truncf %0 : vector<32x32xf32> to vector<32x32xbf16>
    %c0_1 = arith.constant 0 : index
    %c0_2 = arith.constant 0 : index
    %2 = vector.load %arg2[%c0_1, %c0_2] : memref<32x32xbf16, #tpu.memory_space<vmem>>, vector<32x32xbf16>
    %cst = arith.constant dense<0.000000e+00> : vector<32x32xf32>
    %3 = tpu.matmul %1, %2, %cst {dimension_numbers = #tpu.dot_dimension_numbers<[1], [0], [0], [1], [0, 0, 1, 1], [], []>} : vector<32x32xbf16>, vector<32x32xbf16>, vector<32x32xf32> -> vector<32x32xf32>
    %c0_3 = arith.constant 0 : index
    %c0_4 = arith.constant 0 : index
    %4 = vector.load %arg3[%c0_3, %c0_4] : memref<1x32xf32, #tpu.memory_space<vmem>>, vector<1x32xf32>
    %5 = vector.broadcast %4 : vector<1x32xf32> to vector<32x32xf32>
    %6 = arith.addf %3, %5 : vector<32x32xf32>
    %c0_5 = arith.constant 0 : index
    %c0_6 = arith.constant 0 : index
    %7 = vector.load %arg4[%c0_5, %c0_6] : memref<32x32xf32, #tpu.memory_space<vmem>>, vector<32x32xf32>
    tpu.vector_store %arg4[%c0_5, %c0_6], %6 {strides = array<i32>} : memref<32x32xf32, #tpu.memory_space<vmem>>, vector<32x32xf32>,
    return
  }
  func.func @transform_0(%arg0: i32) -> (i32, i32) {
    %c0_i32 = arith.constant 0 : i32
    %c0_i32_0 = arith.constant 0 : i32
    return %arg0, %c0_i32 : i32, i32
  }
  func.func @transform_1(%arg0: i32) -> (i32, i32) {
    %c0_i32 = arith.constant 0 : i32
    %c0_i32_0 = arith.constant 0 : i32
    %c0_i32_1 = arith.constant 0 : i32
    return %c0_i32, %c0_i32_0 : i32, i32
  }
  func.func @transform_2(%arg0: i32) -> (i32, i32) {
    %c0_i32 = arith.constant 0 : i32
    %c0_i32_0 = arith.constant 0 : i32
    %c0_i32_1 = arith.constant 0 : i32
    return %c0_i32, %c0_i32_0 : i32, i32
  }
  func.func @transform_3(%arg0: i32) -> (i32, i32) {
    %c0_i32 = arith.constant 0 : i32
    %c0_i32_0 = arith.constant 0 : i32
    return %arg0, %c0_i32 : i32, i32
  }
}

module attributes {stable_mosaic.version = 11 : i64} {
  func.func @_context_kernel(%arg0: i32, %arg1: memref<2x4x15xi32, #tpu.memory_space<smem>>, %arg2: memref<1x16x32xf32, #tpu.memory_space<vmem>>, %arg3: memref<1x16x32xbf16, #tpu.memory_space<vmem>>, %arg4: memref<1x16x32xbf16, #tpu.memory_space<vmem>>, %arg5: memref<1x16x32xf32, #tpu.memory_space<vmem>>) attributes {dimension_semantics = [#tpu.dimension_semantics<parallel>], iteration_bounds = array<i64: 2>, scalar_prefetch = 1 : i64, scratch_operands = 0 : i64, tpu.core_type = #tpu.core_type<tc>, window_params = [{transform_indices = @transform_0, window_bounds = array<i64: 1, 16, 32>}, {transform_indices = @transform_1, window_bounds = array<i64: 1, 16, 32>}, {transform_indices = @transform_2, window_bounds = array<i64: 1, 16, 32>}, {transform_indices = @transform_3, window_bounds = array<i64: 1, 16, 32>}]} {
    %c0 = arith.constant 0 : index
    %c0_0 = arith.constant 0 : index
    %c0_1 = arith.constant 0 : index
    %0 = vector.load %arg4[%c0, %c0_0, %c0_1] : memref<1x16x32xbf16, #tpu.memory_space<vmem>>, vector<1x16x32xbf16>
    %1 = vector.shape_cast %0 : vector<1x16x32xbf16> to vector<16x32xbf16>
    %2 = arith.extf %1 : vector<16x32xbf16> to vector<16x32xf32>
    %cst = arith.constant dense<0.000000e+00> : vector<32xf32>
    %3 = vector.multi_reduction <add>, %2, %cst [0] : vector<16x32xf32> to vector<32xf32>
    %4 = vector.shape_cast %3 : vector<32xf32> to vector<1x32xf32>
    %cst_2 = arith.constant 1.600000e+01 : f32
    %5 = vector.broadcast %cst_2 : f32 to vector<1x32xf32>
    %6 = arith.divf %4, %5 : vector<1x32xf32>
    %7 = vector.shape_cast %6 : vector<1x32xf32> to vector<1x32xf32>
    %8 = vector.broadcast %7 : vector<1x32xf32> to vector<16x32xf32>
    %c0_3 = arith.constant 0 : index
    %c0_4 = arith.constant 0 : index
    %c0_5 = arith.constant 0 : index
    %9 = vector.load %arg5[%c0_3, %c0_4, %c0_5] : memref<1x16x32xf32, #tpu.memory_space<vmem>>, vector<1x16x32xf32>
    %10 = vector.shape_cast %9 : vector<1x16x32xf32> to vector<16x32xf32>
    %11 = vector.shape_cast %8 : vector<16x32xf32> to vector<1x16x32xf32>
    tpu.vector_store %arg5[%c0_3, %c0_4, %c0_5], %11 {strides = array<i32>} : memref<1x16x32xf32, #tpu.memory_space<vmem>>, vector<1x16x32xf32>,
    %c0_6 = arith.constant 0 : index
    %c0_7 = arith.constant 0 : index
    %c0_8 = arith.constant 0 : index
    %12 = vector.load %arg3[%c0_6, %c0_7, %c0_8] : memref<1x16x32xbf16, #tpu.memory_space<vmem>>, vector<1x16x8xbf16>
    %13 = vector.shape_cast %12 : vector<1x16x8xbf16> to vector<16x8xbf16>
    %14 = vector.extract_strided_slice %1 {offsets = [0, 0], sizes = [16, 8], strides = [1, 1]} : vector<16x32xbf16> to vector<16x8xbf16>
    %15 = arith.index_cast %arg0 : i32 to index
    %c0_9 = arith.constant 0 : index
    %c0_10 = arith.constant 0 : index
    %16 = memref.load %arg1[%15, %c0_9, %c0_10] : memref<2x4x15xi32, #tpu.memory_space<smem>>
    %17 = arith.index_cast %arg0 : i32 to index
    %c0_11 = arith.constant 0 : index
    %c1 = arith.constant 1 : index
    %18 = memref.load %arg1[%17, %c0_11, %c1] : memref<2x4x15xi32, #tpu.memory_space<smem>>
    %19 = arith.index_cast %arg0 : i32 to index
    %c0_12 = arith.constant 0 : index
    %c2 = arith.constant 2 : index
    %20 = memref.load %arg1[%19, %c0_12, %c2] : memref<2x4x15xi32, #tpu.memory_space<smem>>
    %21 = arith.index_cast %arg0 : i32 to index
    %c0_13 = arith.constant 0 : index
    %c3 = arith.constant 3 : index
    %22 = memref.load %arg1[%21, %c0_13, %c3] : memref<2x4x15xi32, #tpu.memory_space<smem>>
    %23 = arith.index_cast %arg0 : i32 to index
    %c0_14 = arith.constant 0 : index
    %c4 = arith.constant 4 : index
    %24 = memref.load %arg1[%23, %c0_14, %c4] : memref<2x4x15xi32, #tpu.memory_space<smem>>
    %25 = arith.index_cast %arg0 : i32 to index
    %c0_15 = arith.constant 0 : index
    %c5 = arith.constant 5 : index
    %26 = memref.load %arg1[%25, %c0_15, %c5] : memref<2x4x15xi32, #tpu.memory_space<smem>>
    %27 = arith.index_cast %arg0 : i32 to index
    %c0_16 = arith.constant 0 : index
    %c6 = arith.constant 6 : index
    %28 = memref.load %arg1[%27, %c0_16, %c6] : memref<2x4x15xi32, #tpu.memory_space<smem>>
    %29 = arith.index_cast %arg0 : i32 to index
    %c0_17 = arith.constant 0 : index
    %c7 = arith.constant 7 : index
    %30 = memref.load %arg1[%29, %c0_17, %c7] : memref<2x4x15xi32, #tpu.memory_space<smem>>
    %31 = arith.index_cast %arg0 : i32 to index
    %c0_18 = arith.constant 0 : index
    %c8 = arith.constant 8 : index
    %32 = memref.load %arg1[%31, %c0_18, %c8] : memref<2x4x15xi32, #tpu.memory_space<smem>>
    %33 = arith.index_cast %arg0 : i32 to index
    %c0_19 = arith.constant 0 : index
    %c9 = arith.constant 9 : index
    %34 = memref.load %arg1[%33, %c0_19, %c9] : memref<2x4x15xi32, #tpu.memory_space<smem>>
    %35 = arith.index_cast %arg0 : i32 to index
    %c0_20 = arith.constant 0 : index
    %c10 = arith.constant 10 : index
    %36 = memref.load %arg1[%35, %c0_20, %c10] : memref<2x4x15xi32, #tpu.memory_space<smem>>
    %37 = arith.index_cast %arg0 : i32 to index
    %c0_21 = arith.constant 0 : index
    %c11 = arith.constant 11 : index
    %38 = memref.load %arg1[%37, %c0_21, %c11] : memref<2x4x15xi32, #tpu.memory_space<smem>>
    %39 = arith.index_cast %arg0 : i32 to index
    %c0_22 = arith.constant 0 : index
    %c12 = arith.constant 12 : index
    %40 = memref.load %arg1[%39, %c0_22, %c12] : memref<2x4x15xi32, #tpu.memory_space<smem>>
    %41 = arith.index_cast %arg0 : i32 to index
    %c0_23 = arith.constant 0 : index
    %c13 = arith.constant 13 : index
    %42 = memref.load %arg1[%41, %c0_23, %c13] : memref<2x4x15xi32, #tpu.memory_space<smem>>
    %43 = arith.index_cast %arg0 : i32 to index
    %c0_24 = arith.constant 0 : index
    %c14 = arith.constant 14 : index
    %44 = memref.load %arg1[%43, %c0_24, %c14] : memref<2x4x15xi32, #tpu.memory_space<smem>>
    %c0_25 = arith.constant 0 : index
    %45 = arith.index_cast %16 : i32 to index
    %c0_26 = arith.constant 0 : index
    %46 = vector.load %arg2[%c0_25, %45, %c0_26] : memref<1x16x32xf32, #tpu.memory_space<vmem>>, vector<1x1x8xf32>
    %47 = vector.shape_cast %46 : vector<1x1x8xf32> to vector<1x8xf32>
    %c0_27 = arith.constant 0 : index
    %48 = arith.index_cast %18 : i32 to index
    %c0_28 = arith.constant 0 : index
    %49 = vector.load %arg2[%c0_27, %48, %c0_28] : memref<1x16x32xf32, #tpu.memory_space<vmem>>, vector<1x1x8xf32>
    %50 = vector.shape_cast %49 : vector<1x1x8xf32> to vector<1x8xf32>
    %c0_29 = arith.constant 0 : index
    %51 = arith.index_cast %20 : i32 to index
    %c0_30 = arith.constant 0 : index
    %52 = vector.load %arg2[%c0_29, %51, %c0_30] : memref<1x16x32xf32, #tpu.memory_space<vmem>>, vector<1x1x8xf32>
    %53 = vector.shape_cast %52 : vector<1x1x8xf32> to vector<1x8xf32>
    %c0_31 = arith.constant 0 : index
    %54 = arith.index_cast %22 : i32 to index
    %c0_32 = arith.constant 0 : index
    %55 = vector.load %arg2[%c0_31, %54, %c0_32] : memref<1x16x32xf32, #tpu.memory_space<vmem>>, vector<1x1x8xf32>
    %56 = vector.shape_cast %55 : vector<1x1x8xf32> to vector<1x8xf32>
    %c0_33 = arith.constant 0 : index
    %57 = arith.index_cast %24 : i32 to index
    %c0_34 = arith.constant 0 : index
    %58 = vector.load %arg2[%c0_33, %57, %c0_34] : memref<1x16x32xf32, #tpu.memory_space<vmem>>, vector<1x1x8xf32>
    %59 = vector.shape_cast %58 : vector<1x1x8xf32> to vector<1x8xf32>
    %c0_35 = arith.constant 0 : index
    %60 = arith.index_cast %26 : i32 to index
    %c0_36 = arith.constant 0 : index
    %61 = vector.load %arg2[%c0_35, %60, %c0_36] : memref<1x16x32xf32, #tpu.memory_space<vmem>>, vector<1x1x8xf32>
    %62 = vector.shape_cast %61 : vector<1x1x8xf32> to vector<1x8xf32>
    %c0_37 = arith.constant 0 : index
    %63 = arith.index_cast %28 : i32 to index
    %c0_38 = arith.constant 0 : index
    %64 = vector.load %arg2[%c0_37, %63, %c0_38] : memref<1x16x32xf32, #tpu.memory_space<vmem>>, vector<1x1x8xf32>
    %65 = vector.shape_cast %64 : vector<1x1x8xf32> to vector<1x8xf32>
    %c0_39 = arith.constant 0 : index
    %66 = arith.index_cast %30 : i32 to index
    %c0_40 = arith.constant 0 : index
    %67 = vector.load %arg2[%c0_39, %66, %c0_40] : memref<1x16x32xf32, #tpu.memory_space<vmem>>, vector<1x1x8xf32>
    %68 = vector.shape_cast %67 : vector<1x1x8xf32> to vector<1x8xf32>
    %c0_41 = arith.constant 0 : index
    %69 = arith.index_cast %32 : i32 to index
    %c0_42 = arith.constant 0 : index
    %70 = vector.load %arg2[%c0_41, %69, %c0_42] : memref<1x16x32xf32, #tpu.memory_space<vmem>>, vector<1x1x8xf32>
    %71 = vector.shape_cast %70 : vector<1x1x8xf32> to vector<1x8xf32>
    %c0_43 = arith.constant 0 : index
    %72 = arith.index_cast %34 : i32 to index
    %c0_44 = arith.constant 0 : index
    %73 = vector.load %arg2[%c0_43, %72, %c0_44] : memref<1x16x32xf32, #tpu.memory_space<vmem>>, vector<1x1x8xf32>
    %74 = vector.shape_cast %73 : vector<1x1x8xf32> to vector<1x8xf32>
    %c0_45 = arith.constant 0 : index
    %75 = arith.index_cast %36 : i32 to index
    %c0_46 = arith.constant 0 : index
    %76 = vector.load %arg2[%c0_45, %75, %c0_46] : memref<1x16x32xf32, #tpu.memory_space<vmem>>, vector<1x1x8xf32>
    %77 = vector.shape_cast %76 : vector<1x1x8xf32> to vector<1x8xf32>
    %c0_47 = arith.constant 0 : index
    %78 = arith.index_cast %38 : i32 to index
    %c0_48 = arith.constant 0 : index
    %79 = vector.load %arg2[%c0_47, %78, %c0_48] : memref<1x16x32xf32, #tpu.memory_space<vmem>>, vector<1x1x8xf32>
    %80 = vector.shape_cast %79 : vector<1x1x8xf32> to vector<1x8xf32>
    %c0_49 = arith.constant 0 : index
    %81 = arith.index_cast %40 : i32 to index
    %c0_50 = arith.constant 0 : index
    %82 = vector.load %arg2[%c0_49, %81, %c0_50] : memref<1x16x32xf32, #tpu.memory_space<vmem>>, vector<1x1x8xf32>
    %83 = vector.shape_cast %82 : vector<1x1x8xf32> to vector<1x8xf32>
    %c0_51 = arith.constant 0 : index
    %84 = arith.index_cast %42 : i32 to index
    %c0_52 = arith.constant 0 : index
    %85 = vector.load %arg2[%c0_51, %84, %c0_52] : memref<1x16x32xf32, #tpu.memory_space<vmem>>, vector<1x1x8xf32>
    %86 = vector.shape_cast %85 : vector<1x1x8xf32> to vector<1x8xf32>
    %c0_53 = arith.constant 0 : index
    %87 = arith.index_cast %44 : i32 to index
    %c0_54 = arith.constant 0 : index
    %88 = vector.load %arg2[%c0_53, %87, %c0_54] : memref<1x16x32xf32, #tpu.memory_space<vmem>>, vector<1x1x8xf32>
    %89 = vector.shape_cast %88 : vector<1x1x8xf32> to vector<1x8xf32>
    %90 = tpu.concatenate %47, %50, %53, %56, %59, %62, %65, %68, %71, %74, %77, %80, %83, %86, %89 in 0 : vector<1x8xf32>, vector<1x8xf32>, vector<1x8xf32>, vector<1x8xf32>, vector<1x8xf32>, vector<1x8xf32>, vector<1x8xf32>, vector<1x8xf32>, vector<1x8xf32>, vector<1x8xf32>, vector<1x8xf32>, vector<1x8xf32>, vector<1x8xf32>, vector<1x8xf32>, vector<1x8xf32> -> vector<15x8xf32>
    %91 = arith.truncf %90 : vector<15x8xf32> to vector<15x8xbf16>
    %cst_55 = arith.constant dense<0.000000e+00> : vector<15x16xf32>
    %92 = tpu.matmul %91, %13, %cst_55 {dimension_numbers = #tpu.dot_dimension_numbers<[1], [1], [0], [0], [0, 0, 1, 0], [], []>} : vector<15x8xbf16>, vector<16x8xbf16>, vector<15x16xf32> -> vector<15x16xf32>
    %cst_56 = arith.constant 0.353553385 : f32
    %93 = vector.broadcast %cst_56 : f32 to vector<15x16xf32>
    %94 = arith.mulf %92, %93 : vector<15x16xf32>
    %cst_57 = arith.constant dense<0xFF800000> : vector<15xf32>
    %95 = vector.multi_reduction <maximumf>, %94, %cst_57 [1] : vector<15x16xf32> to vector<15xf32>
    %96 = vector.shape_cast %95 : vector<15xf32> to vector<15x1xf32>
    %97 = vector.broadcast %96 : vector<15x1xf32> to vector<15x16xf32>
    %98 = arith.subf %94, %97 : vector<15x16xf32>
    %99 = math.exp %98 : vector<15x16xf32>
    %cst_58 = arith.constant dense<0.000000e+00> : vector<15xf32>
    %100 = vector.multi_reduction <add>, %99, %cst_58 [1] : vector<15x16xf32> to vector<15xf32>
    %101 = vector.shape_cast %100 : vector<15xf32> to vector<15x1xf32>
    %102 = arith.truncf %99 : vector<15x16xf32> to vector<15x16xbf16>
    %cst_59 = arith.constant dense<0.000000e+00> : vector<15x8xf32>
    %103 = tpu.matmul %102, %14, %cst_59 {dimension_numbers = #tpu.dot_dimension_numbers<[1], [0], [0], [1], [0, 0, 1, 1], [], []>} : vector<15x16xbf16>, vector<16x8xbf16>, vector<15x8xf32> -> vector<15x8xf32>
    %104 = tpu.reciprocal %101 {approx = true} : vector<15x1xf32> -> vector<15x1xf32>
    %105 = vector.broadcast %104 : vector<15x1xf32> to vector<15x8xf32>
    %106 = arith.mulf %103, %105 : vector<15x8xf32>
    %107 = vector.extract_strided_slice %106 {offsets = [0, 0], sizes = [1, 8], strides = [1, 1]} : vector<15x8xf32> to vector<1x8xf32>
    %c0_60 = arith.constant 0 : index
    %108 = arith.index_cast %16 : i32 to index
    %c0_61 = arith.constant 0 : index
    %109 = vector.load %arg5[%c0_60, %108, %c0_61] : memref<1x16x32xf32, #tpu.memory_space<vmem>>, vector<1x1x8xf32>
    %110 = vector.shape_cast %109 : vector<1x1x8xf32> to vector<1x8xf32>
    %111 = vector.shape_cast %107 : vector<1x8xf32> to vector<1x1x8xf32>
    tpu.vector_store %arg5[%c0_60, %108, %c0_61], %111 {strides = array<i32>} : memref<1x16x32xf32, #tpu.memory_space<vmem>>, vector<1x1x8xf32>,
    %112 = vector.extract_strided_slice %106 {offsets = [1, 0], sizes = [1, 8], strides = [1, 1]} : vector<15x8xf32> to vector<1x8xf32>
    %c0_62 = arith.constant 0 : index
    %113 = arith.index_cast %18 : i32 to index
    %c0_63 = arith.constant 0 : index
    %114 = vector.load %arg5[%c0_62, %113, %c0_63] : memref<1x16x32xf32, #tpu.memory_space<vmem>>, vector<1x1x8xf32>
    %115 = vector.shape_cast %114 : vector<1x1x8xf32> to vector<1x8xf32>
    %116 = vector.shape_cast %112 : vector<1x8xf32> to vector<1x1x8xf32>
    tpu.vector_store %arg5[%c0_62, %113, %c0_63], %116 {strides = array<i32>} : memref<1x16x32xf32, #tpu.memory_space<vmem>>, vector<1x1x8xf32>,
    %117 = vector.extract_strided_slice %106 {offsets = [2, 0], sizes = [1, 8], strides = [1, 1]} : vector<15x8xf32> to vector<1x8xf32>
    %c0_64 = arith.constant 0 : index
    %118 = arith.index_cast %20 : i32 to index
    %c0_65 = arith.constant 0 : index
    %119 = vector.load %arg5[%c0_64, %118, %c0_65] : memref<1x16x32xf32, #tpu.memory_space<vmem>>, vector<1x1x8xf32>
    %120 = vector.shape_cast %119 : vector<1x1x8xf32> to vector<1x8xf32>
    %121 = vector.shape_cast %117 : vector<1x8xf32> to vector<1x1x8xf32>
    tpu.vector_store %arg5[%c0_64, %118, %c0_65], %121 {strides = array<i32>} : memref<1x16x32xf32, #tpu.memory_space<vmem>>, vector<1x1x8xf32>,
    %122 = vector.extract_strided_slice %106 {offsets = [3, 0], sizes = [1, 8], strides = [1, 1]} : vector<15x8xf32> to vector<1x8xf32>
    %c0_66 = arith.constant 0 : index
    %123 = arith.index_cast %22 : i32 to index
    %c0_67 = arith.constant 0 : index
    %124 = vector.load %arg5[%c0_66, %123, %c0_67] : memref<1x16x32xf32, #tpu.memory_space<vmem>>, vector<1x1x8xf32>
    %125 = vector.shape_cast %124 : vector<1x1x8xf32> to vector<1x8xf32>
    %126 = vector.shape_cast %122 : vector<1x8xf32> to vector<1x1x8xf32>
    tpu.vector_store %arg5[%c0_66, %123, %c0_67], %126 {strides = array<i32>} : memref<1x16x32xf32, #tpu.memory_space<vmem>>, vector<1x1x8xf32>,
    %127 = vector.extract_strided_slice %106 {offsets = [4, 0], sizes = [1, 8], strides = [1, 1]} : vector<15x8xf32> to vector<1x8xf32>
    %c0_68 = arith.constant 0 : index
    %128 = arith.index_cast %24 : i32 to index
    %c0_69 = arith.constant 0 : index
    %129 = vector.load %arg5[%c0_68, %128, %c0_69] : memref<1x16x32xf32, #tpu.memory_space<vmem>>, vector<1x1x8xf32>
    %130 = vector.shape_cast %129 : vector<1x1x8xf32> to vector<1x8xf32>
    %131 = vector.shape_cast %127 : vector<1x8xf32> to vector<1x1x8xf32>
    tpu.vector_store %arg5[%c0_68, %128, %c0_69], %131 {strides = array<i32>} : memref<1x16x32xf32, #tpu.memory_space<vmem>>, vector<1x1x8xf32>,
    %132 = vector.extract_strided_slice %106 {offsets = [5, 0], sizes = [1, 8], strides = [1, 1]} : vector<15x8xf32> to vector<1x8xf32>
    %c0_70 = arith.constant 0 : index
    %133 = arith.index_cast %26 : i32 to index
    %c0_71 = arith.constant 0 : index
    %134 = vector.load %arg5[%c0_70, %133, %c0_71] : memref<1x16x32xf32, #tpu.memory_space<vmem>>, vector<1x1x8xf32>
    %135 = vector.shape_cast %134 : vector<1x1x8xf32> to vector<1x8xf32>
    %136 = vector.shape_cast %132 : vector<1x8xf32> to vector<1x1x8xf32>
    tpu.vector_store %arg5[%c0_70, %133, %c0_71], %136 {strides = array<i32>} : memref<1x16x32xf32, #tpu.memory_space<vmem>>, vector<1x1x8xf32>,
    %137 = vector.extract_strided_slice %106 {offsets = [6, 0], sizes = [1, 8], strides = [1, 1]} : vector<15x8xf32> to vector<1x8xf32>
    %c0_72 = arith.constant 0 : index
    %138 = arith.index_cast %28 : i32 to index
    %c0_73 = arith.constant 0 : index
    %139 = vector.load %arg5[%c0_72, %138, %c0_73] : memref<1x16x32xf32, #tpu.memory_space<vmem>>, vector<1x1x8xf32>
    %140 = vector.shape_cast %139 : vector<1x1x8xf32> to vector<1x8xf32>
    %141 = vector.shape_cast %137 : vector<1x8xf32> to vector<1x1x8xf32>
    tpu.vector_store %arg5[%c0_72, %138, %c0_73], %141 {strides = array<i32>} : memref<1x16x32xf32, #tpu.memory_space<vmem>>, vector<1x1x8xf32>,
    %142 = vector.extract_strided_slice %106 {offsets = [7, 0], sizes = [1, 8], strides = [1, 1]} : vector<15x8xf32> to vector<1x8xf32>
    %c0_74 = arith.constant 0 : index
    %143 = arith.index_cast %30 : i32 to index
    %c0_75 = arith.constant 0 : index
    %144 = vector.load %arg5[%c0_74, %143, %c0_75] : memref<1x16x32xf32, #tpu.memory_space<vmem>>, vector<1x1x8xf32>
    %145 = vector.shape_cast %144 : vector<1x1x8xf32> to vector<1x8xf32>
    %146 = vector.shape_cast %142 : vector<1x8xf32> to vector<1x1x8xf32>
    tpu.vector_store %arg5[%c0_74, %143, %c0_75], %146 {strides = array<i32>} : memref<1x16x32xf32, #tpu.memory_space<vmem>>, vector<1x1x8xf32>,
    %147 = vector.extract_strided_slice %106 {offsets = [8, 0], sizes = [1, 8], strides = [1, 1]} : vector<15x8xf32> to vector<1x8xf32>
    %c0_76 = arith.constant 0 : index
    %148 = arith.index_cast %32 : i32 to index
    %c0_77 = arith.constant 0 : index
    %149 = vector.load %arg5[%c0_76, %148, %c0_77] : memref<1x16x32xf32, #tpu.memory_space<vmem>>, vector<1x1x8xf32>
    %150 = vector.shape_cast %149 : vector<1x1x8xf32> to vector<1x8xf32>
    %151 = vector.shape_cast %147 : vector<1x8xf32> to vector<1x1x8xf32>
    tpu.vector_store %arg5[%c0_76, %148, %c0_77], %151 {strides = array<i32>} : memref<1x16x32xf32, #tpu.memory_space<vmem>>, vector<1x1x8xf32>,
    %152 = vector.extract_strided_slice %106 {offsets = [9, 0], sizes = [1, 8], strides = [1, 1]} : vector<15x8xf32> to vector<1x8xf32>
    %c0_78 = arith.constant 0 : index
    %153 = arith.index_cast %34 : i32 to index
    %c0_79 = arith.constant 0 : index
    %154 = vector.load %arg5[%c0_78, %153, %c0_79] : memref<1x16x32xf32, #tpu.memory_space<vmem>>, vector<1x1x8xf32>
    %155 = vector.shape_cast %154 : vector<1x1x8xf32> to vector<1x8xf32>
    %156 = vector.shape_cast %152 : vector<1x8xf32> to vector<1x1x8xf32>
    tpu.vector_store %arg5[%c0_78, %153, %c0_79], %156 {strides = array<i32>} : memref<1x16x32xf32, #tpu.memory_space<vmem>>, vector<1x1x8xf32>,
    %157 = vector.extract_strided_slice %106 {offsets = [10, 0], sizes = [1, 8], strides = [1, 1]} : vector<15x8xf32> to vector<1x8xf32>
    %c0_80 = arith.constant 0 : index
    %158 = arith.index_cast %36 : i32 to index
    %c0_81 = arith.constant 0 : index
    %159 = vector.load %arg5[%c0_80, %158, %c0_81] : memref<1x16x32xf32, #tpu.memory_space<vmem>>, vector<1x1x8xf32>
    %160 = vector.shape_cast %159 : vector<1x1x8xf32> to vector<1x8xf32>
    %161 = vector.shape_cast %157 : vector<1x8xf32> to vector<1x1x8xf32>
    tpu.vector_store %arg5[%c0_80, %158, %c0_81], %161 {strides = array<i32>} : memref<1x16x32xf32, #tpu.memory_space<vmem>>, vector<1x1x8xf32>,
    %162 = vector.extract_strided_slice %106 {offsets = [11, 0], sizes = [1, 8], strides = [1, 1]} : vector<15x8xf32> to vector<1x8xf32>
    %c0_82 = arith.constant 0 : index
    %163 = arith.index_cast %38 : i32 to index
    %c0_83 = arith.constant 0 : index
    %164 = vector.load %arg5[%c0_82, %163, %c0_83] : memref<1x16x32xf32, #tpu.memory_space<vmem>>, vector<1x1x8xf32>
    %165 = vector.shape_cast %164 : vector<1x1x8xf32> to vector<1x8xf32>
    %166 = vector.shape_cast %162 : vector<1x8xf32> to vector<1x1x8xf32>
    tpu.vector_store %arg5[%c0_82, %163, %c0_83], %166 {strides = array<i32>} : memref<1x16x32xf32, #tpu.memory_space<vmem>>, vector<1x1x8xf32>,
    %167 = vector.extract_strided_slice %106 {offsets = [12, 0], sizes = [1, 8], strides = [1, 1]} : vector<15x8xf32> to vector<1x8xf32>
    %c0_84 = arith.constant 0 : index
    %168 = arith.index_cast %40 : i32 to index
    %c0_85 = arith.constant 0 : index
    %169 = vector.load %arg5[%c0_84, %168, %c0_85] : memref<1x16x32xf32, #tpu.memory_space<vmem>>, vector<1x1x8xf32>
    %170 = vector.shape_cast %169 : vector<1x1x8xf32> to vector<1x8xf32>
    %171 = vector.shape_cast %167 : vector<1x8xf32> to vector<1x1x8xf32>
    tpu.vector_store %arg5[%c0_84, %168, %c0_85], %171 {strides = array<i32>} : memref<1x16x32xf32, #tpu.memory_space<vmem>>, vector<1x1x8xf32>,
    %172 = vector.extract_strided_slice %106 {offsets = [13, 0], sizes = [1, 8], strides = [1, 1]} : vector<15x8xf32> to vector<1x8xf32>
    %c0_86 = arith.constant 0 : index
    %173 = arith.index_cast %42 : i32 to index
    %c0_87 = arith.constant 0 : index
    %174 = vector.load %arg5[%c0_86, %173, %c0_87] : memref<1x16x32xf32, #tpu.memory_space<vmem>>, vector<1x1x8xf32>
    %175 = vector.shape_cast %174 : vector<1x1x8xf32> to vector<1x8xf32>
    %176 = vector.shape_cast %172 : vector<1x8xf32> to vector<1x1x8xf32>
    tpu.vector_store %arg5[%c0_86, %173, %c0_87], %176 {strides = array<i32>} : memref<1x16x32xf32, #tpu.memory_space<vmem>>, vector<1x1x8xf32>,
    %177 = vector.extract_strided_slice %106 {offsets = [14, 0], sizes = [1, 8], strides = [1, 1]} : vector<15x8xf32> to vector<1x8xf32>
    %c0_88 = arith.constant 0 : index
    %178 = arith.index_cast %44 : i32 to index
    %c0_89 = arith.constant 0 : index
    %179 = vector.load %arg5[%c0_88, %178, %c0_89] : memref<1x16x32xf32, #tpu.memory_space<vmem>>, vector<1x1x8xf32>
    %180 = vector.shape_cast %179 : vector<1x1x8xf32> to vector<1x8xf32>
    %181 = vector.shape_cast %177 : vector<1x8xf32> to vector<1x1x8xf32>
    tpu.vector_store %arg5[%c0_88, %178, %c0_89], %181 {strides = array<i32>} : memref<1x16x32xf32, #tpu.memory_space<vmem>>, vector<1x1x8xf32>,
    %c0_90 = arith.constant 0 : index
    %c0_91 = arith.constant 0 : index
    %c8_92 = arith.constant 8 : index
    %182 = vector.load %arg3[%c0_90, %c0_91, %c8_92] : memref<1x16x32xbf16, #tpu.memory_space<vmem>>, vector<1x16x8xbf16>
    %183 = vector.shape_cast %182 : vector<1x16x8xbf16> to vector<16x8xbf16>
    %184 = vector.extract_strided_slice %1 {offsets = [0, 8], sizes = [16, 8], strides = [1, 1]} : vector<16x32xbf16> to vector<16x8xbf16>
    %185 = arith.index_cast %arg0 : i32 to index
    %c1_93 = arith.constant 1 : index
    %c0_94 = arith.constant 0 : index
    %186 = memref.load %arg1[%185, %c1_93, %c0_94] : memref<2x4x15xi32, #tpu.memory_space<smem>>
    %187 = arith.index_cast %arg0 : i32 to index
    %c1_95 = arith.constant 1 : index
    %c1_96 = arith.constant 1 : index
    %188 = memref.load %arg1[%187, %c1_95, %c1_96] : memref<2x4x15xi32, #tpu.memory_space<smem>>
    %189 = arith.index_cast %arg0 : i32 to index
    %c1_97 = arith.constant 1 : index
    %c2_98 = arith.constant 2 : index
    %190 = memref.load %arg1[%189, %c1_97, %c2_98] : memref<2x4x15xi32, #tpu.memory_space<smem>>
    %191 = arith.index_cast %arg0 : i32 to index
    %c1_99 = arith.constant 1 : index
    %c3_100 = arith.constant 3 : index
    %192 = memref.load %arg1[%191, %c1_99, %c3_100] : memref<2x4x15xi32, #tpu.memory_space<smem>>
    %193 = arith.index_cast %arg0 : i32 to index
    %c1_101 = arith.constant 1 : index
    %c4_102 = arith.constant 4 : index
    %194 = memref.load %arg1[%193, %c1_101, %c4_102] : memref<2x4x15xi32, #tpu.memory_space<smem>>
    %195 = arith.index_cast %arg0 : i32 to index
    %c1_103 = arith.constant 1 : index
    %c5_104 = arith.constant 5 : index
    %196 = memref.load %arg1[%195, %c1_103, %c5_104] : memref<2x4x15xi32, #tpu.memory_space<smem>>
    %197 = arith.index_cast %arg0 : i32 to index
    %c1_105 = arith.constant 1 : index
    %c6_106 = arith.constant 6 : index
    %198 = memref.load %arg1[%197, %c1_105, %c6_106] : memref<2x4x15xi32, #tpu.memory_space<smem>>
    %199 = arith.index_cast %arg0 : i32 to index
    %c1_107 = arith.constant 1 : index
    %c7_108 = arith.constant 7 : index
    %200 = memref.load %arg1[%199, %c1_107, %c7_108] : memref<2x4x15xi32, #tpu.memory_space<smem>>
    %201 = arith.index_cast %arg0 : i32 to index
    %c1_109 = arith.constant 1 : index
    %c8_110 = arith.constant 8 : index
    %202 = memref.load %arg1[%201, %c1_109, %c8_110] : memref<2x4x15xi32, #tpu.memory_space<smem>>
    %203 = arith.index_cast %arg0 : i32 to index
    %c1_111 = arith.constant 1 : index
    %c9_112 = arith.constant 9 : index
    %204 = memref.load %arg1[%203, %c1_111, %c9_112] : memref<2x4x15xi32, #tpu.memory_space<smem>>
    %205 = arith.index_cast %arg0 : i32 to index
    %c1_113 = arith.constant 1 : index
    %c10_114 = arith.constant 10 : index
    %206 = memref.load %arg1[%205, %c1_113, %c10_114] : memref<2x4x15xi32, #tpu.memory_space<smem>>
    %207 = arith.index_cast %arg0 : i32 to index
    %c1_115 = arith.constant 1 : index
    %c11_116 = arith.constant 11 : index
    %208 = memref.load %arg1[%207, %c1_115, %c11_116] : memref<2x4x15xi32, #tpu.memory_space<smem>>
    %209 = arith.index_cast %arg0 : i32 to index
    %c1_117 = arith.constant 1 : index
    %c12_118 = arith.constant 12 : index
    %210 = memref.load %arg1[%209, %c1_117, %c12_118] : memref<2x4x15xi32, #tpu.memory_space<smem>>
    %211 = arith.index_cast %arg0 : i32 to index
    %c1_119 = arith.constant 1 : index
    %c13_120 = arith.constant 13 : index
    %212 = memref.load %arg1[%211, %c1_119, %c13_120] : memref<2x4x15xi32, #tpu.memory_space<smem>>
    %213 = arith.index_cast %arg0 : i32 to index
    %c1_121 = arith.constant 1 : index
    %c14_122 = arith.constant 14 : index
    %214 = memref.load %arg1[%213, %c1_121, %c14_122] : memref<2x4x15xi32, #tpu.memory_space<smem>>
    %c0_123 = arith.constant 0 : index
    %215 = arith.index_cast %186 : i32 to index
    %c8_124 = arith.constant 8 : index
    %216 = vector.load %arg2[%c0_123, %215, %c8_124] : memref<1x16x32xf32, #tpu.memory_space<vmem>>, vector<1x1x8xf32>
    %217 = vector.shape_cast %216 : vector<1x1x8xf32> to vector<1x8xf32>
    %c0_125 = arith.constant 0 : index
    %218 = arith.index_cast %188 : i32 to index
    %c8_126 = arith.constant 8 : index
    %219 = vector.load %arg2[%c0_125, %218, %c8_126] : memref<1x16x32xf32, #tpu.memory_space<vmem>>, vector<1x1x8xf32>
    %220 = vector.shape_cast %219 : vector<1x1x8xf32> to vector<1x8xf32>
    %c0_127 = arith.constant 0 : index
    %221 = arith.index_cast %190 : i32 to index
    %c8_128 = arith.constant 8 : index
    %222 = vector.load %arg2[%c0_127, %221, %c8_128] : memref<1x16x32xf32, #tpu.memory_space<vmem>>, vector<1x1x8xf32>
    %223 = vector.shape_cast %222 : vector<1x1x8xf32> to vector<1x8xf32>
    %c0_129 = arith.constant 0 : index
    %224 = arith.index_cast %192 : i32 to index
    %c8_130 = arith.constant 8 : index
    %225 = vector.load %arg2[%c0_129, %224, %c8_130] : memref<1x16x32xf32, #tpu.memory_space<vmem>>, vector<1x1x8xf32>
    %226 = vector.shape_cast %225 : vector<1x1x8xf32> to vector<1x8xf32>
    %c0_131 = arith.constant 0 : index
    %227 = arith.index_cast %194 : i32 to index
    %c8_132 = arith.constant 8 : index
    %228 = vector.load %arg2[%c0_131, %227, %c8_132] : memref<1x16x32xf32, #tpu.memory_space<vmem>>, vector<1x1x8xf32>
    %229 = vector.shape_cast %228 : vector<1x1x8xf32> to vector<1x8xf32>
    %c0_133 = arith.constant 0 : index
    %230 = arith.index_cast %196 : i32 to index
    %c8_134 = arith.constant 8 : index
    %231 = vector.load %arg2[%c0_133, %230, %c8_134] : memref<1x16x32xf32, #tpu.memory_space<vmem>>, vector<1x1x8xf32>
    %232 = vector.shape_cast %231 : vector<1x1x8xf32> to vector<1x8xf32>
    %c0_135 = arith.constant 0 : index
    %233 = arith.index_cast %198 : i32 to index
    %c8_136 = arith.constant 8 : index
    %234 = vector.load %arg2[%c0_135, %233, %c8_136] : memref<1x16x32xf32, #tpu.memory_space<vmem>>, vector<1x1x8xf32>
    %235 = vector.shape_cast %234 : vector<1x1x8xf32> to vector<1x8xf32>
    %c0_137 = arith.constant 0 : index
    %236 = arith.index_cast %200 : i32 to index
    %c8_138 = arith.constant 8 : index
    %237 = vector.load %arg2[%c0_137, %236, %c8_138] : memref<1x16x32xf32, #tpu.memory_space<vmem>>, vector<1x1x8xf32>
    %238 = vector.shape_cast %237 : vector<1x1x8xf32> to vector<1x8xf32>
    %c0_139 = arith.constant 0 : index
    %239 = arith.index_cast %202 : i32 to index
    %c8_140 = arith.constant 8 : index
    %240 = vector.load %arg2[%c0_139, %239, %c8_140] : memref<1x16x32xf32, #tpu.memory_space<vmem>>, vector<1x1x8xf32>
    %241 = vector.shape_cast %240 : vector<1x1x8xf32> to vector<1x8xf32>
    %c0_141 = arith.constant 0 : index
    %242 = arith.index_cast %204 : i32 to index
    %c8_142 = arith.constant 8 : index
    %243 = vector.load %arg2[%c0_141, %242, %c8_142] : memref<1x16x32xf32, #tpu.memory_space<vmem>>, vector<1x1x8xf32>
    %244 = vector.shape_cast %243 : vector<1x1x8xf32> to vector<1x8xf32>
    %c0_143 = arith.constant 0 : index
    %245 = arith.index_cast %206 : i32 to index
    %c8_144 = arith.constant 8 : index
    %246 = vector.load %arg2[%c0_143, %245, %c8_144] : memref<1x16x32xf32, #tpu.memory_space<vmem>>, vector<1x1x8xf32>
    %247 = vector.shape_cast %246 : vector<1x1x8xf32> to vector<1x8xf32>
    %c0_145 = arith.constant 0 : index
    %248 = arith.index_cast %208 : i32 to index
    %c8_146 = arith.constant 8 : index
    %249 = vector.load %arg2[%c0_145, %248, %c8_146] : memref<1x16x32xf32, #tpu.memory_space<vmem>>, vector<1x1x8xf32>
    %250 = vector.shape_cast %249 : vector<1x1x8xf32> to vector<1x8xf32>
    %c0_147 = arith.constant 0 : index
    %251 = arith.index_cast %210 : i32 to index
    %c8_148 = arith.constant 8 : index
    %252 = vector.load %arg2[%c0_147, %251, %c8_148] : memref<1x16x32xf32, #tpu.memory_space<vmem>>, vector<1x1x8xf32>
    %253 = vector.shape_cast %252 : vector<1x1x8xf32> to vector<1x8xf32>
    %c0_149 = arith.constant 0 : index
    %254 = arith.index_cast %212 : i32 to index
    %c8_150 = arith.constant 8 : index
    %255 = vector.load %arg2[%c0_149, %254, %c8_150] : memref<1x16x32xf32, #tpu.memory_space<vmem>>, vector<1x1x8xf32>
    %256 = vector.shape_cast %255 : vector<1x1x8xf32> to vector<1x8xf32>
    %c0_151 = arith.constant 0 : index
    %257 = arith.index_cast %214 : i32 to index
    %c8_152 = arith.constant 8 : index
    %258 = vector.load %arg2[%c0_151, %257, %c8_152] : memref<1x16x32xf32, #tpu.memory_space<vmem>>, vector<1x1x8xf32>
    %259 = vector.shape_cast %258 : vector<1x1x8xf32> to vector<1x8xf32>
    %260 = tpu.concatenate %217, %220, %223, %226, %229, %232, %235, %238, %241, %244, %247, %250, %253, %256, %259 in 0 : vector<1x8xf32>, vector<1x8xf32>, vector<1x8xf32>, vector<1x8xf32>, vector<1x8xf32>, vector<1x8xf32>, vector<1x8xf32>, vector<1x8xf32>, vector<1x8xf32>, vector<1x8xf32>, vector<1x8xf32>, vector<1x8xf32>, vector<1x8xf32>, vector<1x8xf32>, vector<1x8xf32> -> vector<15x8xf32>
    %261 = arith.truncf %260 : vector<15x8xf32> to vector<15x8xbf16>
    %cst_153 = arith.constant dense<0.000000e+00> : vector<15x16xf32>
    %262 = tpu.matmul %261, %183, %cst_153 {dimension_numbers = #tpu.dot_dimension_numbers<[1], [1], [0], [0], [0, 0, 1, 0], [], []>} : vector<15x8xbf16>, vector<16x8xbf16>, vector<15x16xf32> -> vector<15x16xf32>
    %cst_154 = arith.constant 0.353553385 : f32
    %263 = vector.broadcast %cst_154 : f32 to vector<15x16xf32>
    %264 = arith.mulf %262, %263 : vector<15x16xf32>
    %cst_155 = arith.constant dense<0xFF800000> : vector<15xf32>
    %265 = vector.multi_reduction <maximumf>, %264, %cst_155 [1] : vector<15x16xf32> to vector<15xf32>
    %266 = vector.shape_cast %265 : vector<15xf32> to vector<15x1xf32>
    %267 = vector.broadcast %266 : vector<15x1xf32> to vector<15x16xf32>
    %268 = arith.subf %264, %267 : vector<15x16xf32>
    %269 = math.exp %268 : vector<15x16xf32>
    %cst_156 = arith.constant dense<0.000000e+00> : vector<15xf32>
    %270 = vector.multi_reduction <add>, %269, %cst_156 [1] : vector<15x16xf32> to vector<15xf32>
    %271 = vector.shape_cast %270 : vector<15xf32> to vector<15x1xf32>
    %272 = arith.truncf %269 : vector<15x16xf32> to vector<15x16xbf16>
    %cst_157 = arith.constant dense<0.000000e+00> : vector<15x8xf32>
    %273 = tpu.matmul %272, %184, %cst_157 {dimension_numbers = #tpu.dot_dimension_numbers<[1], [0], [0], [1], [0, 0, 1, 1], [], []>} : vector<15x16xbf16>, vector<16x8xbf16>, vector<15x8xf32> -> vector<15x8xf32>
    %274 = tpu.reciprocal %271 {approx = true} : vector<15x1xf32> -> vector<15x1xf32>
    %275 = vector.broadcast %274 : vector<15x1xf32> to vector<15x8xf32>
    %276 = arith.mulf %273, %275 : vector<15x8xf32>
    %277 = vector.extract_strided_slice %276 {offsets = [0, 0], sizes = [1, 8], strides = [1, 1]} : vector<15x8xf32> to vector<1x8xf32>
    %c0_158 = arith.constant 0 : index
    %278 = arith.index_cast %186 : i32 to index
    %c8_159 = arith.constant 8 : index
    %279 = vector.load %arg5[%c0_158, %278, %c8_159] : memref<1x16x32xf32, #tpu.memory_space<vmem>>, vector<1x1x8xf32>
    %280 = vector.shape_cast %279 : vector<1x1x8xf32> to vector<1x8xf32>
    %281 = vector.shape_cast %277 : vector<1x8xf32> to vector<1x1x8xf32>
    tpu.vector_store %arg5[%c0_158, %278, %c8_159], %281 {strides = array<i32>} : memref<1x16x32xf32, #tpu.memory_space<vmem>>, vector<1x1x8xf32>,
    %282 = vector.extract_strided_slice %276 {offsets = [1, 0], sizes = [1, 8], strides = [1, 1]} : vector<15x8xf32> to vector<1x8xf32>
    %c0_160 = arith.constant 0 : index
    %283 = arith.index_cast %188 : i32 to index
    %c8_161 = arith.constant 8 : index
    %284 = vector.load %arg5[%c0_160, %283, %c8_161] : memref<1x16x32xf32, #tpu.memory_space<vmem>>, vector<1x1x8xf32>
    %285 = vector.shape_cast %284 : vector<1x1x8xf32> to vector<1x8xf32>
    %286 = vector.shape_cast %282 : vector<1x8xf32> to vector<1x1x8xf32>
    tpu.vector_store %arg5[%c0_160, %283, %c8_161], %286 {strides = array<i32>} : memref<1x16x32xf32, #tpu.memory_space<vmem>>, vector<1x1x8xf32>,
    %287 = vector.extract_strided_slice %276 {offsets = [2, 0], sizes = [1, 8], strides = [1, 1]} : vector<15x8xf32> to vector<1x8xf32>
    %c0_162 = arith.constant 0 : index
    %288 = arith.index_cast %190 : i32 to index
    %c8_163 = arith.constant 8 : index
    %289 = vector.load %arg5[%c0_162, %288, %c8_163] : memref<1x16x32xf32, #tpu.memory_space<vmem>>, vector<1x1x8xf32>
    %290 = vector.shape_cast %289 : vector<1x1x8xf32> to vector<1x8xf32>
    %291 = vector.shape_cast %287 : vector<1x8xf32> to vector<1x1x8xf32>
    tpu.vector_store %arg5[%c0_162, %288, %c8_163], %291 {strides = array<i32>} : memref<1x16x32xf32, #tpu.memory_space<vmem>>, vector<1x1x8xf32>,
    %292 = vector.extract_strided_slice %276 {offsets = [3, 0], sizes = [1, 8], strides = [1, 1]} : vector<15x8xf32> to vector<1x8xf32>
    %c0_164 = arith.constant 0 : index
    %293 = arith.index_cast %192 : i32 to index
    %c8_165 = arith.constant 8 : index
    %294 = vector.load %arg5[%c0_164, %293, %c8_165] : memref<1x16x32xf32, #tpu.memory_space<vmem>>, vector<1x1x8xf32>
    %295 = vector.shape_cast %294 : vector<1x1x8xf32> to vector<1x8xf32>
    %296 = vector.shape_cast %292 : vector<1x8xf32> to vector<1x1x8xf32>
    tpu.vector_store %arg5[%c0_164, %293, %c8_165], %296 {strides = array<i32>} : memref<1x16x32xf32, #tpu.memory_space<vmem>>, vector<1x1x8xf32>,
    %297 = vector.extract_strided_slice %276 {offsets = [4, 0], sizes = [1, 8], strides = [1, 1]} : vector<15x8xf32> to vector<1x8xf32>
    %c0_166 = arith.constant 0 : index
    %298 = arith.index_cast %194 : i32 to index
    %c8_167 = arith.constant 8 : index
    %299 = vector.load %arg5[%c0_166, %298, %c8_167] : memref<1x16x32xf32, #tpu.memory_space<vmem>>, vector<1x1x8xf32>
    %300 = vector.shape_cast %299 : vector<1x1x8xf32> to vector<1x8xf32>
    %301 = vector.shape_cast %297 : vector<1x8xf32> to vector<1x1x8xf32>
    tpu.vector_store %arg5[%c0_166, %298, %c8_167], %301 {strides = array<i32>} : memref<1x16x32xf32, #tpu.memory_space<vmem>>, vector<1x1x8xf32>,
    %302 = vector.extract_strided_slice %276 {offsets = [5, 0], sizes = [1, 8], strides = [1, 1]} : vector<15x8xf32> to vector<1x8xf32>
    %c0_168 = arith.constant 0 : index
    %303 = arith.index_cast %196 : i32 to index
    %c8_169 = arith.constant 8 : index
    %304 = vector.load %arg5[%c0_168, %303, %c8_169] : memref<1x16x32xf32, #tpu.memory_space<vmem>>, vector<1x1x8xf32>
    %305 = vector.shape_cast %304 : vector<1x1x8xf32> to vector<1x8xf32>
    %306 = vector.shape_cast %302 : vector<1x8xf32> to vector<1x1x8xf32>
    tpu.vector_store %arg5[%c0_168, %303, %c8_169], %306 {strides = array<i32>} : memref<1x16x32xf32, #tpu.memory_space<vmem>>, vector<1x1x8xf32>,
    %307 = vector.extract_strided_slice %276 {offsets = [6, 0], sizes = [1, 8], strides = [1, 1]} : vector<15x8xf32> to vector<1x8xf32>
    %c0_170 = arith.constant 0 : index
    %308 = arith.index_cast %198 : i32 to index
    %c8_171 = arith.constant 8 : index
    %309 = vector.load %arg5[%c0_170, %308, %c8_171] : memref<1x16x32xf32, #tpu.memory_space<vmem>>, vector<1x1x8xf32>
    %310 = vector.shape_cast %309 : vector<1x1x8xf32> to vector<1x8xf32>
    %311 = vector.shape_cast %307 : vector<1x8xf32> to vector<1x1x8xf32>
    tpu.vector_store %arg5[%c0_170, %308, %c8_171], %311 {strides = array<i32>} : memref<1x16x32xf32, #tpu.memory_space<vmem>>, vector<1x1x8xf32>,
    %312 = vector.extract_strided_slice %276 {offsets = [7, 0], sizes = [1, 8], strides = [1, 1]} : vector<15x8xf32> to vector<1x8xf32>
    %c0_172 = arith.constant 0 : index
    %313 = arith.index_cast %200 : i32 to index
    %c8_173 = arith.constant 8 : index
    %314 = vector.load %arg5[%c0_172, %313, %c8_173] : memref<1x16x32xf32, #tpu.memory_space<vmem>>, vector<1x1x8xf32>
    %315 = vector.shape_cast %314 : vector<1x1x8xf32> to vector<1x8xf32>
    %316 = vector.shape_cast %312 : vector<1x8xf32> to vector<1x1x8xf32>
    tpu.vector_store %arg5[%c0_172, %313, %c8_173], %316 {strides = array<i32>} : memref<1x16x32xf32, #tpu.memory_space<vmem>>, vector<1x1x8xf32>,
    %317 = vector.extract_strided_slice %276 {offsets = [8, 0], sizes = [1, 8], strides = [1, 1]} : vector<15x8xf32> to vector<1x8xf32>
    %c0_174 = arith.constant 0 : index
    %318 = arith.index_cast %202 : i32 to index
    %c8_175 = arith.constant 8 : index
    %319 = vector.load %arg5[%c0_174, %318, %c8_175] : memref<1x16x32xf32, #tpu.memory_space<vmem>>, vector<1x1x8xf32>
    %320 = vector.shape_cast %319 : vector<1x1x8xf32> to vector<1x8xf32>
    %321 = vector.shape_cast %317 : vector<1x8xf32> to vector<1x1x8xf32>
    tpu.vector_store %arg5[%c0_174, %318, %c8_175], %321 {strides = array<i32>} : memref<1x16x32xf32, #tpu.memory_space<vmem>>, vector<1x1x8xf32>,
    %322 = vector.extract_strided_slice %276 {offsets = [9, 0], sizes = [1, 8], strides = [1, 1]} : vector<15x8xf32> to vector<1x8xf32>
    %c0_176 = arith.constant 0 : index
    %323 = arith.index_cast %204 : i32 to index
    %c8_177 = arith.constant 8 : index
    %324 = vector.load %arg5[%c0_176, %323, %c8_177] : memref<1x16x32xf32, #tpu.memory_space<vmem>>, vector<1x1x8xf32>
    %325 = vector.shape_cast %324 : vector<1x1x8xf32> to vector<1x8xf32>
    %326 = vector.shape_cast %322 : vector<1x8xf32> to vector<1x1x8xf32>
    tpu.vector_store %arg5[%c0_176, %323, %c8_177], %326 {strides = array<i32>} : memref<1x16x32xf32, #tpu.memory_space<vmem>>, vector<1x1x8xf32>,
    %327 = vector.extract_strided_slice %276 {offsets = [10, 0], sizes = [1, 8], strides = [1, 1]} : vector<15x8xf32> to vector<1x8xf32>
    %c0_178 = arith.constant 0 : index
    %328 = arith.index_cast %206 : i32 to index
    %c8_179 = arith.constant 8 : index
    %329 = vector.load %arg5[%c0_178, %328, %c8_179] : memref<1x16x32xf32, #tpu.memory_space<vmem>>, vector<1x1x8xf32>
    %330 = vector.shape_cast %329 : vector<1x1x8xf32> to vector<1x8xf32>
    %331 = vector.shape_cast %327 : vector<1x8xf32> to vector<1x1x8xf32>
    tpu.vector_store %arg5[%c0_178, %328, %c8_179], %331 {strides = array<i32>} : memref<1x16x32xf32, #tpu.memory_space<vmem>>, vector<1x1x8xf32>,
    %332 = vector.extract_strided_slice %276 {offsets = [11, 0], sizes = [1, 8], strides = [1, 1]} : vector<15x8xf32> to vector<1x8xf32>
    %c0_180 = arith.constant 0 : index
    %333 = arith.index_cast %208 : i32 to index
    %c8_181 = arith.constant 8 : index
    %334 = vector.load %arg5[%c0_180, %333, %c8_181] : memref<1x16x32xf32, #tpu.memory_space<vmem>>, vector<1x1x8xf32>
    %335 = vector.shape_cast %334 : vector<1x1x8xf32> to vector<1x8xf32>
    %336 = vector.shape_cast %332 : vector<1x8xf32> to vector<1x1x8xf32>
    tpu.vector_store %arg5[%c0_180, %333, %c8_181], %336 {strides = array<i32>} : memref<1x16x32xf32, #tpu.memory_space<vmem>>, vector<1x1x8xf32>,
    %337 = vector.extract_strided_slice %276 {offsets = [12, 0], sizes = [1, 8], strides = [1, 1]} : vector<15x8xf32> to vector<1x8xf32>
    %c0_182 = arith.constant 0 : index
    %338 = arith.index_cast %210 : i32 to index
    %c8_183 = arith.constant 8 : index
    %339 = vector.load %arg5[%c0_182, %338, %c8_183] : memref<1x16x32xf32, #tpu.memory_space<vmem>>, vector<1x1x8xf32>
    %340 = vector.shape_cast %339 : vector<1x1x8xf32> to vector<1x8xf32>
    %341 = vector.shape_cast %337 : vector<1x8xf32> to vector<1x1x8xf32>
    tpu.vector_store %arg5[%c0_182, %338, %c8_183], %341 {strides = array<i32>} : memref<1x16x32xf32, #tpu.memory_space<vmem>>, vector<1x1x8xf32>,
    %342 = vector.extract_strided_slice %276 {offsets = [13, 0], sizes = [1, 8], strides = [1, 1]} : vector<15x8xf32> to vector<1x8xf32>
    %c0_184 = arith.constant 0 : index
    %343 = arith.index_cast %212 : i32 to index
    %c8_185 = arith.constant 8 : index
    %344 = vector.load %arg5[%c0_184, %343, %c8_185] : memref<1x16x32xf32, #tpu.memory_space<vmem>>, vector<1x1x8xf32>
    %345 = vector.shape_cast %344 : vector<1x1x8xf32> to vector<1x8xf32>
    %346 = vector.shape_cast %342 : vector<1x8xf32> to vector<1x1x8xf32>
    tpu.vector_store %arg5[%c0_184, %343, %c8_185], %346 {strides = array<i32>} : memref<1x16x32xf32, #tpu.memory_space<vmem>>, vector<1x1x8xf32>,
    %347 = vector.extract_strided_slice %276 {offsets = [14, 0], sizes = [1, 8], strides = [1, 1]} : vector<15x8xf32> to vector<1x8xf32>
    %c0_186 = arith.constant 0 : index
    %348 = arith.index_cast %214 : i32 to index
    %c8_187 = arith.constant 8 : index
    %349 = vector.load %arg5[%c0_186, %348, %c8_187] : memref<1x16x32xf32, #tpu.memory_space<vmem>>, vector<1x1x8xf32>
    %350 = vector.shape_cast %349 : vector<1x1x8xf32> to vector<1x8xf32>
    %351 = vector.shape_cast %347 : vector<1x8xf32> to vector<1x1x8xf32>
    tpu.vector_store %arg5[%c0_186, %348, %c8_187], %351 {strides = array<i32>} : memref<1x16x32xf32, #tpu.memory_space<vmem>>, vector<1x1x8xf32>,
    %c0_188 = arith.constant 0 : index
    %c0_189 = arith.constant 0 : index
    %c16 = arith.constant 16 : index
    %352 = vector.load %arg3[%c0_188, %c0_189, %c16] : memref<1x16x32xbf16, #tpu.memory_space<vmem>>, vector<1x16x8xbf16>
    %353 = vector.shape_cast %352 : vector<1x16x8xbf16> to vector<16x8xbf16>
    %354 = vector.extract_strided_slice %1 {offsets = [0, 16], sizes = [16, 8], strides = [1, 1]} : vector<16x32xbf16> to vector<16x8xbf16>
    %355 = arith.index_cast %arg0 : i32 to index
    %c2_190 = arith.constant 2 : index
    %c0_191 = arith.constant 0 : index
    %356 = memref.load %arg1[%355, %c2_190, %c0_191] : memref<2x4x15xi32, #tpu.memory_space<smem>>
    %357 = arith.index_cast %arg0 : i32 to index
    %c2_192 = arith.constant 2 : index
    %c1_193 = arith.constant 1 : index
    %358 = memref.load %arg1[%357, %c2_192, %c1_193] : memref<2x4x15xi32, #tpu.memory_space<smem>>
    %359 = arith.index_cast %arg0 : i32 to index
    %c2_194 = arith.constant 2 : index
    %c2_195 = arith.constant 2 : index
    %360 = memref.load %arg1[%359, %c2_194, %c2_195] : memref<2x4x15xi32, #tpu.memory_space<smem>>
    %361 = arith.index_cast %arg0 : i32 to index
    %c2_196 = arith.constant 2 : index
    %c3_197 = arith.constant 3 : index
    %362 = memref.load %arg1[%361, %c2_196, %c3_197] : memref<2x4x15xi32, #tpu.memory_space<smem>>
    %363 = arith.index_cast %arg0 : i32 to index
    %c2_198 = arith.constant 2 : index
    %c4_199 = arith.constant 4 : index
    %364 = memref.load %arg1[%363, %c2_198, %c4_199] : memref<2x4x15xi32, #tpu.memory_space<smem>>
    %365 = arith.index_cast %arg0 : i32 to index
    %c2_200 = arith.constant 2 : index
    %c5_201 = arith.constant 5 : index
    %366 = memref.load %arg1[%365, %c2_200, %c5_201] : memref<2x4x15xi32, #tpu.memory_space<smem>>
    %367 = arith.index_cast %arg0 : i32 to index
    %c2_202 = arith.constant 2 : index
    %c6_203 = arith.constant 6 : index
    %368 = memref.load %arg1[%367, %c2_202, %c6_203] : memref<2x4x15xi32, #tpu.memory_space<smem>>
    %369 = arith.index_cast %arg0 : i32 to index
    %c2_204 = arith.constant 2 : index
    %c7_205 = arith.constant 7 : index
    %370 = memref.load %arg1[%369, %c2_204, %c7_205] : memref<2x4x15xi32, #tpu.memory_space<smem>>
    %371 = arith.index_cast %arg0 : i32 to index
    %c2_206 = arith.constant 2 : index
    %c8_207 = arith.constant 8 : index
    %372 = memref.load %arg1[%371, %c2_206, %c8_207] : memref<2x4x15xi32, #tpu.memory_space<smem>>
    %373 = arith.index_cast %arg0 : i32 to index
    %c2_208 = arith.constant 2 : index
    %c9_209 = arith.constant 9 : index
    %374 = memref.load %arg1[%373, %c2_208, %c9_209] : memref<2x4x15xi32, #tpu.memory_space<smem>>
    %375 = arith.index_cast %arg0 : i32 to index
    %c2_210 = arith.constant 2 : index
    %c10_211 = arith.constant 10 : index
    %376 = memref.load %arg1[%375, %c2_210, %c10_211] : memref<2x4x15xi32, #tpu.memory_space<smem>>
    %377 = arith.index_cast %arg0 : i32 to index
    %c2_212 = arith.constant 2 : index
    %c11_213 = arith.constant 11 : index
    %378 = memref.load %arg1[%377, %c2_212, %c11_213] : memref<2x4x15xi32, #tpu.memory_space<smem>>
    %379 = arith.index_cast %arg0 : i32 to index
    %c2_214 = arith.constant 2 : index
    %c12_215 = arith.constant 12 : index
    %380 = memref.load %arg1[%379, %c2_214, %c12_215] : memref<2x4x15xi32, #tpu.memory_space<smem>>
    %381 = arith.index_cast %arg0 : i32 to index
    %c2_216 = arith.constant 2 : index
    %c13_217 = arith.constant 13 : index
    %382 = memref.load %arg1[%381, %c2_216, %c13_217] : memref<2x4x15xi32, #tpu.memory_space<smem>>
    %383 = arith.index_cast %arg0 : i32 to index
    %c2_218 = arith.constant 2 : index
    %c14_219 = arith.constant 14 : index
    %384 = memref.load %arg1[%383, %c2_218, %c14_219] : memref<2x4x15xi32, #tpu.memory_space<smem>>
    %c0_220 = arith.constant 0 : index
    %385 = arith.index_cast %356 : i32 to index
    %c16_221 = arith.constant 16 : index
    %386 = vector.load %arg2[%c0_220, %385, %c16_221] : memref<1x16x32xf32, #tpu.memory_space<vmem>>, vector<1x1x8xf32>
    %387 = vector.shape_cast %386 : vector<1x1x8xf32> to vector<1x8xf32>
    %c0_222 = arith.constant 0 : index
    %388 = arith.index_cast %358 : i32 to index
    %c16_223 = arith.constant 16 : index
    %389 = vector.load %arg2[%c0_222, %388, %c16_223] : memref<1x16x32xf32, #tpu.memory_space<vmem>>, vector<1x1x8xf32>
    %390 = vector.shape_cast %389 : vector<1x1x8xf32> to vector<1x8xf32>
    %c0_224 = arith.constant 0 : index
    %391 = arith.index_cast %360 : i32 to index
    %c16_225 = arith.constant 16 : index
    %392 = vector.load %arg2[%c0_224, %391, %c16_225] : memref<1x16x32xf32, #tpu.memory_space<vmem>>, vector<1x1x8xf32>
    %393 = vector.shape_cast %392 : vector<1x1x8xf32> to vector<1x8xf32>
    %c0_226 = arith.constant 0 : index
    %394 = arith.index_cast %362 : i32 to index
    %c16_227 = arith.constant 16 : index
    %395 = vector.load %arg2[%c0_226, %394, %c16_227] : memref<1x16x32xf32, #tpu.memory_space<vmem>>, vector<1x1x8xf32>
    %396 = vector.shape_cast %395 : vector<1x1x8xf32> to vector<1x8xf32>
    %c0_228 = arith.constant 0 : index
    %397 = arith.index_cast %364 : i32 to index
    %c16_229 = arith.constant 16 : index
    %398 = vector.load %arg2[%c0_228, %397, %c16_229] : memref<1x16x32xf32, #tpu.memory_space<vmem>>, vector<1x1x8xf32>
    %399 = vector.shape_cast %398 : vector<1x1x8xf32> to vector<1x8xf32>
    %c0_230 = arith.constant 0 : index
    %400 = arith.index_cast %366 : i32 to index
    %c16_231 = arith.constant 16 : index
    %401 = vector.load %arg2[%c0_230, %400, %c16_231] : memref<1x16x32xf32, #tpu.memory_space<vmem>>, vector<1x1x8xf32>
    %402 = vector.shape_cast %401 : vector<1x1x8xf32> to vector<1x8xf32>
    %c0_232 = arith.constant 0 : index
    %403 = arith.index_cast %368 : i32 to index
    %c16_233 = arith.constant 16 : index
    %404 = vector.load %arg2[%c0_232, %403, %c16_233] : memref<1x16x32xf32, #tpu.memory_space<vmem>>, vector<1x1x8xf32>
    %405 = vector.shape_cast %404 : vector<1x1x8xf32> to vector<1x8xf32>
    %c0_234 = arith.constant 0 : index
    %406 = arith.index_cast %370 : i32 to index
    %c16_235 = arith.constant 16 : index
    %407 = vector.load %arg2[%c0_234, %406, %c16_235] : memref<1x16x32xf32, #tpu.memory_space<vmem>>, vector<1x1x8xf32>
    %408 = vector.shape_cast %407 : vector<1x1x8xf32> to vector<1x8xf32>
    %c0_236 = arith.constant 0 : index
    %409 = arith.index_cast %372 : i32 to index
    %c16_237 = arith.constant 16 : index
    %410 = vector.load %arg2[%c0_236, %409, %c16_237] : memref<1x16x32xf32, #tpu.memory_space<vmem>>, vector<1x1x8xf32>
    %411 = vector.shape_cast %410 : vector<1x1x8xf32> to vector<1x8xf32>
    %c0_238 = arith.constant 0 : index
    %412 = arith.index_cast %374 : i32 to index
    %c16_239 = arith.constant 16 : index
    %413 = vector.load %arg2[%c0_238, %412, %c16_239] : memref<1x16x32xf32, #tpu.memory_space<vmem>>, vector<1x1x8xf32>
    %414 = vector.shape_cast %413 : vector<1x1x8xf32> to vector<1x8xf32>
    %c0_240 = arith.constant 0 : index
    %415 = arith.index_cast %376 : i32 to index
    %c16_241 = arith.constant 16 : index
    %416 = vector.load %arg2[%c0_240, %415, %c16_241] : memref<1x16x32xf32, #tpu.memory_space<vmem>>, vector<1x1x8xf32>
    %417 = vector.shape_cast %416 : vector<1x1x8xf32> to vector<1x8xf32>
    %c0_242 = arith.constant 0 : index
    %418 = arith.index_cast %378 : i32 to index
    %c16_243 = arith.constant 16 : index
    %419 = vector.load %arg2[%c0_242, %418, %c16_243] : memref<1x16x32xf32, #tpu.memory_space<vmem>>, vector<1x1x8xf32>
    %420 = vector.shape_cast %419 : vector<1x1x8xf32> to vector<1x8xf32>
    %c0_244 = arith.constant 0 : index
    %421 = arith.index_cast %380 : i32 to index
    %c16_245 = arith.constant 16 : index
    %422 = vector.load %arg2[%c0_244, %421, %c16_245] : memref<1x16x32xf32, #tpu.memory_space<vmem>>, vector<1x1x8xf32>
    %423 = vector.shape_cast %422 : vector<1x1x8xf32> to vector<1x8xf32>
    %c0_246 = arith.constant 0 : index
    %424 = arith.index_cast %382 : i32 to index
    %c16_247 = arith.constant 16 : index
    %425 = vector.load %arg2[%c0_246, %424, %c16_247] : memref<1x16x32xf32, #tpu.memory_space<vmem>>, vector<1x1x8xf32>
    %426 = vector.shape_cast %425 : vector<1x1x8xf32> to vector<1x8xf32>
    %c0_248 = arith.constant 0 : index
    %427 = arith.index_cast %384 : i32 to index
    %c16_249 = arith.constant 16 : index
    %428 = vector.load %arg2[%c0_248, %427, %c16_249] : memref<1x16x32xf32, #tpu.memory_space<vmem>>, vector<1x1x8xf32>
    %429 = vector.shape_cast %428 : vector<1x1x8xf32> to vector<1x8xf32>
    %430 = tpu.concatenate %387, %390, %393, %396, %399, %402, %405, %408, %411, %414, %417, %420, %423, %426, %429 in 0 : vector<1x8xf32>, vector<1x8xf32>, vector<1x8xf32>, vector<1x8xf32>, vector<1x8xf32>, vector<1x8xf32>, vector<1x8xf32>, vector<1x8xf32>, vector<1x8xf32>, vector<1x8xf32>, vector<1x8xf32>, vector<1x8xf32>, vector<1x8xf32>, vector<1x8xf32>, vector<1x8xf32> -> vector<15x8xf32>
    %431 = arith.truncf %430 : vector<15x8xf32> to vector<15x8xbf16>
    %cst_250 = arith.constant dense<0.000000e+00> : vector<15x16xf32>
    %432 = tpu.matmul %431, %353, %cst_250 {dimension_numbers = #tpu.dot_dimension_numbers<[1], [1], [0], [0], [0, 0, 1, 0], [], []>} : vector<15x8xbf16>, vector<16x8xbf16>, vector<15x16xf32> -> vector<15x16xf32>
    %cst_251 = arith.constant 0.353553385 : f32
    %433 = vector.broadcast %cst_251 : f32 to vector<15x16xf32>
    %434 = arith.mulf %432, %433 : vector<15x16xf32>
    %cst_252 = arith.constant dense<0xFF800000> : vector<15xf32>
    %435 = vector.multi_reduction <maximumf>, %434, %cst_252 [1] : vector<15x16xf32> to vector<15xf32>
    %436 = vector.shape_cast %435 : vector<15xf32> to vector<15x1xf32>
    %437 = vector.broadcast %436 : vector<15x1xf32> to vector<15x16xf32>
    %438 = arith.subf %434, %437 : vector<15x16xf32>
    %439 = math.exp %438 : vector<15x16xf32>
    %cst_253 = arith.constant dense<0.000000e+00> : vector<15xf32>
    %440 = vector.multi_reduction <add>, %439, %cst_253 [1] : vector<15x16xf32> to vector<15xf32>
    %441 = vector.shape_cast %440 : vector<15xf32> to vector<15x1xf32>
    %442 = arith.truncf %439 : vector<15x16xf32> to vector<15x16xbf16>
    %cst_254 = arith.constant dense<0.000000e+00> : vector<15x8xf32>
    %443 = tpu.matmul %442, %354, %cst_254 {dimension_numbers = #tpu.dot_dimension_numbers<[1], [0], [0], [1], [0, 0, 1, 1], [], []>} : vector<15x16xbf16>, vector<16x8xbf16>, vector<15x8xf32> -> vector<15x8xf32>
    %444 = tpu.reciprocal %441 {approx = true} : vector<15x1xf32> -> vector<15x1xf32>
    %445 = vector.broadcast %444 : vector<15x1xf32> to vector<15x8xf32>
    %446 = arith.mulf %443, %445 : vector<15x8xf32>
    %447 = vector.extract_strided_slice %446 {offsets = [0, 0], sizes = [1, 8], strides = [1, 1]} : vector<15x8xf32> to vector<1x8xf32>
    %c0_255 = arith.constant 0 : index
    %448 = arith.index_cast %356 : i32 to index
    %c16_256 = arith.constant 16 : index
    %449 = vector.load %arg5[%c0_255, %448, %c16_256] : memref<1x16x32xf32, #tpu.memory_space<vmem>>, vector<1x1x8xf32>
    %450 = vector.shape_cast %449 : vector<1x1x8xf32> to vector<1x8xf32>
    %451 = vector.shape_cast %447 : vector<1x8xf32> to vector<1x1x8xf32>
    tpu.vector_store %arg5[%c0_255, %448, %c16_256], %451 {strides = array<i32>} : memref<1x16x32xf32, #tpu.memory_space<vmem>>, vector<1x1x8xf32>,
    %452 = vector.extract_strided_slice %446 {offsets = [1, 0], sizes = [1, 8], strides = [1, 1]} : vector<15x8xf32> to vector<1x8xf32>
    %c0_257 = arith.constant 0 : index
    %453 = arith.index_cast %358 : i32 to index
    %c16_258 = arith.constant 16 : index
    %454 = vector.load %arg5[%c0_257, %453, %c16_258] : memref<1x16x32xf32, #tpu.memory_space<vmem>>, vector<1x1x8xf32>
    %455 = vector.shape_cast %454 : vector<1x1x8xf32> to vector<1x8xf32>
    %456 = vector.shape_cast %452 : vector<1x8xf32> to vector<1x1x8xf32>
    tpu.vector_store %arg5[%c0_257, %453, %c16_258], %456 {strides = array<i32>} : memref<1x16x32xf32, #tpu.memory_space<vmem>>, vector<1x1x8xf32>,
    %457 = vector.extract_strided_slice %446 {offsets = [2, 0], sizes = [1, 8], strides = [1, 1]} : vector<15x8xf32> to vector<1x8xf32>
    %c0_259 = arith.constant 0 : index
    %458 = arith.index_cast %360 : i32 to index
    %c16_260 = arith.constant 16 : index
    %459 = vector.load %arg5[%c0_259, %458, %c16_260] : memref<1x16x32xf32, #tpu.memory_space<vmem>>, vector<1x1x8xf32>
    %460 = vector.shape_cast %459 : vector<1x1x8xf32> to vector<1x8xf32>
    %461 = vector.shape_cast %457 : vector<1x8xf32> to vector<1x1x8xf32>
    tpu.vector_store %arg5[%c0_259, %458, %c16_260], %461 {strides = array<i32>} : memref<1x16x32xf32, #tpu.memory_space<vmem>>, vector<1x1x8xf32>,
    %462 = vector.extract_strided_slice %446 {offsets = [3, 0], sizes = [1, 8], strides = [1, 1]} : vector<15x8xf32> to vector<1x8xf32>
    %c0_261 = arith.constant 0 : index
    %463 = arith.index_cast %362 : i32 to index
    %c16_262 = arith.constant 16 : index
    %464 = vector.load %arg5[%c0_261, %463, %c16_262] : memref<1x16x32xf32, #tpu.memory_space<vmem>>, vector<1x1x8xf32>
    %465 = vector.shape_cast %464 : vector<1x1x8xf32> to vector<1x8xf32>
    %466 = vector.shape_cast %462 : vector<1x8xf32> to vector<1x1x8xf32>
    tpu.vector_store %arg5[%c0_261, %463, %c16_262], %466 {strides = array<i32>} : memref<1x16x32xf32, #tpu.memory_space<vmem>>, vector<1x1x8xf32>,
    %467 = vector.extract_strided_slice %446 {offsets = [4, 0], sizes = [1, 8], strides = [1, 1]} : vector<15x8xf32> to vector<1x8xf32>
    %c0_263 = arith.constant 0 : index
    %468 = arith.index_cast %364 : i32 to index
    %c16_264 = arith.constant 16 : index
    %469 = vector.load %arg5[%c0_263, %468, %c16_264] : memref<1x16x32xf32, #tpu.memory_space<vmem>>, vector<1x1x8xf32>
    %470 = vector.shape_cast %469 : vector<1x1x8xf32> to vector<1x8xf32>
    %471 = vector.shape_cast %467 : vector<1x8xf32> to vector<1x1x8xf32>
    tpu.vector_store %arg5[%c0_263, %468, %c16_264], %471 {strides = array<i32>} : memref<1x16x32xf32, #tpu.memory_space<vmem>>, vector<1x1x8xf32>,
    %472 = vector.extract_strided_slice %446 {offsets = [5, 0], sizes = [1, 8], strides = [1, 1]} : vector<15x8xf32> to vector<1x8xf32>
    %c0_265 = arith.constant 0 : index
    %473 = arith.index_cast %366 : i32 to index
    %c16_266 = arith.constant 16 : index
    %474 = vector.load %arg5[%c0_265, %473, %c16_266] : memref<1x16x32xf32, #tpu.memory_space<vmem>>, vector<1x1x8xf32>
    %475 = vector.shape_cast %474 : vector<1x1x8xf32> to vector<1x8xf32>
    %476 = vector.shape_cast %472 : vector<1x8xf32> to vector<1x1x8xf32>
    tpu.vector_store %arg5[%c0_265, %473, %c16_266], %476 {strides = array<i32>} : memref<1x16x32xf32, #tpu.memory_space<vmem>>, vector<1x1x8xf32>,
    %477 = vector.extract_strided_slice %446 {offsets = [6, 0], sizes = [1, 8], strides = [1, 1]} : vector<15x8xf32> to vector<1x8xf32>
    %c0_267 = arith.constant 0 : index
    %478 = arith.index_cast %368 : i32 to index
    %c16_268 = arith.constant 16 : index
    %479 = vector.load %arg5[%c0_267, %478, %c16_268] : memref<1x16x32xf32, #tpu.memory_space<vmem>>, vector<1x1x8xf32>
    %480 = vector.shape_cast %479 : vector<1x1x8xf32> to vector<1x8xf32>
    %481 = vector.shape_cast %477 : vector<1x8xf32> to vector<1x1x8xf32>
    tpu.vector_store %arg5[%c0_267, %478, %c16_268], %481 {strides = array<i32>} : memref<1x16x32xf32, #tpu.memory_space<vmem>>, vector<1x1x8xf32>,
    %482 = vector.extract_strided_slice %446 {offsets = [7, 0], sizes = [1, 8], strides = [1, 1]} : vector<15x8xf32> to vector<1x8xf32>
    %c0_269 = arith.constant 0 : index
    %483 = arith.index_cast %370 : i32 to index
    %c16_270 = arith.constant 16 : index
    %484 = vector.load %arg5[%c0_269, %483, %c16_270] : memref<1x16x32xf32, #tpu.memory_space<vmem>>, vector<1x1x8xf32>
    %485 = vector.shape_cast %484 : vector<1x1x8xf32> to vector<1x8xf32>
    %486 = vector.shape_cast %482 : vector<1x8xf32> to vector<1x1x8xf32>
    tpu.vector_store %arg5[%c0_269, %483, %c16_270], %486 {strides = array<i32>} : memref<1x16x32xf32, #tpu.memory_space<vmem>>, vector<1x1x8xf32>,
    %487 = vector.extract_strided_slice %446 {offsets = [8, 0], sizes = [1, 8], strides = [1, 1]} : vector<15x8xf32> to vector<1x8xf32>
    %c0_271 = arith.constant 0 : index
    %488 = arith.index_cast %372 : i32 to index
    %c16_272 = arith.constant 16 : index
    %489 = vector.load %arg5[%c0_271, %488, %c16_272] : memref<1x16x32xf32, #tpu.memory_space<vmem>>, vector<1x1x8xf32>
    %490 = vector.shape_cast %489 : vector<1x1x8xf32> to vector<1x8xf32>
    %491 = vector.shape_cast %487 : vector<1x8xf32> to vector<1x1x8xf32>
    tpu.vector_store %arg5[%c0_271, %488, %c16_272], %491 {strides = array<i32>} : memref<1x16x32xf32, #tpu.memory_space<vmem>>, vector<1x1x8xf32>,
    %492 = vector.extract_strided_slice %446 {offsets = [9, 0], sizes = [1, 8], strides = [1, 1]} : vector<15x8xf32> to vector<1x8xf32>
    %c0_273 = arith.constant 0 : index
    %493 = arith.index_cast %374 : i32 to index
    %c16_274 = arith.constant 16 : index
    %494 = vector.load %arg5[%c0_273, %493, %c16_274] : memref<1x16x32xf32, #tpu.memory_space<vmem>>, vector<1x1x8xf32>
    %495 = vector.shape_cast %494 : vector<1x1x8xf32> to vector<1x8xf32>
    %496 = vector.shape_cast %492 : vector<1x8xf32> to vector<1x1x8xf32>
    tpu.vector_store %arg5[%c0_273, %493, %c16_274], %496 {strides = array<i32>} : memref<1x16x32xf32, #tpu.memory_space<vmem>>, vector<1x1x8xf32>,
    %497 = vector.extract_strided_slice %446 {offsets = [10, 0], sizes = [1, 8], strides = [1, 1]} : vector<15x8xf32> to vector<1x8xf32>
    %c0_275 = arith.constant 0 : index
    %498 = arith.index_cast %376 : i32 to index
    %c16_276 = arith.constant 16 : index
    %499 = vector.load %arg5[%c0_275, %498, %c16_276] : memref<1x16x32xf32, #tpu.memory_space<vmem>>, vector<1x1x8xf32>
    %500 = vector.shape_cast %499 : vector<1x1x8xf32> to vector<1x8xf32>
    %501 = vector.shape_cast %497 : vector<1x8xf32> to vector<1x1x8xf32>
    tpu.vector_store %arg5[%c0_275, %498, %c16_276], %501 {strides = array<i32>} : memref<1x16x32xf32, #tpu.memory_space<vmem>>, vector<1x1x8xf32>,
    %502 = vector.extract_strided_slice %446 {offsets = [11, 0], sizes = [1, 8], strides = [1, 1]} : vector<15x8xf32> to vector<1x8xf32>
    %c0_277 = arith.constant 0 : index
    %503 = arith.index_cast %378 : i32 to index
    %c16_278 = arith.constant 16 : index
    %504 = vector.load %arg5[%c0_277, %503, %c16_278] : memref<1x16x32xf32, #tpu.memory_space<vmem>>, vector<1x1x8xf32>
    %505 = vector.shape_cast %504 : vector<1x1x8xf32> to vector<1x8xf32>
    %506 = vector.shape_cast %502 : vector<1x8xf32> to vector<1x1x8xf32>
    tpu.vector_store %arg5[%c0_277, %503, %c16_278], %506 {strides = array<i32>} : memref<1x16x32xf32, #tpu.memory_space<vmem>>, vector<1x1x8xf32>,
    %507 = vector.extract_strided_slice %446 {offsets = [12, 0], sizes = [1, 8], strides = [1, 1]} : vector<15x8xf32> to vector<1x8xf32>
    %c0_279 = arith.constant 0 : index
    %508 = arith.index_cast %380 : i32 to index
    %c16_280 = arith.constant 16 : index
    %509 = vector.load %arg5[%c0_279, %508, %c16_280] : memref<1x16x32xf32, #tpu.memory_space<vmem>>, vector<1x1x8xf32>
    %510 = vector.shape_cast %509 : vector<1x1x8xf32> to vector<1x8xf32>
    %511 = vector.shape_cast %507 : vector<1x8xf32> to vector<1x1x8xf32>
    tpu.vector_store %arg5[%c0_279, %508, %c16_280], %511 {strides = array<i32>} : memref<1x16x32xf32, #tpu.memory_space<vmem>>, vector<1x1x8xf32>,
    %512 = vector.extract_strided_slice %446 {offsets = [13, 0], sizes = [1, 8], strides = [1, 1]} : vector<15x8xf32> to vector<1x8xf32>
    %c0_281 = arith.constant 0 : index
    %513 = arith.index_cast %382 : i32 to index
    %c16_282 = arith.constant 16 : index
    %514 = vector.load %arg5[%c0_281, %513, %c16_282] : memref<1x16x32xf32, #tpu.memory_space<vmem>>, vector<1x1x8xf32>
    %515 = vector.shape_cast %514 : vector<1x1x8xf32> to vector<1x8xf32>
    %516 = vector.shape_cast %512 : vector<1x8xf32> to vector<1x1x8xf32>
    tpu.vector_store %arg5[%c0_281, %513, %c16_282], %516 {strides = array<i32>} : memref<1x16x32xf32, #tpu.memory_space<vmem>>, vector<1x1x8xf32>,
    %517 = vector.extract_strided_slice %446 {offsets = [14, 0], sizes = [1, 8], strides = [1, 1]} : vector<15x8xf32> to vector<1x8xf32>
    %c0_283 = arith.constant 0 : index
    %518 = arith.index_cast %384 : i32 to index
    %c16_284 = arith.constant 16 : index
    %519 = vector.load %arg5[%c0_283, %518, %c16_284] : memref<1x16x32xf32, #tpu.memory_space<vmem>>, vector<1x1x8xf32>
    %520 = vector.shape_cast %519 : vector<1x1x8xf32> to vector<1x8xf32>
    %521 = vector.shape_cast %517 : vector<1x8xf32> to vector<1x1x8xf32>
    tpu.vector_store %arg5[%c0_283, %518, %c16_284], %521 {strides = array<i32>} : memref<1x16x32xf32, #tpu.memory_space<vmem>>, vector<1x1x8xf32>,
    %c0_285 = arith.constant 0 : index
    %c0_286 = arith.constant 0 : index
    %c24 = arith.constant 24 : index
    %522 = vector.load %arg3[%c0_285, %c0_286, %c24] : memref<1x16x32xbf16, #tpu.memory_space<vmem>>, vector<1x16x8xbf16>
    %523 = vector.shape_cast %522 : vector<1x16x8xbf16> to vector<16x8xbf16>
    %524 = vector.extract_strided_slice %1 {offsets = [0, 24], sizes = [16, 8], strides = [1, 1]} : vector<16x32xbf16> to vector<16x8xbf16>
    %525 = arith.index_cast %arg0 : i32 to index
    %c3_287 = arith.constant 3 : index
    %c0_288 = arith.constant 0 : index
    %526 = memref.load %arg1[%525, %c3_287, %c0_288] : memref<2x4x15xi32, #tpu.memory_space<smem>>
    %527 = arith.index_cast %arg0 : i32 to index
    %c3_289 = arith.constant 3 : index
    %c1_290 = arith.constant 1 : index
    %528 = memref.load %arg1[%527, %c3_289, %c1_290] : memref<2x4x15xi32, #tpu.memory_space<smem>>
    %529 = arith.index_cast %arg0 : i32 to index
    %c3_291 = arith.constant 3 : index
    %c2_292 = arith.constant 2 : index
    %530 = memref.load %arg1[%529, %c3_291, %c2_292] : memref<2x4x15xi32, #tpu.memory_space<smem>>
    %531 = arith.index_cast %arg0 : i32 to index
    %c3_293 = arith.constant 3 : index
    %c3_294 = arith.constant 3 : index
    %532 = memref.load %arg1[%531, %c3_293, %c3_294] : memref<2x4x15xi32, #tpu.memory_space<smem>>
    %533 = arith.index_cast %arg0 : i32 to index
    %c3_295 = arith.constant 3 : index
    %c4_296 = arith.constant 4 : index
    %534 = memref.load %arg1[%533, %c3_295, %c4_296] : memref<2x4x15xi32, #tpu.memory_space<smem>>
    %535 = arith.index_cast %arg0 : i32 to index
    %c3_297 = arith.constant 3 : index
    %c5_298 = arith.constant 5 : index
    %536 = memref.load %arg1[%535, %c3_297, %c5_298] : memref<2x4x15xi32, #tpu.memory_space<smem>>
    %537 = arith.index_cast %arg0 : i32 to index
    %c3_299 = arith.constant 3 : index
    %c6_300 = arith.constant 6 : index
    %538 = memref.load %arg1[%537, %c3_299, %c6_300] : memref<2x4x15xi32, #tpu.memory_space<smem>>
    %539 = arith.index_cast %arg0 : i32 to index
    %c3_301 = arith.constant 3 : index
    %c7_302 = arith.constant 7 : index
    %540 = memref.load %arg1[%539, %c3_301, %c7_302] : memref<2x4x15xi32, #tpu.memory_space<smem>>
    %541 = arith.index_cast %arg0 : i32 to index
    %c3_303 = arith.constant 3 : index
    %c8_304 = arith.constant 8 : index
    %542 = memref.load %arg1[%541, %c3_303, %c8_304] : memref<2x4x15xi32, #tpu.memory_space<smem>>
    %543 = arith.index_cast %arg0 : i32 to index
    %c3_305 = arith.constant 3 : index
    %c9_306 = arith.constant 9 : index
    %544 = memref.load %arg1[%543, %c3_305, %c9_306] : memref<2x4x15xi32, #tpu.memory_space<smem>>
    %545 = arith.index_cast %arg0 : i32 to index
    %c3_307 = arith.constant 3 : index
    %c10_308 = arith.constant 10 : index
    %546 = memref.load %arg1[%545, %c3_307, %c10_308] : memref<2x4x15xi32, #tpu.memory_space<smem>>
    %547 = arith.index_cast %arg0 : i32 to index
    %c3_309 = arith.constant 3 : index
    %c11_310 = arith.constant 11 : index
    %548 = memref.load %arg1[%547, %c3_309, %c11_310] : memref<2x4x15xi32, #tpu.memory_space<smem>>
    %549 = arith.index_cast %arg0 : i32 to index
    %c3_311 = arith.constant 3 : index
    %c12_312 = arith.constant 12 : index
    %550 = memref.load %arg1[%549, %c3_311, %c12_312] : memref<2x4x15xi32, #tpu.memory_space<smem>>
    %551 = arith.index_cast %arg0 : i32 to index
    %c3_313 = arith.constant 3 : index
    %c13_314 = arith.constant 13 : index
    %552 = memref.load %arg1[%551, %c3_313, %c13_314] : memref<2x4x15xi32, #tpu.memory_space<smem>>
    %553 = arith.index_cast %arg0 : i32 to index
    %c3_315 = arith.constant 3 : index
    %c14_316 = arith.constant 14 : index
    %554 = memref.load %arg1[%553, %c3_315, %c14_316] : memref<2x4x15xi32, #tpu.memory_space<smem>>
    %c0_317 = arith.constant 0 : index
    %555 = arith.index_cast %526 : i32 to index
    %c24_318 = arith.constant 24 : index
    %556 = vector.load %arg2[%c0_317, %555, %c24_318] : memref<1x16x32xf32, #tpu.memory_space<vmem>>, vector<1x1x8xf32>
    %557 = vector.shape_cast %556 : vector<1x1x8xf32> to vector<1x8xf32>
    %c0_319 = arith.constant 0 : index
    %558 = arith.index_cast %528 : i32 to index
    %c24_320 = arith.constant 24 : index
    %559 = vector.load %arg2[%c0_319, %558, %c24_320] : memref<1x16x32xf32, #tpu.memory_space<vmem>>, vector<1x1x8xf32>
    %560 = vector.shape_cast %559 : vector<1x1x8xf32> to vector<1x8xf32>
    %c0_321 = arith.constant 0 : index
    %561 = arith.index_cast %530 : i32 to index
    %c24_322 = arith.constant 24 : index
    %562 = vector.load %arg2[%c0_321, %561, %c24_322] : memref<1x16x32xf32, #tpu.memory_space<vmem>>, vector<1x1x8xf32>
    %563 = vector.shape_cast %562 : vector<1x1x8xf32> to vector<1x8xf32>
    %c0_323 = arith.constant 0 : index
    %564 = arith.index_cast %532 : i32 to index
    %c24_324 = arith.constant 24 : index
    %565 = vector.load %arg2[%c0_323, %564, %c24_324] : memref<1x16x32xf32, #tpu.memory_space<vmem>>, vector<1x1x8xf32>
    %566 = vector.shape_cast %565 : vector<1x1x8xf32> to vector<1x8xf32>
    %c0_325 = arith.constant 0 : index
    %567 = arith.index_cast %534 : i32 to index
    %c24_326 = arith.constant 24 : index
    %568 = vector.load %arg2[%c0_325, %567, %c24_326] : memref<1x16x32xf32, #tpu.memory_space<vmem>>, vector<1x1x8xf32>
    %569 = vector.shape_cast %568 : vector<1x1x8xf32> to vector<1x8xf32>
    %c0_327 = arith.constant 0 : index
    %570 = arith.index_cast %536 : i32 to index
    %c24_328 = arith.constant 24 : index
    %571 = vector.load %arg2[%c0_327, %570, %c24_328] : memref<1x16x32xf32, #tpu.memory_space<vmem>>, vector<1x1x8xf32>
    %572 = vector.shape_cast %571 : vector<1x1x8xf32> to vector<1x8xf32>
    %c0_329 = arith.constant 0 : index
    %573 = arith.index_cast %538 : i32 to index
    %c24_330 = arith.constant 24 : index
    %574 = vector.load %arg2[%c0_329, %573, %c24_330] : memref<1x16x32xf32, #tpu.memory_space<vmem>>, vector<1x1x8xf32>
    %575 = vector.shape_cast %574 : vector<1x1x8xf32> to vector<1x8xf32>
    %c0_331 = arith.constant 0 : index
    %576 = arith.index_cast %540 : i32 to index
    %c24_332 = arith.constant 24 : index
    %577 = vector.load %arg2[%c0_331, %576, %c24_332] : memref<1x16x32xf32, #tpu.memory_space<vmem>>, vector<1x1x8xf32>
    %578 = vector.shape_cast %577 : vector<1x1x8xf32> to vector<1x8xf32>
    %c0_333 = arith.constant 0 : index
    %579 = arith.index_cast %542 : i32 to index
    %c24_334 = arith.constant 24 : index
    %580 = vector.load %arg2[%c0_333, %579, %c24_334] : memref<1x16x32xf32, #tpu.memory_space<vmem>>, vector<1x1x8xf32>
    %581 = vector.shape_cast %580 : vector<1x1x8xf32> to vector<1x8xf32>
    %c0_335 = arith.constant 0 : index
    %582 = arith.index_cast %544 : i32 to index
    %c24_336 = arith.constant 24 : index
    %583 = vector.load %arg2[%c0_335, %582, %c24_336] : memref<1x16x32xf32, #tpu.memory_space<vmem>>, vector<1x1x8xf32>
    %584 = vector.shape_cast %583 : vector<1x1x8xf32> to vector<1x8xf32>
    %c0_337 = arith.constant 0 : index
    %585 = arith.index_cast %546 : i32 to index
    %c24_338 = arith.constant 24 : index
    %586 = vector.load %arg2[%c0_337, %585, %c24_338] : memref<1x16x32xf32, #tpu.memory_space<vmem>>, vector<1x1x8xf32>
    %587 = vector.shape_cast %586 : vector<1x1x8xf32> to vector<1x8xf32>
    %c0_339 = arith.constant 0 : index
    %588 = arith.index_cast %548 : i32 to index
    %c24_340 = arith.constant 24 : index
    %589 = vector.load %arg2[%c0_339, %588, %c24_340] : memref<1x16x32xf32, #tpu.memory_space<vmem>>, vector<1x1x8xf32>
    %590 = vector.shape_cast %589 : vector<1x1x8xf32> to vector<1x8xf32>
    %c0_341 = arith.constant 0 : index
    %591 = arith.index_cast %550 : i32 to index
    %c24_342 = arith.constant 24 : index
    %592 = vector.load %arg2[%c0_341, %591, %c24_342] : memref<1x16x32xf32, #tpu.memory_space<vmem>>, vector<1x1x8xf32>
    %593 = vector.shape_cast %592 : vector<1x1x8xf32> to vector<1x8xf32>
    %c0_343 = arith.constant 0 : index
    %594 = arith.index_cast %552 : i32 to index
    %c24_344 = arith.constant 24 : index
    %595 = vector.load %arg2[%c0_343, %594, %c24_344] : memref<1x16x32xf32, #tpu.memory_space<vmem>>, vector<1x1x8xf32>
    %596 = vector.shape_cast %595 : vector<1x1x8xf32> to vector<1x8xf32>
    %c0_345 = arith.constant 0 : index
    %597 = arith.index_cast %554 : i32 to index
    %c24_346 = arith.constant 24 : index
    %598 = vector.load %arg2[%c0_345, %597, %c24_346] : memref<1x16x32xf32, #tpu.memory_space<vmem>>, vector<1x1x8xf32>
    %599 = vector.shape_cast %598 : vector<1x1x8xf32> to vector<1x8xf32>
    %600 = tpu.concatenate %557, %560, %563, %566, %569, %572, %575, %578, %581, %584, %587, %590, %593, %596, %599 in 0 : vector<1x8xf32>, vector<1x8xf32>, vector<1x8xf32>, vector<1x8xf32>, vector<1x8xf32>, vector<1x8xf32>, vector<1x8xf32>, vector<1x8xf32>, vector<1x8xf32>, vector<1x8xf32>, vector<1x8xf32>, vector<1x8xf32>, vector<1x8xf32>, vector<1x8xf32>, vector<1x8xf32> -> vector<15x8xf32>
    %601 = arith.truncf %600 : vector<15x8xf32> to vector<15x8xbf16>
    %cst_347 = arith.constant dense<0.000000e+00> : vector<15x16xf32>
    %602 = tpu.matmul %601, %523, %cst_347 {dimension_numbers = #tpu.dot_dimension_numbers<[1], [1], [0], [0], [0, 0, 1, 0], [], []>} : vector<15x8xbf16>, vector<16x8xbf16>, vector<15x16xf32> -> vector<15x16xf32>
    %cst_348 = arith.constant 0.353553385 : f32
    %603 = vector.broadcast %cst_348 : f32 to vector<15x16xf32>
    %604 = arith.mulf %602, %603 : vector<15x16xf32>
    %cst_349 = arith.constant dense<0xFF800000> : vector<15xf32>
    %605 = vector.multi_reduction <maximumf>, %604, %cst_349 [1] : vector<15x16xf32> to vector<15xf32>
    %606 = vector.shape_cast %605 : vector<15xf32> to vector<15x1xf32>
    %607 = vector.broadcast %606 : vector<15x1xf32> to vector<15x16xf32>
    %608 = arith.subf %604, %607 : vector<15x16xf32>
    %609 = math.exp %608 : vector<15x16xf32>
    %cst_350 = arith.constant dense<0.000000e+00> : vector<15xf32>
    %610 = vector.multi_reduction <add>, %609, %cst_350 [1] : vector<15x16xf32> to vector<15xf32>
    %611 = vector.shape_cast %610 : vector<15xf32> to vector<15x1xf32>
    %612 = arith.truncf %609 : vector<15x16xf32> to vector<15x16xbf16>
    %cst_351 = arith.constant dense<0.000000e+00> : vector<15x8xf32>
    %613 = tpu.matmul %612, %524, %cst_351 {dimension_numbers = #tpu.dot_dimension_numbers<[1], [0], [0], [1], [0, 0, 1, 1], [], []>} : vector<15x16xbf16>, vector<16x8xbf16>, vector<15x8xf32> -> vector<15x8xf32>
    %614 = tpu.reciprocal %611 {approx = true} : vector<15x1xf32> -> vector<15x1xf32>
    %615 = vector.broadcast %614 : vector<15x1xf32> to vector<15x8xf32>
    %616 = arith.mulf %613, %615 : vector<15x8xf32>
    %617 = vector.extract_strided_slice %616 {offsets = [0, 0], sizes = [1, 8], strides = [1, 1]} : vector<15x8xf32> to vector<1x8xf32>
    %c0_352 = arith.constant 0 : index
    %618 = arith.index_cast %526 : i32 to index
    %c24_353 = arith.constant 24 : index
    %619 = vector.load %arg5[%c0_352, %618, %c24_353] : memref<1x16x32xf32, #tpu.memory_space<vmem>>, vector<1x1x8xf32>
    %620 = vector.shape_cast %619 : vector<1x1x8xf32> to vector<1x8xf32>
    %621 = vector.shape_cast %617 : vector<1x8xf32> to vector<1x1x8xf32>
    tpu.vector_store %arg5[%c0_352, %618, %c24_353], %621 {strides = array<i32>} : memref<1x16x32xf32, #tpu.memory_space<vmem>>, vector<1x1x8xf32>,
    %622 = vector.extract_strided_slice %616 {offsets = [1, 0], sizes = [1, 8], strides = [1, 1]} : vector<15x8xf32> to vector<1x8xf32>
    %c0_354 = arith.constant 0 : index
    %623 = arith.index_cast %528 : i32 to index
    %c24_355 = arith.constant 24 : index
    %624 = vector.load %arg5[%c0_354, %623, %c24_355] : memref<1x16x32xf32, #tpu.memory_space<vmem>>, vector<1x1x8xf32>
    %625 = vector.shape_cast %624 : vector<1x1x8xf32> to vector<1x8xf32>
    %626 = vector.shape_cast %622 : vector<1x8xf32> to vector<1x1x8xf32>
    tpu.vector_store %arg5[%c0_354, %623, %c24_355], %626 {strides = array<i32>} : memref<1x16x32xf32, #tpu.memory_space<vmem>>, vector<1x1x8xf32>,
    %627 = vector.extract_strided_slice %616 {offsets = [2, 0], sizes = [1, 8], strides = [1, 1]} : vector<15x8xf32> to vector<1x8xf32>
    %c0_356 = arith.constant 0 : index
    %628 = arith.index_cast %530 : i32 to index
    %c24_357 = arith.constant 24 : index
    %629 = vector.load %arg5[%c0_356, %628, %c24_357] : memref<1x16x32xf32, #tpu.memory_space<vmem>>, vector<1x1x8xf32>
    %630 = vector.shape_cast %629 : vector<1x1x8xf32> to vector<1x8xf32>
    %631 = vector.shape_cast %627 : vector<1x8xf32> to vector<1x1x8xf32>
    tpu.vector_store %arg5[%c0_356, %628, %c24_357], %631 {strides = array<i32>} : memref<1x16x32xf32, #tpu.memory_space<vmem>>, vector<1x1x8xf32>,
    %632 = vector.extract_strided_slice %616 {offsets = [3, 0], sizes = [1, 8], strides = [1, 1]} : vector<15x8xf32> to vector<1x8xf32>
    %c0_358 = arith.constant 0 : index
    %633 = arith.index_cast %532 : i32 to index
    %c24_359 = arith.constant 24 : index
    %634 = vector.load %arg5[%c0_358, %633, %c24_359] : memref<1x16x32xf32, #tpu.memory_space<vmem>>, vector<1x1x8xf32>
    %635 = vector.shape_cast %634 : vector<1x1x8xf32> to vector<1x8xf32>
    %636 = vector.shape_cast %632 : vector<1x8xf32> to vector<1x1x8xf32>
    tpu.vector_store %arg5[%c0_358, %633, %c24_359], %636 {strides = array<i32>} : memref<1x16x32xf32, #tpu.memory_space<vmem>>, vector<1x1x8xf32>,
    %637 = vector.extract_strided_slice %616 {offsets = [4, 0], sizes = [1, 8], strides = [1, 1]} : vector<15x8xf32> to vector<1x8xf32>
    %c0_360 = arith.constant 0 : index
    %638 = arith.index_cast %534 : i32 to index
    %c24_361 = arith.constant 24 : index
    %639 = vector.load %arg5[%c0_360, %638, %c24_361] : memref<1x16x32xf32, #tpu.memory_space<vmem>>, vector<1x1x8xf32>
    %640 = vector.shape_cast %639 : vector<1x1x8xf32> to vector<1x8xf32>
    %641 = vector.shape_cast %637 : vector<1x8xf32> to vector<1x1x8xf32>
    tpu.vector_store %arg5[%c0_360, %638, %c24_361], %641 {strides = array<i32>} : memref<1x16x32xf32, #tpu.memory_space<vmem>>, vector<1x1x8xf32>,
    %642 = vector.extract_strided_slice %616 {offsets = [5, 0], sizes = [1, 8], strides = [1, 1]} : vector<15x8xf32> to vector<1x8xf32>
    %c0_362 = arith.constant 0 : index
    %643 = arith.index_cast %536 : i32 to index
    %c24_363 = arith.constant 24 : index
    %644 = vector.load %arg5[%c0_362, %643, %c24_363] : memref<1x16x32xf32, #tpu.memory_space<vmem>>, vector<1x1x8xf32>
    %645 = vector.shape_cast %644 : vector<1x1x8xf32> to vector<1x8xf32>
    %646 = vector.shape_cast %642 : vector<1x8xf32> to vector<1x1x8xf32>
    tpu.vector_store %arg5[%c0_362, %643, %c24_363], %646 {strides = array<i32>} : memref<1x16x32xf32, #tpu.memory_space<vmem>>, vector<1x1x8xf32>,
    %647 = vector.extract_strided_slice %616 {offsets = [6, 0], sizes = [1, 8], strides = [1, 1]} : vector<15x8xf32> to vector<1x8xf32>
    %c0_364 = arith.constant 0 : index
    %648 = arith.index_cast %538 : i32 to index
    %c24_365 = arith.constant 24 : index
    %649 = vector.load %arg5[%c0_364, %648, %c24_365] : memref<1x16x32xf32, #tpu.memory_space<vmem>>, vector<1x1x8xf32>
    %650 = vector.shape_cast %649 : vector<1x1x8xf32> to vector<1x8xf32>
    %651 = vector.shape_cast %647 : vector<1x8xf32> to vector<1x1x8xf32>
    tpu.vector_store %arg5[%c0_364, %648, %c24_365], %651 {strides = array<i32>} : memref<1x16x32xf32, #tpu.memory_space<vmem>>, vector<1x1x8xf32>,
    %652 = vector.extract_strided_slice %616 {offsets = [7, 0], sizes = [1, 8], strides = [1, 1]} : vector<15x8xf32> to vector<1x8xf32>
    %c0_366 = arith.constant 0 : index
    %653 = arith.index_cast %540 : i32 to index
    %c24_367 = arith.constant 24 : index
    %654 = vector.load %arg5[%c0_366, %653, %c24_367] : memref<1x16x32xf32, #tpu.memory_space<vmem>>, vector<1x1x8xf32>
    %655 = vector.shape_cast %654 : vector<1x1x8xf32> to vector<1x8xf32>
    %656 = vector.shape_cast %652 : vector<1x8xf32> to vector<1x1x8xf32>
    tpu.vector_store %arg5[%c0_366, %653, %c24_367], %656 {strides = array<i32>} : memref<1x16x32xf32, #tpu.memory_space<vmem>>, vector<1x1x8xf32>,
    %657 = vector.extract_strided_slice %616 {offsets = [8, 0], sizes = [1, 8], strides = [1, 1]} : vector<15x8xf32> to vector<1x8xf32>
    %c0_368 = arith.constant 0 : index
    %658 = arith.index_cast %542 : i32 to index
    %c24_369 = arith.constant 24 : index
    %659 = vector.load %arg5[%c0_368, %658, %c24_369] : memref<1x16x32xf32, #tpu.memory_space<vmem>>, vector<1x1x8xf32>
    %660 = vector.shape_cast %659 : vector<1x1x8xf32> to vector<1x8xf32>
    %661 = vector.shape_cast %657 : vector<1x8xf32> to vector<1x1x8xf32>
    tpu.vector_store %arg5[%c0_368, %658, %c24_369], %661 {strides = array<i32>} : memref<1x16x32xf32, #tpu.memory_space<vmem>>, vector<1x1x8xf32>,
    %662 = vector.extract_strided_slice %616 {offsets = [9, 0], sizes = [1, 8], strides = [1, 1]} : vector<15x8xf32> to vector<1x8xf32>
    %c0_370 = arith.constant 0 : index
    %663 = arith.index_cast %544 : i32 to index
    %c24_371 = arith.constant 24 : index
    %664 = vector.load %arg5[%c0_370, %663, %c24_371] : memref<1x16x32xf32, #tpu.memory_space<vmem>>, vector<1x1x8xf32>
    %665 = vector.shape_cast %664 : vector<1x1x8xf32> to vector<1x8xf32>
    %666 = vector.shape_cast %662 : vector<1x8xf32> to vector<1x1x8xf32>
    tpu.vector_store %arg5[%c0_370, %663, %c24_371], %666 {strides = array<i32>} : memref<1x16x32xf32, #tpu.memory_space<vmem>>, vector<1x1x8xf32>,
    %667 = vector.extract_strided_slice %616 {offsets = [10, 0], sizes = [1, 8], strides = [1, 1]} : vector<15x8xf32> to vector<1x8xf32>
    %c0_372 = arith.constant 0 : index
    %668 = arith.index_cast %546 : i32 to index
    %c24_373 = arith.constant 24 : index
    %669 = vector.load %arg5[%c0_372, %668, %c24_373] : memref<1x16x32xf32, #tpu.memory_space<vmem>>, vector<1x1x8xf32>
    %670 = vector.shape_cast %669 : vector<1x1x8xf32> to vector<1x8xf32>
    %671 = vector.shape_cast %667 : vector<1x8xf32> to vector<1x1x8xf32>
    tpu.vector_store %arg5[%c0_372, %668, %c24_373], %671 {strides = array<i32>} : memref<1x16x32xf32, #tpu.memory_space<vmem>>, vector<1x1x8xf32>,
    %672 = vector.extract_strided_slice %616 {offsets = [11, 0], sizes = [1, 8], strides = [1, 1]} : vector<15x8xf32> to vector<1x8xf32>
    %c0_374 = arith.constant 0 : index
    %673 = arith.index_cast %548 : i32 to index
    %c24_375 = arith.constant 24 : index
    %674 = vector.load %arg5[%c0_374, %673, %c24_375] : memref<1x16x32xf32, #tpu.memory_space<vmem>>, vector<1x1x8xf32>
    %675 = vector.shape_cast %674 : vector<1x1x8xf32> to vector<1x8xf32>
    %676 = vector.shape_cast %672 : vector<1x8xf32> to vector<1x1x8xf32>
    tpu.vector_store %arg5[%c0_374, %673, %c24_375], %676 {strides = array<i32>} : memref<1x16x32xf32, #tpu.memory_space<vmem>>, vector<1x1x8xf32>,
    %677 = vector.extract_strided_slice %616 {offsets = [12, 0], sizes = [1, 8], strides = [1, 1]} : vector<15x8xf32> to vector<1x8xf32>
    %c0_376 = arith.constant 0 : index
    %678 = arith.index_cast %550 : i32 to index
    %c24_377 = arith.constant 24 : index
    %679 = vector.load %arg5[%c0_376, %678, %c24_377] : memref<1x16x32xf32, #tpu.memory_space<vmem>>, vector<1x1x8xf32>
    %680 = vector.shape_cast %679 : vector<1x1x8xf32> to vector<1x8xf32>
    %681 = vector.shape_cast %677 : vector<1x8xf32> to vector<1x1x8xf32>
    tpu.vector_store %arg5[%c0_376, %678, %c24_377], %681 {strides = array<i32>} : memref<1x16x32xf32, #tpu.memory_space<vmem>>, vector<1x1x8xf32>,
    %682 = vector.extract_strided_slice %616 {offsets = [13, 0], sizes = [1, 8], strides = [1, 1]} : vector<15x8xf32> to vector<1x8xf32>
    %c0_378 = arith.constant 0 : index
    %683 = arith.index_cast %552 : i32 to index
    %c24_379 = arith.constant 24 : index
    %684 = vector.load %arg5[%c0_378, %683, %c24_379] : memref<1x16x32xf32, #tpu.memory_space<vmem>>, vector<1x1x8xf32>
    %685 = vector.shape_cast %684 : vector<1x1x8xf32> to vector<1x8xf32>
    %686 = vector.shape_cast %682 : vector<1x8xf32> to vector<1x1x8xf32>
    tpu.vector_store %arg5[%c0_378, %683, %c24_379], %686 {strides = array<i32>} : memref<1x16x32xf32, #tpu.memory_space<vmem>>, vector<1x1x8xf32>,
    %687 = vector.extract_strided_slice %616 {offsets = [14, 0], sizes = [1, 8], strides = [1, 1]} : vector<15x8xf32> to vector<1x8xf32>
    %c0_380 = arith.constant 0 : index
    %688 = arith.index_cast %554 : i32 to index
    %c24_381 = arith.constant 24 : index
    %689 = vector.load %arg5[%c0_380, %688, %c24_381] : memref<1x16x32xf32, #tpu.memory_space<vmem>>, vector<1x1x8xf32>
    %690 = vector.shape_cast %689 : vector<1x1x8xf32> to vector<1x8xf32>
    %691 = vector.shape_cast %687 : vector<1x8xf32> to vector<1x1x8xf32>
    tpu.vector_store %arg5[%c0_380, %688, %c24_381], %691 {strides = array<i32>} : memref<1x16x32xf32, #tpu.memory_space<vmem>>, vector<1x1x8xf32>,
    return
  }
  func.func @transform_0(%arg0: i32, %arg1: memref<2x4x15xi32, #tpu.memory_space<smem>>) -> (i32, i32, i32) {
    %c0_i32 = arith.constant 0 : i32
    %c0_i32_0 = arith.constant 0 : i32
    %c0_i32_1 = arith.constant 0 : i32
    return %arg0, %c0_i32, %c0_i32_0 : i32, i32, i32
  }
  func.func @transform_1(%arg0: i32, %arg1: memref<2x4x15xi32, #tpu.memory_space<smem>>) -> (i32, i32, i32) {
    %c0_i32 = arith.constant 0 : i32
    %c0_i32_0 = arith.constant 0 : i32
    %c0_i32_1 = arith.constant 0 : i32
    return %arg0, %c0_i32, %c0_i32_0 : i32, i32, i32
  }
  func.func @transform_2(%arg0: i32, %arg1: memref<2x4x15xi32, #tpu.memory_space<smem>>) -> (i32, i32, i32) {
    %c0_i32 = arith.constant 0 : i32
    %c0_i32_0 = arith.constant 0 : i32
    %c0_i32_1 = arith.constant 0 : i32
    return %arg0, %c0_i32, %c0_i32_0 : i32, i32, i32
  }
  func.func @transform_3(%arg0: i32, %arg1: memref<2x4x15xi32, #tpu.memory_space<smem>>) -> (i32, i32, i32) {
    %c0_i32 = arith.constant 0 : i32
    %c0_i32_0 = arith.constant 0 : i32
    %c0_i32_1 = arith.constant 0 : i32
    return %arg0, %c0_i32, %c0_i32_0 : i32, i32, i32
  }
}

</mosaic_0001>

<bundles_post_ra>
// kernel: prob_attention_forward.7
= control target key start
LH: loop header
LB: loop body
LE: loop exit
PB: predicated region body
PF: predicated region fallthrough
CT: control target
= control target key end

     0   :  { %vm44_vm0 = vcmask 261120   ;;  %vm116_vm1 = vcmask 257024   ;;  %s205_s1 = inlined_call_operand.vmem [shape: bf16[32,32], index: 1, kind: input, shape index: {}]   ;;  %s206_s0 = inlined_call_operand.vmem [shape: f32[32,32], index: 0, kind: input, shape index: {}]   ;;  %s207_s2 = inlined_call_operand.vmem [shape: f32[1,32], index: 2, kind: input, shape index: {}]   ;;  %s208_s3 = inlined_call_operand.vmem [shape: bf16[32,32], index: 3, kind: output, shape index: {}]  }
   0x1   :  { %v150_v0 = vld [vmem:[%s205_s1] sm:$0xff]   ;;  %v151_v1 = vld [vmem:[%s205_s1 + $0x8] sm:$0xff]   ;;  %v17_v5 = vld [vmem:[%s206_s0 + $0x10] sm:$0xff] }
   0x2   :  { %142 = vmatprep.subr.bf16.mxu0 %v150_v0  ;;  %v15_v2 = vld [vmem:[%s206_s0] sm:$0xff]  ;;  %v16_v3 = vld [vmem:[%s206_s0 + $0x8] sm:$0xff]  ;;  %v18_v6 = vld [vmem:[%s206_s0 + $0x18] sm:$0xff] }
   0x3   :  { %143 = vmatpush3.bf16.msra.mxu0 %v150_v0  ;;  %v19_v4 = vpack.c.bf16 %v16_v3, %v15_v2  ;;  %v20_v7 = vpack.c.bf16 %v18_v6, %v17_v5  ;;  %v125_v8 = vld [vmem:[%s207_s2] ss:$0 sm:$0xff] }
   0x4   :  { %144 = vmatprep.subr.bf16.mxu0 %v151_v1 }
   0x5   :  { %146 = vmatprep.mubr.msk.bf16.mxu0 %vm44_vm0, %v19_v4 }
   0x7   :  { %145 = vmatpush3.bf16.msra.mxu0 %v151_v1 }
   0xa   :  { %147 = vmatmul.mubr.msk.bf16.vlgmr.msra.gmra.mrb[0].mxu0 %vm44_vm0, %v20_v7 }
  0xdd   :  { %v148_v9 = vpop.f32.mrb[0].mxu0 }
  0xde   :  { %v94_v10 = vadd.f32 %v148_v9, %v125_v8  ;;  %v85_v11 = vpop.f32.mrb[1].mxu0 }
  0xdf   :  { %v86_v12 = vadd.f32 %v125_v8, %v85_v11  ;;  %v149_v13 = vpop.f32.mrb[2].mxu0 }
  0xe0   :  { %v136_v14 = vpack.c.bf16 %v94_v10, %v94_v10  ;;  %v97_v15 = vadd.f32 %v149_v13, %v125_v8  ;;  %v88_v16 = vpop.f32.mrb[3].mxu0 }
  0xe1   :  { %v134_v17 = vpack.c.bf16 %v86_v12, %v86_v12  ;;  %v89_v18 = vadd.f32 %v125_v8, %v88_v16 }
  0xe2   :  { %119 = vst.msk [vmem:[%s208_s3 + $0x8] sm:$0xf] %vm116_vm1, %v136_v14  ;;  %v137_v19 = vpack.c.bf16 %v97_v15, %v97_v15 }
  0xe3   :  { %117 = vst.msk [vmem:[%s208_s3] sm:$0xf] %vm116_vm1, %v134_v17  ;;  %v135_v20 = vpack.c.bf16 %v89_v18, %v89_v18 }
  0xe4   :  { %120 = vst.msk [vmem:[%s208_s3 + $0xc] sm:$0xf] %vm116_vm1, %v137_v19 }
  0xe5   :  { %118 = vst.msk [vmem:[%s208_s3 + $0x4] sm:$0xf] %vm116_vm1, %v135_v20 }

// kernel: prob_attention_forward.6
= control target key start
LH: loop header
LB: loop body
LE: loop exit
PB: predicated region body
PF: predicated region fallthrough
CT: control target
= control target key end

     0   :  { %vm44_vm0 = vcmask 261120   ;;  %s186_s1 = inlined_call_operand.vmem [shape: bf16[32,32], index: 1, kind: input, shape index: {}]   ;;  %s187_s0 = inlined_call_operand.vmem [shape: f32[32,32], index: 0, kind: input, shape index: {}]   ;;  %s188_s2 = inlined_call_operand.vmem [shape: f32[1,32], index: 2, kind: input, shape index: {}]   ;;  %s189_s3 = inlined_call_operand.vmem [shape: f32[32,32], index: 3, kind: output, shape index: {}]  }
   0x1   :  { %v125_v0 = vld [vmem:[%s186_s1] sm:$0xff]   ;;  %v126_v1 = vld [vmem:[%s186_s1 + $0x8] sm:$0xff]   ;;  %v17_v5 = vld [vmem:[%s187_s0 + $0x10] sm:$0xff] }
   0x2   :  { %117 = vmatprep.subr.bf16.mxu0 %v125_v0  ;;  %v15_v2 = vld [vmem:[%s187_s0] sm:$0xff]  ;;  %v16_v3 = vld [vmem:[%s187_s0 + $0x8] sm:$0xff]  ;;  %v18_v6 = vld [vmem:[%s187_s0 + $0x18] sm:$0xff] }
   0x3   :  { %118 = vmatpush3.bf16.msra.mxu0 %v125_v0  ;;  %v19_v4 = vpack.c.bf16 %v16_v3, %v15_v2  ;;  %v20_v7 = vpack.c.bf16 %v18_v6, %v17_v5  ;;  %v108_v8 = vld [vmem:[%s188_s2] ss:$0 sm:$0xff] }
   0x4   :  { %119 = vmatprep.subr.bf16.mxu0 %v126_v1 }
   0x5   :  { %121 = vmatprep.mubr.msk.bf16.mxu0 %vm44_vm0, %v19_v4 }
   0x7   :  { %120 = vmatpush3.bf16.msra.mxu0 %v126_v1 }
   0xa   :  { %122 = vmatmul.mubr.msk.bf16.vlgmr.msra.gmra.mrb[0].mxu0 %vm44_vm0, %v20_v7 }
  0xdd   :  { %v123_v9 = vpop.f32.mrb[0].mxu0 }
  0xde   :  { %v94_v10 = vadd.f32 %v123_v9, %v108_v8  ;;  %v85_v11 = vpop.f32.mrb[1].mxu0 }
  0xdf   :  { %v86_v12 = vadd.f32 %v108_v8, %v85_v11  ;;  %v124_v13 = vpop.f32.mrb[2].mxu0 }
  0xe0   :  { %102 = vst.msk [vmem:[%s189_s3 + $0x10] sm:$0xff] %vm44_vm0, %v94_v10  ;;  %v97_v14 = vadd.f32 %v124_v13, %v108_v8  ;;  %v88_v15 = vpop.f32.mrb[3].mxu0 }
  0xe1   :  { %100 = vst.msk [vmem:[%s189_s3] sm:$0xff] %vm44_vm0, %v86_v12  ;;  %v89_v16 = vadd.f32 %v108_v8, %v88_v15 }
  0xe2   :  { %103 = vst.msk [vmem:[%s189_s3 + $0x18] sm:$0xff] %vm44_vm0, %v97_v14 }
  0xe3   :  { %101 = vst.msk [vmem:[%s189_s3 + $0x8] sm:$0xff] %vm44_vm0, %v89_v16 }

// kernel: prob_attention_forward.8
= control target key start
LH: loop header
LB: loop body
LE: loop exit
PB: predicated region body
PF: predicated region fallthrough
CT: control target
= control target key end

     0   :  { %s680_s12 = smov 0   ;;  %s775_s0 = inlined_call_operand.vmem [shape: f32[2,16,32], index: 0, kind: input, shape index: {}]   ;;  %s776_s1 = inlined_call_operand.vmem [shape: bf16[2,16,32], index: 1, kind: input, shape index: {}]   ;;  %s777_s2 = inlined_call_operand.vmem [shape: bf16[16,16], index: 2, kind: input, shape index: {}]   ;;  %s778_s3 = inlined_call_operand.vmem [shape: f32[2,4,16], index: 3, kind: output, shape index: {}]  }
   0x1 LB: > { %s578_s13 = sadd.s32 4294967295, %s653_s12   ;;  %p582_p0 = scmp.ge.s32.totalorder %s653_s12, 1  ;;  %s653_s12 = sphi %s680_s12, %s13_s12  }
   0x2   : > { %p147_p1 = scmp.lt.s32.totalorder %s653_s12, 3 }
   0x4   : > { %p148_p2 = pnand %p582_p0, %p147_p1 }
   0x5   : > { %p175_p3 = scmp.lt.s32.totalorder (!%p148_p2), %s578_s13, 1  ;;  %v655_v0 = vmov (!%p148_p2), 0.0   ;;  %vm656_vm0 = vmmov (!%p148_p2), 0   ;;  %vm206_vm1 = vcmask (!%p148_p2), 64512   ;;  %s657_s22 = smov (!%p148_p2), 120   ;;  %v598_v15 = vld [vmem:[%s777_s2] sm:$0xff] (!%p148_p2)  }
   0x6   : > { %151 = sbr.rel (%p148_p2) target bundleno = 387 (0x183), region = 32  ;;  %609 = vmatprep.subr.bf16.mxu0 (!%p148_p2), %v655_v0  ;;  %611 = vmatprep.mubr.msk.bf16.mxu0 (!%p148_p2), %vm656_vm0, %v655_v0  ;;  %s658_s23 = smov (!%p148_p2), 112   ;;  %v713_v16 = vunpack.c.l.bf16 (!%p148_p2), %v598_v15  ;;  %v716_v17 = vunpack.c.h.bf16 (!%p148_p2), %v598_v15  ;;  %vm256_vm3 = vcmask (!%p148_p2), 130048   ;;  %vm505_vm5 = vcmask (!%p148_p2), 1040384  }
   0x7   : > { %615 = vmatprep.subr.bf16.mxu1 (!%p148_p2), %v655_v0  ;;  %617 = vmatprep.mubr.msk.bf16.mxu1 (!%p148_p2), %vm656_vm0, %v655_v0  ;;  %s659_s24 = smov (!%p148_p2), 104   ;;  %vm507_vm6 = vcmask (!%p148_p2), 1041408   ;;  %vm509_vm7 = vcmask (!%p148_p2), 1042432   ;;  %vm511_vm8 = vcmask (!%p148_p2), 125952  }
   0x8   : > { %vm194_vm2 = vcmp.gt.f32.partialorder (!%p148_p2), %v713_v16, 0.0  ;;  %vm195_vm4 = vcmp.gt.f32.partialorder (!%p148_p2), %v716_v17, 0.0 }
   0xd   : > { %s780_s13 = smov (!%p175_p3, %s578_s13), 1 }
   0xe   : > { %s595_s14 = sshll.u32 %s780_s13, 4  ;;  %s596_s18 = sshll.u32 %s780_s13, 3 }
   0xf   : > { %s179_s17 = scalar_lea.vmem %s775_s0, %s595_s14  ;;  %s184_s21 = scalar_lea.vmem %s776_s1, %s596_s18 }
  0x10   : > { %v196_v1 = vld [vmem:[%s179_s17] sm:$0xff]  ;;  %v197_v2 = vld [vmem:[%s179_s17 + $0x8] sm:$0xff]  ;;  %s587_s27 = sshll.u32 %s780_s13, 2 }
  0x11   : > { %v198_v3 = vpack.c.bf16 %v197_v2, %v196_v1  ;;  %v646_v4 = vld [vmem:[%s184_s21] sm:$0xff]   ;;  %s188_s30 = scalar_lea.vmem %s778_s3, %s587_s27 }
  0x12   : > { %279 = vrot.lane.b32.xlu1 %v646_v4, %s657_s22 }
  0x13   : > { %282 = vrot.lane.b32.xlu0 %v198_v3, %s657_s22  ;;  %v211_v5 = vsel %vm206_vm1, %v198_v3, 0 }
  0x14   : > { %610 = vmatpush3.bf16.xpose.msra.mxu0 %v211_v5 }
  0x15   : > { %621 = vmatprep.subr.bf16.mxu0 %v655_v0 }
  0x16   : > { %432 = vrot.lane.b32.xlu1 %v198_v3, %s659_s24 }
  0x17   : > { %357 = vrot.lane.b32.xlu0 %v198_v3, %s658_s23 }
  0x1a   : > { %430 = vrot.lane.b32.xlu1 %v646_v4, %s659_s24 }
  0x1b   : > { %355 = vrot.lane.b32.xlu0 %v646_v4, %s658_s23  ;;  %612 = vmatmul.mubr.msk.bf16.vlgmr.msra.gmra.mrb[0].mxu0 %vm206_vm1, %v646_v4 }
  0x1c   : > { %623 = vmatprep.mubr.msk.bf16.mxu0 %vm656_vm0, %v655_v0 }
  0x84   : > { %v280_v8 = vpop.permute.xlu1 %279 }
  0x85   : > { %v283_v6 = vpop.permute.xlu0 %282 }
  0x86   : > { %v288_v7 = vsel %vm206_vm1, %v283_v6, 0 }
  0x87   : > { %616 = vmatpush3.bf16.xpose.msra.mxu1 %v288_v7 }
  0x88   : > { %627 = vmatprep.subr.bf16.mxu1 %v655_v0  ;;  %v433_v11 = vpop.permute.xlu1 %432 }
  0x89   : > { %v358_v9 = vpop.permute.xlu0 %357  ;;  %v438_v12 = vsel %vm206_vm1, %v433_v11, 0 }
  0x8a   : > { %v363_v10 = vsel %vm206_vm1, %v358_v9, 0 }
  0x8b   : > { %622 = vmatpush3.bf16.xpose.msra.mxu0 %v363_v10 }
  0x8c   : > { %v431_v14 = vpop.permute.xlu1 %430 }
  0x8d   : > { %v356_v13 = vpop.permute.xlu0 %355 }
  0x8e   : > { %618 = vmatmul.mubr.msk.bf16.vlgmr.msra.gmra.mrb[0].mxu1 %vm206_vm1, %v280_v8 }
  0x8f   : > { %628 = vmatpush3.bf16.xpose.msra.mxu1 %v438_v12  ;;  %629 = vmatprep.mubr.msk.bf16.mxu1 %vm656_vm0, %v655_v0 }
  0x92   : > { %624 = vmatmul.mubr.msk.bf16.vlgmr.msra.gmra.mrb[4].mxu0 %vm206_vm1, %v356_v13 }
  0x96   : > { %630 = vmatmul.mubr.msk.bf16.vlgmr.msra.gmra.mrb[4].mxu1 %vm206_vm1, %v431_v14 }
  0xee   : > { %v247_v18 = vpop.f32.mrb[0].mxu0 }
  0xef   : > { %v254_v19 = vsel %vm194_vm2, %v247_v18, -1e+30  ;;  %v266_v20 = vmul.f32 %v713_v16, %v247_v18  ;;  %v613_v21 = vpop.f32.mrb[1].mxu0 }
  0xf0   : > { %v257_v22 = vsel %vm256_vm3, %v254_v19, -inf  ;;  %v250_v23 = vpop.f32.mrb[2].mxu0 }
  0xf1   : > { %v268_v24 = vsel %vm256_vm3, %v266_v20, 0.0  ;;  %v255_v25 = vsel %vm195_vm4, %v250_v23, -1e+30  ;;  %v267_v26 = vmul.f32 %v716_v17, %v250_v23  ;;  %v614_v27 = vpop.f32.mrb[3].mxu0 }
  0xf2   : > { %v258_v28 = vsel %vm256_vm3, %v255_v25, -inf }
  0xf3   : > { %v259_v29 = vmax.f32 %v257_v22, %v258_v28  ;;  %v269_v30 = vsel %vm256_vm3, %v267_v26, 0.0 }
  0xf4   : > { %v270_v31 = vadd.f32 %v269_v30, %v268_v24 }
  0xf5   : > { %v260_v32 = vrot.slane %v259_v29, 4 }
  0xf6   : > { %v271_v33 = vrot.slane %v270_v31, 4 }
  0xf7   : > { %v261_v34 = vmax.f32 %v259_v29, %v260_v32 }
  0xf8   : > { %v272_v35 = vadd.f32 %v271_v33, %v270_v31 }
  0xf9   : > { %v262_v36 = vrot.slane %v261_v34, 2 }
  0xfa   : > { %v273_v37 = vrot.slane %v272_v35, 2 }
  0xfb   : > { %v263_v38 = vmax.f32 %v261_v34, %v262_v36 }
  0xfc   : > { %v274_v39 = vadd.f32 %v273_v37, %v272_v35 }
  0xfd   : > { %v264_v40 = vrot.slane %v263_v38, 1 }
  0xfe   : > { %v275_v41 = vrot.slane %v274_v39, 1 }
  0xff   : > { %v729_v42 = vmax.f32 %v263_v38, %v264_v40 }
 0x100   : > { %v276_v43 = vadd.f32 %v275_v41, %v274_v39 }
 0x102   : > { %v731_v44 = vmul.f32 0.0625, %v276_v43 }
 0x104   : > { %v278_v45 = vsub.f32 %v729_v42, %v731_v44 }
 0x161   : > { %v324_v46 = vpop.f32.mrb[0].mxu1 }
 0x162   : > { %v331_v47 = vsel %vm194_vm2, %v324_v46, -1e+30  ;;  %v342_v48 = vmul.f32 %v713_v16, %v324_v46  ;;  %v619_v49 = vpop.f32.mrb[1].mxu1 }
 0x163   : > { %v327_v50 = vpop.f32.mrb[2].mxu1  ;;  %v333_v54 = vsel %vm256_vm3, %v331_v47, -inf }
 0x164   : > { %v332_v51 = vsel %vm195_vm4, %v327_v50, -1e+30  ;;  %v343_v52 = vmul.f32 %v716_v17, %v327_v50  ;;  %v620_v53 = vpop.f32.mrb[3].mxu1  ;;  %v344_v55 = vsel %vm256_vm3, %v342_v48, 0.0 }
 0x165   : > { %v334_v56 = vsel %vm256_vm3, %v332_v51, -inf  ;;  %v399_v57 = vpop.f32.mrb[4].mxu0 }
 0x166   : > { %v335_v58 = vmax.f32 %v333_v54, %v334_v56  ;;  %v345_v59 = vsel %vm256_vm3, %v343_v52, 0.0  ;;  %v406_v60 = vsel %vm194_vm2, %v399_v57, -1e+30  ;;  %v417_v61 = vmul.f32 %v713_v16, %v399_v57  ;;  %v625_v62 = vpop.f32.mrb[5].mxu0 }
 0x167   : > { %v346_v63 = vadd.f32 %v345_v59, %v344_v55  ;;  %v408_v0 = vsel %vm256_vm3, %v406_v60, -inf  ;;  %v402_v1 = vpop.f32.mrb[6].mxu0 }
 0x168   : > { %v336_v2 = vrot.slane %v335_v58, 4  ;;  %v419_v3 = vsel %vm256_vm3, %v417_v61, 0.0  ;;  %v407_v4 = vsel %vm195_vm4, %v402_v1, -1e+30  ;;  %v418_v5 = vmul.f32 %v716_v17, %v402_v1  ;;  %v626_v6 = vpop.f32.mrb[7].mxu0 }
 0x169   : > { %v347_v7 = vrot.slane %v346_v63, 4  ;;  %v409_v8 = vsel %vm256_vm3, %v407_v4, -inf  ;;  %v474_v9 = vpop.f32.mrb[4].mxu1 }
 0x16a   : > { %v337_v10 = vmax.f32 %v335_v58, %v336_v2  ;;  %v410_v11 = vmax.f32 %v408_v0, %v409_v8  ;;  %v420_v12 = vsel %vm256_vm3, %v418_v5, 0.0  ;;  %v481_v13 = vsel %vm194_vm2, %v474_v9, -1e+30  ;;  %v631_v14 = vpop.f32.mrb[5].mxu1 }
 0x16b   : > { %v348_v15 = vadd.f32 %v347_v7, %v346_v63  ;;  %v421_v18 = vadd.f32 %v420_v12, %v419_v3  ;;  %v483_v19 = vsel %vm256_vm3, %v481_v13, -inf  ;;  %v492_v20 = vmul.f32 %v713_v16, %v474_v9  ;;  %v477_v21 = vpop.f32.mrb[6].mxu1 }
 0x16c   : > { %v338_v22 = vrot.slane %v337_v10, 2  ;;  %v411_v23 = vrot.slane %v410_v11, 4  ;;  %v482_v24 = vsel %vm195_vm4, %v477_v21, -1e+30  ;;  %v493_v25 = vmul.f32 %v716_v17, %v477_v21  ;;  %v632_v26 = vpop.f32.mrb[7].mxu1 }
 0x16d   : > { %v349_v27 = vrot.slane %v348_v15, 2  ;;  %v422_v28 = vrot.slane %v421_v18, 4  ;;  %v494_v29 = vsel %vm256_vm3, %v492_v20, 0.0  ;;  %v484_v30 = vsel %vm256_vm3, %v482_v24, -inf }
 0x16e   : > { %v339_v31 = vmax.f32 %v337_v10, %v338_v22  ;;  %v412_v32 = vmax.f32 %v410_v11, %v411_v23  ;;  %v485_v33 = vmax.f32 %v483_v19, %v484_v30  ;;  %v495_v16 = vsel %vm256_vm3, %v493_v25, 0.0 }
 0x16f   : > { %v350_v34 = vadd.f32 %v349_v27, %v348_v15  ;;  %v423_v35 = vadd.f32 %v422_v28, %v421_v18  ;;  %v496_v36 = vadd.f32 %v495_v16, %v494_v29 }
 0x170   : > { %v413_v37 = vrot.slane %v412_v32, 2  ;;  %v486_v38 = vrot.slane %v485_v33, 4  ;;  %v340_v39 = vrot.slane %v339_v31, 1 }
 0x171   : > { %v351_v40 = vrot.slane %v350_v34, 1  ;;  %v424_v17 = vrot.slane %v423_v35, 2  ;;  %v497_v41 = vrot.slane %v496_v36, 4 }
 0x172   : > { %v414_v43 = vmax.f32 %v412_v32, %v413_v37  ;;  %v487_v46 = vmax.f32 %v485_v33, %v486_v38  ;;  %v341_v52 = vmax.f32 %v339_v31, %v340_v39 }
 0x173   : > { %v352_v47 = vadd.f32 %v351_v40, %v350_v34  ;;  %v425_v48 = vadd.f32 %v424_v17, %v423_v35  ;;  %v498_v49 = vadd.f32 %v497_v41, %v496_v36 }
 0x174   : > { %v415_v50 = vrot.slane %v414_v43, 1  ;;  %v488_v51 = vrot.slane %v487_v46, 2 }
 0x175   : > { %v353_v53 = vmul.f32 0.0625, %v352_v47  ;;  %v426_v54 = vrot.slane %v425_v48, 1  ;;  %v499_v55 = vrot.slane %v498_v49, 2 }
 0x176   : > { %v489_v56 = vmax.f32 %v487_v46, %v488_v51  ;;  %v416_v60 = vmax.f32 %v414_v43, %v415_v50 }
 0x177   : > { %v354_v57 = vsub.f32 %v341_v52, %v353_v53  ;;  %v427_v58 = vadd.f32 %v426_v54, %v425_v48  ;;  %v500_v59 = vadd.f32 %v499_v55, %v498_v49 }
 0x178   : > { %v490_v63 = vrot.slane %v489_v56, 1 }
 0x179   : > { %v506_v61 = vsel %vm505_vm5, %v278_v45, %v354_v57  ;;  %v428_v62 = vmul.f32 0.0625, %v427_v58  ;;  %v501_v0 = vrot.slane %v500_v59, 1 }
 0x17a   : > { %v491_v4 = vmax.f32 %v489_v56, %v490_v63 }
 0x17b   : > { %v429_v1 = vsub.f32 %v416_v60, %v428_v62  ;;  %v502_v2 = vadd.f32 %v501_v0, %v500_v59 }
 0x17d   : > { %v508_v3 = vsel %vm507_vm6, %v506_v61, %v429_v1  ;;  %v503_v5 = vmul.f32 0.0625, %v502_v2 }
 0x17f   : > { %v504_v6 = vsub.f32 %v491_v4, %v503_v5 }
 0x181   : > { %v510_v7 = vsel %vm509_vm7, %v508_v3, %v504_v6 }
 0x182   : > { %512 = vst.msk [vmem:[%s188_s30] sm:$0xf] %vm511_vm8, %v510_v7 }
 0x183 PF: > { %s13_s12 = sadd.s32 1, %s653_s12  }
 0x184   : > { %p10_p4 = scmp.ge.s32.totalorder %s13_s12, 4  }
 0x186   :  { %12 = sbr.rel (!%p10_p4) target bundleno = 1 (0x1), region = 65 }

// kernel: prob_attention_forward.11
= control target key start
LH: loop header
LB: loop body
LE: loop exit
PB: predicated region body
PF: predicated region fallthrough
CT: control target
= control target key end

     0   :  { %vm45_vm0 = vcmask 261120   ;;  %s229_s0 = inlined_call_operand.vmem [shape: f32[32,32], index: 0, kind: input, shape index: {}]   ;;  %s230_s1 = inlined_call_operand.vmem [shape: bf16[32,32], index: 1, kind: input, shape index: {}]   ;;  %s231_s2 = inlined_call_operand.vmem [shape: f32[1,32], index: 2, kind: input, shape index: {}]   ;;  %s232_s3 = inlined_call_operand.hbm [shape: f32[32,32], index: 3, kind: output, shape index: {}]  }
   0x1   :  { %v141_v0 = vld [vmem:[%s230_s1] sm:$0xff]   ;;  %v142_v1 = vld [vmem:[%s230_s1 + $0x8] sm:$0xff]   ;;  %v18_v5 = vld [vmem:[%s229_s0 + $0x10] sm:$0xff] }
   0x2   :  { %130 = vmatprep.subr.bf16.mxu0 %v141_v0  ;;  %v16_v2 = vld [vmem:[%s229_s0] sm:$0xff]  ;;  %v17_v3 = vld [vmem:[%s229_s0 + $0x8] sm:$0xff]  ;;  %v19_v6 = vld [vmem:[%s229_s0 + $0x18] sm:$0xff] }
   0x3   :  { %131 = vmatpush3.bf16.msra.mxu0 %v141_v0  ;;  %v20_v4 = vpack.c.bf16 %v17_v3, %v16_v2 }
   0x4   :  { %8 = vsyncpa [#allocation3], 0  ;;  %132 = vmatprep.subr.bf16.mxu0 %v142_v1  ;;  %v21_v7 = vpack.c.bf16 %v19_v6, %v18_v5  ;;  %v121_v8 = vld [vmem:[%s231_s2] ss:$0 sm:$0xff]  ;;  %s167_s25 = smov [#allocation2]  }
   0x5   :  { %134 = vmatprep.mubr.msk.bf16.mxu0 %vm45_vm0, %v20_v4  ;;  %s110_s26 = sshll.u32 %s167_s25, 4  ;;  %s111_s26 = int_to_ptr.vmem [resolvable:$true] %s110_s26 }
   0x6   :  { %s143_s0 = scalar_lea.vmem %s111_s26, 512  ;;  %p148_p1 = scmp.lt.s32.totalorder %s111_s26, %s111_s26 }
   0x7   :  { %133 = vmatpush3.bf16.msra.mxu0 %v142_v1  ;;  %p144_p0 = scmp.ne.s32.totalorder %s111_s26, %s143_s0  ;;  %p149_p2 = scmp.lt.s32.totalorder %s143_s0, %s143_s0 }
   0x9   :  { %p150_p3 = por %p149_p2, %p148_p1 }
   0xa   :  { %135 = vmatmul.mubr.msk.bf16.vlgmr.msra.gmra.mrb[0].mxu0 %vm45_vm0, %v21_v7 }
   0xb   :  { %p151_p4 = pnand %p150_p3, %p144_p0 }
  0xdd   :  { %v136_v9 = vpop.f32.mrb[0].mxu0 }
  0xde   :  { %v95_v10 = vadd.f32 %v136_v9, %v121_v8  ;;  %v86_v11 = vpop.f32.mrb[1].mxu0 }
  0xdf   :  { %v87_v12 = vadd.f32 %v121_v8, %v86_v11  ;;  %v137_v13 = vpop.f32.mrb[2].mxu0 }
  0xe0   :  { %103 = vst.msk [vmem:[#allocation2 + $0x10] sm:$0xff] %vm45_vm0, %v95_v10  ;;  %v98_v14 = vadd.f32 %v137_v13, %v121_v8  ;;  %v89_v15 = vpop.f32.mrb[3].mxu0 }
  0xe1   :  { %101 = vst.msk [vmem:[#allocation2] sm:$0xff] %vm45_vm0, %v87_v12  ;;  %v90_v16 = vadd.f32 %v121_v8, %v89_v15 }
  0xe2   :  { %104 = vst.msk [vmem:[#allocation2 + $0x18] sm:$0xff] %vm45_vm0, %v98_v14 }
  0xe3   :  { %102 = vst.msk [vmem:[#allocation2 + $0x8] sm:$0xff] %vm45_vm0, %v90_v16 }
  0xe4   :  { %154 = shalt.err (!%p151_p4)
}
  0xe5   :  { %s155_s28 = scalar_lea.hbm %s232_s3, 512 }
  0xe6   :  { %p156_p5 = scmp.ne.s32.totalorder %s232_s3, %s155_s28  ;;  %p159_p6 = scmp.lt.u32.totalorder %s155_s28, %s232_s3 }
  0xe8   :  { %p161_p7 = pnand %p159_p6, %p156_p5 }
  0xea   :  { %164 = shalt.err (!%p161_p7)
}
  0xeb   :  { %s168_s6 = smov 128   ;;  %s169_s7 = smov 8  }
  0xec   :  { %116 = dma.vmem_to_hbm [thread:$0]  %s111_s26, 512, %s232_s3, [#allocation3], %s168_s6, %s168_s6, %s169_s7  }
  0xed   :  { %165 = dma.done.wait [#allocation3], 512  }
  0xee   :  { %166 = vsyncadd [#allocation3], 4294966784 }
  0xef   :  { %120 = vsyncpa [#allocation3], 1 }

// kernel: prob_attention_forward.10
= control target key start
LH: loop header
LB: loop body
LE: loop exit
PB: predicated region body
PF: predicated region fallthrough
CT: control target
= control target key end

     0   :  { %s2497_s0 = inlined_call_operand.vmem [shape: s32[2,4,15], index: 0, kind: input, shape index: {}]   ;;  %s2498_s1 = inlined_call_operand.vmem [shape: f32[2,16,32], index: 1, kind: input, shape index: {}]   ;;  %s2499_s2 = inlined_call_operand.vmem [shape: bf16[2,16,32], index: 2, kind: input, shape index: {}]   ;;  %s2500_s3 = inlined_call_operand.vmem [shape: bf16[2,16,32], index: 3, kind: input, shape index: {}]   ;;  %s2501_s4 = inlined_call_operand.vmem [shape: f32[2,16,32], index: 4, kind: output, shape index: {}]  }
   0x1   :  { %2558 = sst [smem:[#allocation53_spill]] %s2498_s1  ;;  %s9_s17 = sshll.u32 %s2497_s0, 4  ;;  %s10_s17 = int_to_ptr.vmem [resolvable:$true] %s9_s17 }
   0x2   :  { %2559 = sst [smem:[#allocation54_spill]] %s2499_s2  ;;  %s1765_s18 = scalar_lea.vmem %s10_s17, 128 }
   0x3   :  { %2560 = sst [smem:[#allocation55_spill]] %s2500_s3  ;;  %p1766_p0 = scmp.ne.s32.totalorder %s10_s17, %s1765_s18 }
   0x4   :  { %2561 = sst [smem:[#allocation56_spill]] %s2501_s4  ;;  %p1770_p1 = scmp.lt.s32.totalorder %s10_s17, %s10_s17 }
   0x5   :  { %p1771_p2 = scmp.lt.s32.totalorder %s1765_s18, %s1765_s18 }
   0x7   :  { %p1772_p3 = por %p1771_p2, %p1770_p1 }
   0x9   :  { %p1773_p4 = pnand %p1772_p3, %p1766_p0 }
   0xb   :  { %1776 = shalt.err (!%p1773_p4)  }
   0xc   :  { %s1787_s19 = smov [#allocation3]  }
   0xd   :  { %12 = dma.vmem_to_smem %s10_s17, 128, %s1787_s19, [#allocation2] }
   0xe   :  { %1781 = dma.done.wait [#allocation2], 128 }
   0xf   :  { %1782 = vsyncadd [#allocation2], 4294967168 }
  0x10   :  { %14 = sfence }
  0x11   :  { %s1824_s20 = smov 0  }
  0x12 LB: > { %2562 = sst [smem:[#allocation5_spill]] %s1785_s20  ;;  %s1600_s0 = sadd.s32 4294967295, %s1785_s20   ;;  %s1785_s20 = sphi %s1824_s20, %s20_s20  }
  0x13   : > { %p1604_p5 = scmp.ge.s32.totalorder %s1785_s20, 1  ;;  %p164_p6 = scmp.lt.s32.totalorder %s1785_s20, 3 }
  0x15   : > { %p165_p7 = pnand %p1604_p5, %p164_p6 }
  0x17   : > { %168 = sbr.rel (%p165_p7) target bundleno = 1209 (0x4b9), region = 32 }
  0x1e   : > { %p198_p8 = scmp.lt.s32.totalorder %s1600_s0, 1  ;;  %s1832_s21 = sshll.u32 %s1600_s0, 9  ;;  %v1788_v0 = vmov 0.0   ;;  %vm1789_vm0 = vmmov 0   ;;  %vm365_vm1 = vcmask 64512   ;;  %vm339_vm2 = vcmask 1040384  }
  0x1f   : > { %1663 = vmatprep.subr.bf16.mxu0 %v1788_v0  ;;  %1665 = vmatprep.mubr.msk.bf16.mxu0 %vm1789_vm0, %v1788_v0  ;;  %s242_s22 = sadd.s32 1, %s1832_s21  ;;  %s1844_s23 = sld [smem:[#allocation3 + %s1832_s21]]  ;;  %vm341_vm3 = vcmask 1041408   ;;  %vm343_vm4 = vcmask 1042432   ;;  %vm345_vm5 = vcmask 1043456   ;;  %vm347_vm6 = vcmask 1044480  }
  0x20   : > { %s2668_s0 = smov (!%p198_p8, %s1600_s0), 1  ;;  %1669 = vmatprep.subr.bf16.mxu1 %v1788_v0  ;;  %1671 = vmatprep.mubr.msk.bf16.mxu1 %vm1789_vm0, %v1788_v0  ;;  %s244_s24 = sadd.s32 2, %s1832_s21  ;;  %vm349_vm7 = vcmask 1045504   ;;  %vm351_vm8 = vcmask 1046528   ;;  %vm415_vm9 = vcmask 130048   ;;  %vm419_vm10 = vcmask 129024  }
  0x21   : > { %s2502_s25 = sshll.u32 %s2668_s0, 4  ;;  %s2503_s26 = sshll.u32 %s2668_s0, 3  ;;  %vm223_vm11 = vcmask 261120   ;;  %vm491_vm12 = vcmask 57344   ;;  %vm494_vm13 = vcmask 58369   ;;  %vm497_vm14 = vcmask 59394  }
  0x22   : > { %s2563_s2 = sld [smem:[#allocation54_spill]]  ;;  %s2565_s1 = sld [smem:[#allocation53_spill]]  ;;  %vm500_vm15 = vcmask 60419  }
  0x23   : > { %s1856_s30 = sld [smem:[#allocation3 + %s242_s22]]  ;;  %s246_s9 = sadd.s32 3, %s1832_s21 }
  0x24   : > { %s1866_s8 = sld [smem:[#allocation3 + %s244_s24]]  ;;  %s248_s10 = sadd.s32 4, %s1832_s21 }
  0x25   : > { %s1871_s11 = sld [smem:[#allocation3 + %s246_s9]]  ;;  %s250_s13 = sadd.s32 5, %s1832_s21 }
  0x26   : > { %s1873_s12 = sld [smem:[#allocation3 + %s248_s10]]  ;;  %s252_s14 = sadd.s32 6, %s1832_s21 }
  0x27   : > { %s1877_s15 = sld [smem:[#allocation3 + %s250_s13]]  ;;  %s254_s17 = sadd.s32 7, %s1832_s21 }
  0x28   : > { %s1854_s29 = scalar_lea.vmem %s2563_s2, %s2503_s26  ;;  %s1863_s7 = scalar_lea.vmem %s2565_s1, %s2502_s25 }
  0x29   : > { %2564 = sst [smem:[#allocation6_spill]] %s1856_s30  ;;  %v1728_v1 = vld [vmem:[%s1854_s29] sm:$0xff]   ;;  %s256_s18 = sadd.s32 8, %s1832_s21 }
  0x2a   : > { %2566 = sst [smem:[#allocation7_spill]] %s1866_s8  ;;  %v370_v2 = vsel %vm365_vm1, %v1728_v1, 0  ;;  %s258_s24 = sadd.s32 9, %s1832_s21  ;;  %v1729_v45 = vld [vmem:[%s1854_s29] sm:$0xff]  }
  0x2b   : > { %2567 = sst [smem:[#allocation8_spill]] %s1871_s11  ;;  %1664 = vmatpush3.bf16.xpose.msra.mxu0 %v370_v2  ;;  %s260_s27 = sadd.s32 10, %s1832_s21 }
  0x2c   : > { %2568 = sst [smem:[#allocation9_spill]] %s1873_s12  ;;  %1681 = vmatprep.subr.bf16.mxu0 %v1788_v0  ;;  %s262_s6 = sadd.s32 11, %s1832_s21 }
  0x2d   : > { %2569 = sst [smem:[#allocation10_spill]] %s1877_s15  ;;  %s264_s9 = sadd.s32 12, %s1832_s21 }
  0x2e   : > { %s1879_s16 = sld [smem:[#allocation3 + %s252_s14]]  ;;  %s266_s14 = sadd.s32 13, %s1832_s21 }
  0x2f   : > { %s1884_s19 = sld [smem:[#allocation3 + %s254_s17]]  ;;  %s268_s17 = sadd.s32 14, %s1832_s21 }
  0x30   : > { %s1886_s22 = sld [smem:[#allocation3 + %s256_s18]]  ;;  %s272_s25 = scalar_lea.vmem %s1863_s7, %s1856_s30 }
  0x31   : > { %s1890_s28 = sld [smem:[#allocation3 + %s258_s24]]  ;;  %v273_v4 = vld [vmem:[%s272_s25] sm:$0x1] }
  0x32   : > { %s1892_s5 = sld [smem:[#allocation3 + %s260_s27]]  ;;  %s270_s27 = scalar_lea.vmem %s1863_s7, %s1844_s23  ;;  %v301_v7 = vrot.slane %v273_v4, 7 }
  0x33   : > { %s1896_s10 = sld [smem:[#allocation3 + %s262_s6]]  ;;  %v271_v3 = vld [vmem:[%s270_s27] sm:$0x1]  ;;  %s274_s6 = scalar_lea.vmem %s1863_s7, %s1866_s8 }
  0x34   : > { %2570 = sst [smem:[#allocation11_spill]] %s1879_s16  ;;  %v275_v5 = vld [vmem:[%s274_s6] sm:$0x1]  ;;  %s282_s25 = scalar_lea.vmem %s1863_s7, %s1879_s16  ;;  %v340_v16 = vsel %vm339_vm2, %v271_v3, %v301_v7 }
  0x35   : > { %2571 = sst [smem:[#allocation12_spill]] %s1884_s19  ;;  %s284_s27 = scalar_lea.vmem %s1863_s7, %s1884_s19  ;;  %v304_v10 = vrot.slane %v275_v5, 6  ;;  %v283_v12 = vld [vmem:[%s282_s25] sm:$0x1] }
  0x36   : > { %2572 = sst [smem:[#allocation13_spill]] %s1886_s22  ;;  %v285_v13 = vld [vmem:[%s284_s27] sm:$0x1]  ;;  %s286_s6 = scalar_lea.vmem %s1863_s7, %s1886_s22  ;;  %v316_v19 = vrot.slane %v283_v12, 2 }
  0x37   : > { %2573 = sst [smem:[#allocation14_spill]] %s1890_s28  ;;  %v287_v17 = vld [vmem:[%s286_s6] sm:$0x1]  ;;  %v342_v20 = vsel %vm341_vm3, %v340_v16, %v304_v10  ;;  %v319_v23 = vrot.slane %v285_v13, 1  ;;  %s2615_s3 = sld [smem:[#allocation55_spill]] }
  0x38   : > { %2574 = sst [smem:[#allocation15_spill]] %s1892_s5  ;;  %s2618_s4 = sld [smem:[#allocation56_spill]] }
  0x39   : > { %2575 = sst [smem:[#allocation16_spill]] %s1896_s10 }
  0x3a   : > { %s1898_s13 = sld [smem:[#allocation3 + %s264_s9]]  ;;  %s276_s9 = scalar_lea.vmem %s1863_s7, %s1871_s11 }
  0x3b   : > { %s1902_s18 = sld [smem:[#allocation3 + %s266_s14]]  ;;  %v277_v6 = vld [vmem:[%s276_s9] sm:$0x1]  ;;  %s278_s14 = scalar_lea.vmem %s1863_s7, %s1873_s12 }
  0x3c   : > { %s1904_s24 = sld [smem:[#allocation3 + %s268_s17]]  ;;  %s280_s17 = scalar_lea.vmem %s1863_s7, %s1877_s15  ;;  %v279_v8 = vld [vmem:[%s278_s14] sm:$0x1]  ;;  %v307_v11 = vrot.slane %v277_v6, 5 }
  0x3d   : > { %v281_v9 = vld [vmem:[%s280_s17] sm:$0x1]  ;;  %s288_s9 = scalar_lea.vmem %s1863_s7, %s1890_s28  ;;  %v310_v14 = vrot.slane %v279_v8, 4  ;;  %s290_s14 = scalar_lea.vmem %s1863_s7, %s1892_s5 }
  0x3e   : > { %v313_v15 = vrot.slane %v281_v9, 3  ;;  %v289_v18 = vld [vmem:[%s288_s9] sm:$0x1]  ;;  %s292_s17 = scalar_lea.vmem %s1863_s7, %s1896_s10  ;;  %v344_v25 = vsel %vm343_vm4, %v342_v20, %v307_v11  ;;  %s1954_s9 = sadd.s32 128, %s1832_s21 }
  0x3f   : > { %v291_v21 = vld [vmem:[%s290_s14] sm:$0x1]  ;;  %v322_v24 = vrot.slane %v289_v18, 7  ;;  %v346_v30 = vsel %vm345_vm5, %v344_v25, %v310_v14  ;;  %s1957_s14 = sld [smem:[#allocation3 + %s1954_s9]]  ;;  %s537_s1 = sadd.s32 3, %s1954_s9 }
  0x40   : > { %2576 = sst [smem:[#allocation17_spill]] %s1898_s13  ;;  %v293_v22 = vld [vmem:[%s292_s17] sm:$0x1]  ;;  %s294_s25 = scalar_lea.vmem %s1863_s7, %s1898_s13  ;;  %v325_v28 = vrot.slane %v291_v21, 6  ;;  %v348_v34 = vsel %vm347_vm6, %v346_v30, %v313_v15 }
  0x41   : > { %2577 = sst [smem:[#allocation18_spill]] %s1902_s18  ;;  %s296_s27 = scalar_lea.vmem %s1863_s7, %s1902_s18  ;;  %v295_v26 = vld [vmem:[%s294_s25] sm:$0x1]  ;;  %v328_v29 = vrot.slane %v293_v22, 5  ;;  %v353_v35 = vsel %vm339_vm2, %v287_v17, %v322_v24  ;;  %v350_v37 = vsel %vm349_vm7, %v348_v34, %v316_v19 }
  0x42   : > { %2578 = sst [smem:[#allocation19_spill]] %s1904_s24  ;;  %v297_v27 = vld [vmem:[%s296_s27] sm:$0x1]  ;;  %s298_s6 = scalar_lea.vmem %s1863_s7, %s1904_s24  ;;  %v331_v32 = vrot.slane %v295_v26, 4  ;;  %v354_v38 = vsel %vm341_vm3, %v353_v35, %v325_v28  ;;  %v352_v40 = vsel %vm351_vm8, %v350_v37, %v319_v23 }
  0x43   : > { %v299_v31 = vld [vmem:[%s298_s6] sm:$0x1]  ;;  %v334_v33 = vrot.slane %v297_v27, 3  ;;  %v355_v39 = vsel %vm343_vm4, %v354_v38, %v328_v29  ;;  %s533_s17 = sadd.s32 1, %s1954_s9  ;;  %s2508_s25 = smov 120  }
  0x44   : > { %v337_v36 = vrot.slane %v299_v31, 2  ;;  %v356_v41 = vsel %vm345_vm5, %v355_v39, %v331_v32  ;;  %652 = vrot.lane.b32.xlu1 %v1729_v45, %s2508_s25  ;;  %s1961_s27 = sld [smem:[#allocation3 + %s533_s17]]  ;;  %s535_s6 = sadd.s32 2, %s1954_s9 }
  0x45   : > { %v357_v42 = vsel %vm347_vm6, %v356_v41, %v334_v33  ;;  %2579 = sst [smem:[#allocation20_spill]] %s1957_s14  ;;  %s539_s20 = sadd.s32 4, %s1954_s9 }
  0x46   : > { %v358_v43 = vsel %vm349_vm7, %v357_v42, %v337_v36  ;;  %s1964_s26 = sld [smem:[#allocation3 + %s535_s6]]  ;;  %s541_s18 = sadd.s32 5, %s1954_s9 }
  0x47   : > { %v359_v44 = vpack.c.bf16 %v358_v43, %v352_v40  ;;  %s1967_s2 = sld [smem:[#allocation3 + %s537_s1]]  ;;  %s543_s25 = sadd.s32 6, %s1954_s9 }
  0x48   : > { %s1970_s24 = sld [smem:[#allocation3 + %s539_s20]]  ;;  %s545_s10 = sadd.s32 7, %s1954_s9 }
  0x49   : > { %1666 = vmatmul.mubr.msk.bf16.vlgmr.msra.gmra.mrb[0].mxu0 %vm365_vm1, %v359_v44  ;;  %s1973_s13 = sld [smem:[#allocation3 + %s541_s18]]  ;;  %s547_s1 = sadd.s32 8, %s1954_s9 }
  0x4a   : > { %1683 = vmatprep.mubr.msk.bf16.mxu0 %vm1789_vm0, %v1788_v0  ;;  %2580 = sst [smem:[#allocation21_spill]] %s1961_s27  ;;  %s549_s5 = sadd.s32 9, %s1954_s9 }
  0x4b   : > { %s1976_s17 = sld [smem:[#allocation3 + %s543_s25]]  ;;  %s551_s18 = sadd.s32 10, %s1954_s9 }
  0x4c   : > { %2581 = sst [smem:[#allocation22_spill]] %s1964_s26  ;;  %s553_s22 = sadd.s32 11, %s1954_s9 }
  0x4d   : > { %2582 = sst [smem:[#allocation23_spill]] %s1967_s2  ;;  %s555_s19 = sadd.s32 12, %s1954_s9 }
  0x4e   : > { %2583 = sst [smem:[#allocation24_spill]] %s1970_s24  ;;  %s559_s15 = sadd.s32 14, %s1954_s9 }
  0x4f   : > { %2584 = sst [smem:[#allocation25_spill]] %s1973_s13  ;;  %s563_s11 = scalar_lea.vmem %s1863_s7, %s1961_s27 }
  0x50   : > { %s1979_s6 = sld [smem:[#allocation3 + %s545_s10]]  ;;  %v564_v47 = vld [vmem:[%s563_s11] sm:$0x1]  ;;  %s569_s8 = scalar_lea.vmem %s1863_s7, %s1970_s24 }
  0x51   : > { %2585 = sst [smem:[#allocation26_spill]] %s1976_s17  ;;  %v570_v50 = vld [vmem:[%s569_s8] sm:$0x1]  ;;  %v592_v51 = vrot.slane %v564_v47, 7 }
  0x52   : > { %s1982_s20 = sld [smem:[#allocation3 + %s547_s1]]  ;;  %s557_s1 = sadd.s32 13, %s1954_s9  ;;  %v601_v56 = vrot.slane %v570_v50, 4 }
  0x53   : > { %s1985_s28 = sld [smem:[#allocation3 + %s549_s5]]  ;;  %s573_s9 = scalar_lea.vmem %s1863_s7, %s1976_s17 }
  0x54   : > { %s1988_s25 = sld [smem:[#allocation3 + %s551_s18]]  ;;  %s561_s18 = scalar_lea.vmem %s1863_s7, %s1957_s14  ;;  %v574_v54 = vld [vmem:[%s573_s9] sm:$0x1] }
  0x55   : > { %s1991_s10 = sld [smem:[#allocation3 + %s553_s22]]  ;;  %s565_s22 = scalar_lea.vmem %s1863_s7, %s1964_s26  ;;  %v562_v46 = vld [vmem:[%s561_s18] sm:$0x1]  ;;  %v607_v63 = vrot.slane %v574_v54, 2 }
  0x56   : > { %2586 = sst [smem:[#allocation27_spill]] %s1979_s6  ;;  %v566_v48 = vld [vmem:[%s565_s22] sm:$0x1]  ;;  %s575_s11 = scalar_lea.vmem %s1863_s7, %s1979_s6  ;;  %v630_v60 = vsel %vm339_vm2, %v562_v46, %v592_v51 }
  0x57   : > { %s1994_s16 = sld [smem:[#allocation3 + %s555_s19]]  ;;  %s567_s19 = scalar_lea.vmem %s1863_s7, %s1967_s2  ;;  %v595_v52 = vrot.slane %v566_v48, 6  ;;  %v576_v57 = vld [vmem:[%s575_s11] sm:$0x1] }
  0x58   : > { %2587 = sst [smem:[#allocation28_spill]] %s1982_s20  ;;  %v568_v49 = vld [vmem:[%s567_s19] sm:$0x1]  ;;  %v610_v1 = vrot.slane %v576_v57, 1  ;;  %s2046_s11 = sadd.s32 256, %s1832_s21 }
  0x59   : > { %2588 = sst [smem:[#allocation29_spill]] %s1985_s28  ;;  %v598_v55 = vrot.slane %v568_v49, 5  ;;  %s579_s8 = scalar_lea.vmem %s1863_s7, %s1985_s28  ;;  %v631_v2 = vsel %vm341_vm3, %v630_v60, %v595_v52 }
  0x5a   : > { %2589 = sst [smem:[#allocation30_spill]] %s1988_s25  ;;  %s581_s18 = scalar_lea.vmem %s1863_s7, %s1988_s25  ;;  %v580_v61 = vld [vmem:[%s579_s8] sm:$0x1] }
  0x5b   : > { %2590 = sst [smem:[#allocation31_spill]] %s1991_s10  ;;  %v582_v62 = vld [vmem:[%s581_s18] sm:$0x1]  ;;  %s583_s22 = scalar_lea.vmem %s1863_s7, %s1991_s10  ;;  %v613_v5 = vrot.slane %v580_v61, 7  ;;  %v632_v7 = vsel %vm343_vm4, %v631_v2, %v598_v55 }
  0x5c   : > { %s1997_s5 = sld [smem:[#allocation3 + %s557_s1]]  ;;  %s577_s1 = scalar_lea.vmem %s1863_s7, %s1982_s20  ;;  %v584_v3 = vld [vmem:[%s583_s22] sm:$0x1]  ;;  %v616_v6 = vrot.slane %v582_v62, 6  ;;  %v633_v12 = vsel %vm345_vm5, %v632_v7, %v601_v56 }
  0x5d   : > { %2591 = sst [smem:[#allocation32_spill]] %s1994_s16  ;;  %v578_v58 = vld [vmem:[%s577_s1] sm:$0x1]  ;;  %s585_s19 = scalar_lea.vmem %s1863_s7, %s1994_s16  ;;  %v619_v10 = vrot.slane %v584_v3, 5 }
  0x5e   : > { %s2000_s12 = sld [smem:[#allocation3 + %s559_s15]]  ;;  %s571_s15 = scalar_lea.vmem %s1863_s7, %s1973_s13  ;;  %v586_v4 = vld [vmem:[%s585_s19] sm:$0x1]  ;;  %v637_v15 = vsel %vm339_vm2, %v578_v58, %v613_v5 }
  0x5f   : > { %v572_v53 = vld [vmem:[%s571_s15] sm:$0x1]  ;;  %v622_v11 = vrot.slane %v586_v4, 4  ;;  %v638_v18 = vsel %vm341_vm3, %v637_v15, %v616_v6  ;;  %s2594_s1 = smov 120   ;;  %s2050_s8 = sld [smem:[#allocation3 + %s2046_s11]] }
  0x60   : > { %v604_v59 = vrot.slane %v572_v53, 3  ;;  %v639_v19 = vsel %vm343_vm4, %v638_v18, %v619_v10  ;;  %s824_s18 = sadd.s32 1, %s2046_s11  ;;  %s826_s19 = sadd.s32 2, %s2046_s11  ;;  %v1731_v4 = vld [vmem:[%s1854_s29] sm:$0xff]  }
  0x61   : > { %v640_v21 = vsel %vm345_vm5, %v639_v19, %v622_v11  ;;  %s2053_s22 = sld [smem:[#allocation3 + %s824_s18]]  ;;  %s832_s10 = sadd.s32 5, %s2046_s11 }
  0x62   : > { %2592 = sst [smem:[#allocation33_spill]] %s1997_s5  ;;  %s587_s15 = scalar_lea.vmem %s1863_s7, %s1997_s5  ;;  %v634_v14 = vsel %vm347_vm6, %v633_v12, %v604_v59 }
  0x63   : > { %v588_v8 = vld [vmem:[%s587_s15] sm:$0x1]  ;;  %v635_v17 = vsel %vm349_vm7, %v634_v14, %v607_v63  ;;  %s2056_s15 = sld [smem:[#allocation3 + %s826_s19]]  ;;  %s830_s5 = sadd.s32 4, %s2046_s11 }
  0x64   : > { %2593 = sst [smem:[#allocation34_spill]] %s2000_s12  ;;  %s589_s9 = scalar_lea.vmem %s1863_s7, %s2000_s12  ;;  %v625_v13 = vrot.slane %v588_v8, 3  ;;  %v636_v20 = vsel %vm351_vm8, %v635_v17, %v610_v1 }
  0x65   : > { %v590_v9 = vld [vmem:[%s589_s9] sm:$0x1]  ;;  %s828_s9 = sadd.s32 3, %s2046_s11  ;;  %s2062_s16 = sld [smem:[#allocation3 + %s830_s5]] }
  0x66   : > { %v628_v16 = vrot.slane %v590_v9, 2  ;;  %v641_v22 = vsel %vm347_vm6, %v640_v21, %v625_v13  ;;  %s2059_s12 = sld [smem:[#allocation3 + %s828_s9]]  ;;  %s834_s28 = sadd.s32 6, %s2046_s11 }
  0x67   : > { %2595 = sst [smem:[#allocation35_spill]] %s2053_s22  ;;  %s836_s20 = sadd.s32 7, %s2046_s11 }
  0x68   : > { %v642_v23 = vsel %vm349_vm7, %v641_v22, %v628_v16  ;;  %s2065_s25 = sld [smem:[#allocation3 + %s832_s10]]  ;;  %s838_s9 = sadd.s32 8, %s2046_s11 }
  0x69   : > { %v643_v24 = vpack.c.bf16 %v642_v23, %v636_v20  ;;  %2596 = sst [smem:[#allocation36_spill]] %s2056_s15  ;;  %s840_s6 = sadd.s32 9, %s2046_s11 }
  0x6a   : > { %s2068_s18 = sld [smem:[#allocation3 + %s834_s28]]  ;;  %s842_s10 = sadd.s32 10, %s2046_s11 }
  0x6b   : > { %645 = vrot.lane.b32.xlu1 %v643_v24, %s2594_s1  ;;  %2598 = sst [smem:[#allocation38_spill]] %s2062_s16  ;;  %s844_s13 = sadd.s32 11, %s2046_s11 }
  0x6c   : > { %2597 = sst [smem:[#allocation37_spill]] %s2059_s12  ;;  %s846_s24 = sadd.s32 12, %s2046_s11 }
  0x6d   : > { %s2071_s19 = sld [smem:[#allocation3 + %s836_s20]]  ;;  %s850_s26 = sadd.s32 14, %s2046_s11 }
  0x6e   : > { %2599 = sst [smem:[#allocation39_spill]] %s2065_s25  ;;  %s854_s14 = scalar_lea.vmem %s1863_s7, %s2053_s22 }
  0x6f   : > { %s2074_s5 = sld [smem:[#allocation3 + %s838_s9]]  ;;  %s848_s9 = sadd.s32 13, %s2046_s11  ;;  %v855_v26 = vld [vmem:[%s854_s14] sm:$0x1] }
  0x70   : > { %2600 = sst [smem:[#allocation40_spill]] %s2068_s18  ;;  %s860_s30 = scalar_lea.vmem %s1863_s7, %s2062_s16  ;;  %v883_v30 = vrot.slane %v855_v26, 7 }
  0x71   : > { %s2077_s17 = sld [smem:[#allocation3 + %s840_s6]]  ;;  %v861_v29 = vld [vmem:[%s860_s30] sm:$0x1]  ;;  %s864_s11 = scalar_lea.vmem %s1863_s7, %s2068_s18 }
  0x72   : > { %s2080_s28 = sld [smem:[#allocation3 + %s842_s10]]  ;;  %s852_s10 = scalar_lea.vmem %s1863_s7, %s2050_s8  ;;  %v865_v33 = vld [vmem:[%s864_s11] sm:$0x1]  ;;  %v892_v35 = vrot.slane %v861_v29, 4 }
  0x73   : > { %2601 = sst [smem:[#allocation41_spill]] %s2071_s19  ;;  %v853_v25 = vld [vmem:[%s852_s10] sm:$0x1]  ;;  %s866_s14 = scalar_lea.vmem %s1863_s7, %s2071_s19  ;;  %v898_v42 = vrot.slane %v865_v33, 2 }
  0x74   : > { %s2083_s20 = sld [smem:[#allocation3 + %s844_s13]]  ;;  %s856_s13 = scalar_lea.vmem %s1863_s7, %s2056_s15  ;;  %v867_v36 = vld [vmem:[%s866_s14] sm:$0x1]  ;;  %v921_v39 = vsel %vm339_vm2, %v853_v25, %v883_v30 }
  0x75   : > { %2602 = sst [smem:[#allocation42_spill]] %s2074_s5  ;;  %v857_v27 = vld [vmem:[%s856_s13] sm:$0x1]  ;;  %v901_v43 = vrot.slane %v867_v36, 1  ;;  %s2138_s14 = sadd.s32 384, %s1832_s21 }
  0x76   : > { %s2086_s2 = sld [smem:[#allocation3 + %s846_s24]]  ;;  %s858_s24 = scalar_lea.vmem %s1863_s7, %s2059_s12  ;;  %v886_v31 = vrot.slane %v857_v27, 6 }
  0x77   : > { %2603 = sst [smem:[#allocation43_spill]] %s2077_s17  ;;  %v859_v28 = vld [vmem:[%s858_s24] sm:$0x1]  ;;  %s870_s30 = scalar_lea.vmem %s1863_s7, %s2077_s17 }
  0x78   : > { %2604 = sst [smem:[#allocation44_spill]] %s2080_s28  ;;  %v889_v34 = vrot.slane %v859_v28, 5  ;;  %s872_s10 = scalar_lea.vmem %s1863_s7, %s2080_s28  ;;  %v871_v40 = vld [vmem:[%s870_s30] sm:$0x1]  ;;  %v922_v44 = vsel %vm341_vm3, %v921_v39, %v886_v31 }
  0x79   : > { %s2089_s6 = sld [smem:[#allocation3 + %s848_s9]]  ;;  %s868_s9 = scalar_lea.vmem %s1863_s7, %s2074_s5  ;;  %v873_v41 = vld [vmem:[%s872_s10] sm:$0x1]  ;;  %v904_v47 = vrot.slane %v871_v40, 7 }
  0x7a   : > { %2605 = sst [smem:[#allocation45_spill]] %s2083_s20  ;;  %v869_v37 = vld [vmem:[%s868_s9] sm:$0x1]  ;;  %s874_s13 = scalar_lea.vmem %s1863_s7, %s2083_s20  ;;  %v907_v48 = vrot.slane %v873_v41, 6  ;;  %v923_v49 = vsel %vm343_vm4, %v922_v44, %v889_v34 }
  0x7b   : > { %s2092_s27 = sld [smem:[#allocation3 + %s850_s26]]  ;;  %s862_s26 = scalar_lea.vmem %s1863_s7, %s2065_s25  ;;  %v875_v45 = vld [vmem:[%s874_s13] sm:$0x1]  ;;  %v924_v54 = vsel %vm345_vm5, %v923_v49, %v892_v35  ;;  %v928_v57 = vsel %vm339_vm2, %v869_v37, %v904_v47 }
  0x7c   : > { %2606 = sst [smem:[#allocation46_spill]] %s2086_s2  ;;  %v863_v32 = vld [vmem:[%s862_s26] sm:$0x1]  ;;  %s876_s24 = scalar_lea.vmem %s1863_s7, %s2086_s2  ;;  %v910_v52 = vrot.slane %v875_v45, 5  ;;  %v929_v60 = vsel %vm341_vm3, %v928_v57, %v907_v48 }
  0x7d   : > { %v895_v38 = vrot.slane %v863_v32, 3  ;;  %v877_v46 = vld [vmem:[%s876_s24] sm:$0x1]  ;;  %s2141_s9 = sld [smem:[#allocation3 + %s2138_s14]]  ;;  %s1115_s30 = sadd.s32 1, %s2138_s14 }
  0x7e   : > { %v913_v53 = vrot.slane %v877_v46, 4  ;;  %v930_v61 = vsel %vm343_vm4, %v929_v60, %v910_v52  ;;  %s2540_s10 = smov 112   ;;  %s2146_s13 = sld [smem:[#allocation3 + %s1115_s30]] }
  0x7f   : > { %2607 = sst [smem:[#allocation47_spill]] %s2089_s6  ;;  %s878_s26 = scalar_lea.vmem %s1863_s7, %s2089_s6  ;;  %v925_v56 = vsel %vm347_vm6, %v924_v54, %v895_v38 }
  0x80   : > { %v879_v50 = vld [vmem:[%s878_s26] sm:$0x1]  ;;  %v926_v59 = vsel %vm349_vm7, %v925_v56, %v898_v42  ;;  %v931_v63 = vsel %vm345_vm5, %v930_v61, %v913_v53  ;;  %s1117_s21 = sadd.s32 2, %s2138_s14  ;;  %s1119_s26 = sadd.s32 3, %s2138_s14 }
  0x81   : > { %2608 = sst [smem:[#allocation48_spill]] %s2092_s27  ;;  %s880_s11 = scalar_lea.vmem %s1863_s7, %s2092_s27  ;;  %v916_v55 = vrot.slane %v879_v50, 3  ;;  %v927_v62 = vsel %vm351_vm8, %v926_v59, %v901_v43 }
  0x82   : > { %v881_v51 = vld [vmem:[%s880_s11] sm:$0x1]  ;;  %s2149_s24 = sld [smem:[#allocation3 + %s1117_s21]]  ;;  %s1121_s27 = sadd.s32 4, %s2138_s14 }
  0x83   : > { %v919_v58 = vrot.slane %v881_v51, 2  ;;  %v932_v1 = vsel %vm347_vm6, %v931_v63, %v916_v55  ;;  %s2152_s11 = sld [smem:[#allocation3 + %s1119_s26]]  ;;  %s1123_s2 = sadd.s32 5, %s2138_s14  ;;  %v1730_v55 = vld [vmem:[%s1854_s29] sm:$0xff]  }
  0x84   : > { %s2155_s6 = sld [smem:[#allocation3 + %s1121_s27]]  ;;  %s2544_s20 = smov 104  }
  0x85   : > { %v933_v2 = vsel %vm349_vm7, %v932_v1, %v919_v58  ;;  %s2159_s30 = sld [smem:[#allocation3 + %s1123_s2]]  ;;  %s1127_s28 = sadd.s32 7, %s2138_s14 }
  0x86   : > { %v934_v3 = vpack.c.bf16 %v933_v2, %v927_v62  ;;  %s2165_s26 = sld [smem:[#allocation3 + %s1127_s28]]  ;;  %s1129_s27 = sadd.s32 8, %s2138_s14 }
  0x87   : > { %s2168_s17 = sld [smem:[#allocation3 + %s1129_s27]]  ;;  %s1133_s2 = sadd.s32 10, %s2138_s14 }
  0x88   : > { %936 = vrot.lane.b32.xlu1 %v934_v3, %s2540_s10  ;;  %s1125_s10 = sadd.s32 6, %s2138_s14  ;;  %s1135_s19 = sadd.s32 11, %s2138_s14 }
  0x89   : > { %s2162_s21 = sld [smem:[#allocation3 + %s1125_s10]]  ;;  %s1137_s18 = sadd.s32 12, %s2138_s14 }
  0x8a   : > { %s2174_s10 = sld [smem:[#allocation3 + %s1133_s2]]  ;;  %s1139_s27 = sadd.s32 13, %s2138_s14 }
  0x8b   : > { %s2177_s28 = sld [smem:[#allocation3 + %s1135_s19]]  ;;  %s1141_s16 = sadd.s32 14, %s2138_s14 }
  0x8c   : > { %1234 = vrot.lane.b32.xlu1 %v1731_v4, %s2544_s20  ;;  %s1131_s20 = sadd.s32 9, %s2138_s14  ;;  %s2180_s25 = sld [smem:[#allocation3 + %s1137_s18]] }
  0x8d   : > { %s2171_s5 = sld [smem:[#allocation3 + %s1131_s20]]  ;;  %s1143_s2 = scalar_lea.vmem %s1863_s7, %s2141_s9 }
  0x8e   : > { %s2183_s20 = sld [smem:[#allocation3 + %s1139_s27]]  ;;  %s1145_s15 = scalar_lea.vmem %s1863_s7, %s2146_s13  ;;  %v1144_v5 = vld [vmem:[%s1143_s2] sm:$0x1] }
  0x8f   : > { %s2186_s12 = sld [smem:[#allocation3 + %s1141_s16]]  ;;  %s1147_s19 = scalar_lea.vmem %s1863_s7, %s2149_s24  ;;  %v1146_v6 = vld [vmem:[%s1145_s15] sm:$0x1] }
  0x90   : > { %v1148_v7 = vld [vmem:[%s1147_s19] sm:$0x1]  ;;  %s1149_s18 = scalar_lea.vmem %s1863_s7, %s2152_s11  ;;  %s1151_s22 = scalar_lea.vmem %s1863_s7, %s2155_s6  ;;  %v1174_v10 = vrot.slane %v1146_v6, 7 }
  0x91   : > { %2609 = sst [smem:[#allocation49_spill]] %s2177_s28  ;;  %v1150_v8 = vld [vmem:[%s1149_s18] sm:$0x1]  ;;  %s1153_s16 = scalar_lea.vmem %s1863_s7, %s2159_s30  ;;  %v1177_v11 = vrot.slane %v1148_v7, 6 }
  0x92   : > { %2610 = sst [smem:[#allocation50_spill]] %s2180_s25  ;;  %v1152_v9 = vld [vmem:[%s1151_s22] sm:$0x1]  ;;  %s1155_s14 = scalar_lea.vmem %s1863_s7, %s2162_s21  ;;  %v1180_v14 = vrot.slane %v1150_v8, 5  ;;  %v1212_v19 = vsel %vm339_vm2, %v1144_v5, %v1174_v10 }
  0x93   : > { %v1154_v12 = vld [vmem:[%s1153_s16] sm:$0x1]  ;;  %s1157_s15 = scalar_lea.vmem %s1863_s7, %s2165_s26  ;;  %s1159_s27 = scalar_lea.vmem %s1863_s7, %s2168_s17  ;;  %v1183_v15 = vrot.slane %v1152_v9, 4  ;;  %v1213_v24 = vsel %vm341_vm3, %v1212_v19, %v1177_v11 }
  0x94   : > { %2611 = sst [smem:[#allocation51_spill]] %s2183_s20  ;;  %v1156_v13 = vld [vmem:[%s1155_s14] sm:$0x1]  ;;  %s1161_s22 = scalar_lea.vmem %s1863_s7, %s2171_s5  ;;  %v1186_v18 = vrot.slane %v1154_v12, 3  ;;  %v1214_v29 = vsel %vm343_vm4, %v1213_v24, %v1180_v14 }
  0x95   : > { %2612 = sst [smem:[#allocation52_spill]] %s2186_s12  ;;  %v1158_v16 = vld [vmem:[%s1157_s15] sm:$0x1]  ;;  %s1163_s2 = scalar_lea.vmem %s1863_s7, %s2174_s10  ;;  %v1189_v22 = vrot.slane %v1156_v13, 2  ;;  %v1215_v34 = vsel %vm345_vm5, %v1214_v29, %v1183_v15 }
  0x96   : > { %v1160_v17 = vld [vmem:[%s1159_s27] sm:$0x1]  ;;  %s1165_s19 = scalar_lea.vmem %s1863_s7, %s2177_s28  ;;  %s1167_s18 = scalar_lea.vmem %s1863_s7, %s2180_s25  ;;  %v1192_v23 = vrot.slane %v1158_v16, 1  ;;  %v1216_v36 = vsel %vm347_vm6, %v1215_v34, %v1186_v18 }
  0x97   : > { %v1162_v20 = vld [vmem:[%s1161_s22] sm:$0x1]  ;;  %s1169_s16 = scalar_lea.vmem %s1863_s7, %s2183_s20  ;;  %s1171_s14 = scalar_lea.vmem %s1863_s7, %s2186_s12  ;;  %v1217_v39 = vsel %vm349_vm7, %v1216_v36, %v1189_v22 }
  0x98   : > { %v1164_v21 = vld [vmem:[%s1163_s2] sm:$0x1]  ;;  %v1195_v27 = vrot.slane %v1162_v20, 7  ;;  %v1218_v42 = vsel %vm351_vm8, %v1217_v39, %v1192_v23  ;;  %s2613_s7 = smov 104   ;;  %s2614_s15 = sshll.u32 %s2668_s0, 3  ;;  %vm790_vm8 = vcmask 127044  }
  0x99   : > { %v1166_v25 = vld [vmem:[%s1165_s19] sm:$0x1]  ;;  %v1198_v28 = vrot.slane %v1164_v21, 6  ;;  %s212_s2 = scalar_lea.vmem %s2615_s3, %s2614_s15  ;;  %s2616_s19 = smov 112  }
  0x9a   : > { %v1168_v26 = vld [vmem:[%s1167_s18] sm:$0x1]  ;;  %v1201_v32 = vrot.slane %v1166_v25, 5  ;;  %v1219_v37 = vsel %vm339_vm2, %v1160_v17, %v1195_v27  ;;  %s2617_s29 = sshll.u32 %s2668_s0, 4  ;;  %s2619_s0 = sld [smem:[#allocation6_spill]]  ;;  %vm509_vm2 = vcmask 63494  }
  0x9b   : > { %v1170_v30 = vld [vmem:[%s1169_s16] sm:$0x1]  ;;  %v1204_v33 = vrot.slane %v1168_v26, 4  ;;  %v1220_v40 = vsel %vm341_vm3, %v1219_v37, %v1198_v28  ;;  %s2622_s15 = sld [smem:[#allocation9_spill]]  ;;  %s2623_s27 = sld [smem:[#allocation10_spill]]  ;;  %vm512_vm3 = vcmask 64519  }
  0x9c   : > { %v1172_v31 = vld [vmem:[%s1171_s14] sm:$0x1]  ;;  %v1207_v35 = vrot.slane %v1170_v30, 3  ;;  %v1221_v41 = vsel %vm343_vm4, %v1220_v40, %v1201_v32  ;;  %s2254_s14 = scalar_lea.vmem %s2618_s4, %s2617_s29  ;;  %s2625_s29 = sld [smem:[#allocation12_spill]]  ;;  %vm778_vm4 = vcmask 122944  }
  0x9d   : > { %v1210_v38 = vrot.slane %v1172_v31, 2  ;;  %v1222_v43 = vsel %vm345_vm5, %v1221_v41, %v1204_v33  ;;  %v2240_v56 = vld [vmem:[%s212_s2] sm:$0xff]   ;;  %s490_s22 = scalar_lea.vmem %s2254_s14, %s1844_s23  ;;  %s2624_s2 = sld [smem:[#allocation11_spill]]  ;;  %vm781_vm5 = vcmask 123969  }
  0x9e   : > { %v1223_v44 = vsel %vm347_vm6, %v1222_v43, %v1207_v35  ;;  %v221_v57 = vunpack.c.l.bf16 %v2240_v56  ;;  %v222_v58 = vunpack.c.h.bf16 %v2240_v56  ;;  %1670 = vmatpush3.bf16.msra.mxu1 %v2240_v56  ;;  %s2626_s3 = sld [smem:[#allocation13_spill]]  ;;  %s2627_s4 = sld [smem:[#allocation14_spill]]  ;;  %vm784_vm6 = vcmask 124994  }
  0x9f   : > { %v1224_v45 = vsel %vm349_vm7, %v1223_v44, %v1210_v38  ;;  %1675 = vmatprep.subr.bf16.mxu1 %v1788_v0  ;;  %s2629_s20 = sld [smem:[#allocation16_spill]]  ;;  %s2632_s25 = sld [smem:[#allocation19_spill]]  ;;  %vm787_vm7 = vcmask 126019  }
  0xa0   : > { %v1225_v46 = vpack.c.bf16 %v1224_v45, %v1218_v42  ;;  %v224_v59 = vsel %vm223_vm11, %v221_v57, 0.0  ;;  %v225_v60 = vsel %vm223_vm11, %v222_v58, 0.0  ;;  %s2649_s28 = sld [smem:[#allocation36_spill]] }
  0xa1   : > { %v226_v61 = vadd.f32 %v225_v60, %v224_v59  ;;  %s502_s23 = scalar_lea.vmem %s2254_s14, %s2622_s15  ;;  %s505_s12 = scalar_lea.vmem %s2254_s14, %s2623_s27 }
  0xa2   : > { %1227 = vrot.lane.b32.xlu1 %v1225_v46, %s2613_s7  ;;  %s511_s15 = scalar_lea.vmem %s2254_s14, %s2625_s29 }
  0xa3   : > { %v227_v62 = vrot.slane %v226_v61, 4 }
  0xa4   : > { %s514_s27 = scalar_lea.vmem %s2254_s14, %s2626_s3  ;;  %s1793_s3 = smov 8  }
  0xa5   : > { %v228_v63 = vadd.f32 %v227_v62, %v226_v61 }
  0xa7   : > { %v229_v1 = vrot.slane %v228_v63, 2 }
  0xa9   : > { %v230_v2 = vadd.f32 %v229_v1, %v228_v63 }
  0xab   : > { %v231_v3 = vrot.slane %v230_v2, 1 }
  0xad   : > { %v232_v4 = vadd.f32 %v231_v3, %v230_v2 }
  0xaf   : > { %v234_v5 = vmul.f32 0.0625, %v232_v4 }
  0xb1   : > { %235 = vst.msk [vmem:[%s2254_s14] sm:$0xff] %vm223_vm11, %v234_v5  ;;  %236 = vst.msk [vmem:[%s2254_s14 + $0x8] sm:$0xff] %vm223_vm11, %v234_v5  ;;  %vm799_vm11 = vcmask 130119  }
  0xb6   : > { %v653_v12 = vpop.permute.xlu1 %652 }
  0xb7   : > { %v658_v15 = vsel %vm365_vm1, %v653_v12, 0 }
  0xdd   : > { %v646_v17 = vpop.permute.xlu1 %645 }
  0xfa   : > { %v937_v19 = vpop.permute.xlu1 %936 }
  0xfe   : > { %v1235_v21 = vpop.permute.xlu1 %1234 }
  0xff   : > { %v1240_v22 = vsel %vm365_vm1, %v1235_v21, 0 }
 0x114   : > { %v1228_v23 = vpop.permute.xlu1 %1227 }
 0x11c   : > { %v406_v47 = vpop.f32.mrb[0].mxu0 }
 0x11d   : > { %v413_v48 = vmul.f32 0.35355338, %v406_v47  ;;  %v1667_v49 = vpop.f32.mrb[1].mxu0 }
 0x11e   : > { %v409_v50 = vpop.f32.mrb[2].mxu0 }
 0x11f   : > { %v414_v51 = vmul.f32 0.35355338, %v409_v50  ;;  %v1668_v52 = vpop.f32.mrb[3].mxu0  ;;  %v416_v53 = vsel %vm415_vm9, %v413_v48, -inf }
 0x120   : > { %417 = vmax.xlane.f32.xlu0 %v416_v53 }
 0x121   : > { %v420_v54 = vsel %vm419_vm10, %v414_v51, -inf }
 0x124   : > { %421 = vmax.xlane.f32.xlu0 %v420_v54 }
 0x13a   : > { %943 = vrot.lane.b32.xlu0 %v1730_v55, %s2616_s19 }
 0x1ad   : > { %v418_v6 = vpop.xlane.xlu0 %417 }
 0x1ae   : > { %v423_v7 = vsub.f32 %v413_v48, %v418_v6 }
 0x1b0   : > { %v425_v8 = vmul.f32 1.442695, %v423_v7 }
 0x1b1   : > { %v422_v9 = vpop.xlane.xlu0 %421 }
 0x1b2   : > { %v424_v10 = vsub.f32 %v414_v51, %v422_v9  ;;  %1733 = vpow2.f32 %v425_v8 }
 0x1b4   : > { %v427_v11 = vmul.f32 1.442695, %v424_v10 }
 0x1b5   : > { %v944_v18 = vpop.permute.xlu0 %943 }
 0x1b6   : > { %1735 = vpow2.f32 %v427_v11  ;;  %v949_v20 = vsel %vm365_vm1, %v944_v18, 0 }
 0x1bc   : > { %v2260_v13 = vpop.eup %1733 }
 0x1c0   : > { %v2262_v14 = vpop.eup %1735 }
 0x1c1   : > { %v435_v16 = vpack.c.bf16 %v2262_v14, %v2260_v13 }
 0x1c3   : > { %1672 = vmatmul.mubr.msk.bf16.vlgmr.msra.gmra.mrb[0].mxu1 %vm415_vm9, %v435_v16 }
 0x1c4   : > { %1676 = vmatpush3.bf16.xpose.msra.mxu1 %v658_v15  ;;  %1677 = vmatprep.mubr.msk.bf16.mxu1 %vm1789_vm0, %v1788_v0 }
 0x1c5   : > { %1687 = vmatprep.subr.bf16.mxu1 %v1788_v0 }
 0x1cb   : > { %1678 = vmatmul.mubr.msk.bf16.vlgmr.msra.gmra.mrb[4].mxu1 %vm365_vm1, %v646_v17 }
 0x1cc   : > { %1688 = vmatpush3.bf16.xpose.msra.mxu1 %v949_v20  ;;  %1689 = vmatprep.mubr.msk.bf16.mxu1 %vm1789_vm0, %v1788_v0 }
 0x1cd   : > { %1699 = vmatprep.subr.bf16.mxu1 %v1788_v0 }
 0x1d3   : > { %1690 = vmatmul.mubr.msk.bf16.vlgmr.msra.gmra.mrb[8].mxu1 %vm365_vm1, %v937_v19 }
 0x1d4   : > { %1700 = vmatpush3.bf16.xpose.msra.mxu1 %v1240_v22  ;;  %1701 = vmatprep.mubr.msk.bf16.mxu1 %vm1789_vm0, %v1788_v0 }
 0x1db   : > { %1702 = vmatmul.mubr.msk.bf16.vlgmr.msra.gmra.mrb[12].mxu1 %vm365_vm1, %v1228_v23  ;;  %vm506_vm1 = vcmask 62469  }
 0x296   : > { %v2281_v24 = vpop.f32.mrb[0].mxu1 }
 0x297   : > { %v1673_v25 = vpop.f32.mrb[1].mxu1 }
 0x298   : > { %v2283_v26 = vpop.f32.mrb[2].mxu1 }
 0x299   : > { %v1674_v27 = vpop.f32.mrb[3].mxu1 }
 0x29e   : > { %v694_v28 = vpop.f32.mrb[4].mxu1 }
 0x29f   : > { %v701_v29 = vmul.f32 0.35355338, %v694_v28  ;;  %v1679_v30 = vpop.f32.mrb[5].mxu1  ;;  %v429_v28 = vsel %vm415_vm9, %v2260_v13, 0.0 }
 0x2a0   : > { %v697_v31 = vpop.f32.mrb[6].mxu1 }
 0x2a1   : > { %v702_v32 = vmul.f32 0.35355338, %v697_v31  ;;  %v1680_v33 = vpop.f32.mrb[7].mxu1  ;;  %v703_v34 = vsel %vm415_vm9, %v701_v29, -inf }
 0x2a2   : > { %704 = vmax.xlane.f32.xlu1 %v703_v34 }
 0x2a3   : > { %v706_v35 = vsel %vm419_vm10, %v702_v32, -inf }
 0x2a4   : > { %707 = vmax.xlane.f32.xlu0 %v706_v35 }
 0x2a6   : > { %v985_v36 = vpop.f32.mrb[8].mxu1 }
 0x2a7   : > { %v992_v37 = vmul.f32 0.35355338, %v985_v36  ;;  %v1691_v38 = vpop.f32.mrb[9].mxu1 }
 0x2a8   : > { %v988_v39 = vpop.f32.mrb[10].mxu1 }
 0x2a9   : > { %v993_v40 = vmul.f32 0.35355338, %v988_v39  ;;  %v1692_v41 = vpop.f32.mrb[11].mxu1  ;;  %v994_v42 = vsel %vm415_vm9, %v992_v37, -inf }
 0x2aa   : > { %995 = vmax.xlane.f32.xlu1 %v994_v42 }
 0x2ab   : > { %v997_v43 = vsel %vm419_vm10, %v993_v40, -inf }
 0x2ae   : > { %998 = vmax.xlane.f32.xlu1 %v997_v43  ;;  %v1276_v44 = vpop.f32.mrb[12].mxu1 }
 0x2af   : > { %v1283_v45 = vmul.f32 0.35355338, %v1276_v44  ;;  %v1703_v46 = vpop.f32.mrb[13].mxu1 }
 0x2b0   : > { %v1279_v47 = vpop.f32.mrb[14].mxu1 }
 0x2b1   : > { %v1284_v48 = vmul.f32 0.35355338, %v1279_v47  ;;  %v1704_v49 = vpop.f32.mrb[15].mxu1  ;;  %v1285_v50 = vsel %vm415_vm9, %v1283_v45, -inf }
 0x2b2   : > { %1286 = vmax.xlane.f32.xlu1 %v1285_v50 }
 0x2b3   : > { %v1288_v51 = vsel %vm419_vm10, %v1284_v48, -inf }
 0x2b6   : > { %1289 = vmax.xlane.f32.xlu1 %v1288_v51 }
 0x2ba   : > { %722 = vrot.lane.b32.xlu0 %v2240_v56, %s2594_s1  ;;  %s2620_s1 = sld [smem:[#allocation7_spill]] }
 0x2be   : > { %1304 = vrot.lane.b32.xlu0 %v2240_v56, %s2613_s7  ;;  %s2621_s7 = sld [smem:[#allocation8_spill]] }
 0x2c0   : > { %s496_s18 = scalar_lea.vmem %s2254_s14, %s2620_s1  ;;  %s2630_s1 = sld [smem:[#allocation17_spill]] }
 0x2c4   : > { %s499_s16 = scalar_lea.vmem %s2254_s14, %s2621_s7  ;;  %s508_s7 = scalar_lea.vmem %s2254_s14, %s2624_s2 }
 0x2c7   : > { %1013 = vrot.lane.b32.xlu1 %v2240_v56, %s2616_s19  ;;  %s493_s19 = scalar_lea.vmem %s2254_s14, %s2619_s0  ;;  %s2628_s0 = sld [smem:[#allocation15_spill]] }
 0x2cd   : > { %s518_s2 = scalar_lea.vmem %s2254_s14, %s2628_s0  ;;  %s2636_s0 = sld [smem:[#allocation23_spill]] }
 0x32f   : > { %v705_v52 = vpop.xlane.xlu1 %704 }
 0x330   : > { %v709_v53 = vsub.f32 %v701_v29, %v705_v52 }
 0x331   : > { %v708_v54 = vpop.xlane.xlu0 %707 }
 0x332   : > { %v711_v55 = vmul.f32 1.442695, %v709_v53  ;;  %v710_v57 = vsub.f32 %v702_v32, %v708_v54 }
 0x334   : > { %1737 = vpow2.f32 %v711_v55  ;;  %v713_v58 = vmul.f32 1.442695, %v710_v57 }
 0x335   : > { %v723_v59 = vpop.permute.xlu0 %722 }
 0x336   : > { %1739 = vpow2.f32 %v713_v58  ;;  %1682 = vmatpush3.bf16.msra.mxu0 %v723_v59 }
 0x337   : > { %v996_v60 = vpop.xlane.xlu1 %995  ;;  %1693 = vmatprep.subr.bf16.mxu0 %v1788_v0 }
 0x338   : > { %v1000_v61 = vsub.f32 %v992_v37, %v996_v60 }
 0x339   : > { %v1305_v21 = vpop.permute.xlu0 %1304 }
 0x33a   : > { %v1002_v62 = vmul.f32 1.442695, %v1000_v61 }
 0x33b   : > { %v999_v63 = vpop.xlane.xlu1 %998 }
 0x33c   : > { %1741 = vpow2.f32 %v1002_v62  ;;  %v1001_v1 = vsub.f32 %v993_v40, %v999_v63 }
 0x33e   : > { %v1738_v2 = vpop.eup %1737  ;;  %v1004_v56 = vmul.f32 1.442695, %v1001_v1 }
 0x33f   : > { %v1287_v3 = vpop.xlane.xlu1 %1286  ;;  %v715_v4 = vsel %vm415_vm9, %v1738_v2, 0.0 }
 0x340   : > { %v1740_v5 = vpop.eup %1739  ;;  %1743 = vpow2.f32 %v1004_v56  ;;  %v1291_v6 = vsub.f32 %v1283_v45, %v1287_v3  ;;  %716 = vadd.xlane.f32.xlu0 %v715_v4 }
 0x341   : > { %v718_v7 = vsel %vm419_vm10, %v1740_v5, 0.0  ;;  %v721_v8 = vpack.c.bf16 %v1740_v5, %v1738_v2 }
 0x342   : > { %v1293_v9 = vmul.f32 1.442695, %v1291_v6  ;;  %719 = vadd.xlane.f32.xlu1 %v718_v7 }
 0x343   : > { %v1290_v10 = vpop.xlane.xlu1 %1289  ;;  %1684 = vmatmul.mubr.msk.bf16.vlgmr.msra.gmra.mrb[4].mxu0 %vm415_vm9, %v721_v8 }
 0x344   : > { %1745 = vpow2.f32 %v1293_v9  ;;  %v1292_v11 = vsub.f32 %v1284_v48, %v1290_v10  ;;  %1695 = vmatprep.mubr.msk.bf16.mxu0 %vm1789_vm0, %v1788_v0 }
 0x346   : > { %v1742_v12 = vpop.eup %1741  ;;  %v1295_v15 = vmul.f32 1.442695, %v1292_v11 }
 0x347   : > { %v1006_v16 = vsel %vm415_vm9, %v1742_v12, 0.0  ;;  %v1014_v17 = vpop.permute.xlu1 %1013 }
 0x348   : > { %1747 = vpow2.f32 %v1295_v15  ;;  %1007 = vadd.xlane.f32.xlu0 %v1006_v16  ;;  %1694 = vmatpush3.bf16.msra.mxu0 %v1014_v17 }
 0x349   : > { %1705 = vmatprep.subr.bf16.mxu0 %v1788_v0 }
 0x34a   : > { %v1744_v18 = vpop.eup %1743 }
 0x34b   : > { %v1009_v19 = vsel %vm419_vm10, %v1744_v18, 0.0  ;;  %v1012_v20 = vpack.c.bf16 %v1744_v18, %v1742_v12 }
 0x34c   : > { %1010 = vadd.xlane.f32.xlu0 %v1009_v19 }
 0x34d   : > { %1696 = vmatmul.mubr.msk.bf16.vlgmr.msra.gmra.mrb[8].mxu0 %vm415_vm9, %v1012_v20 }
 0x34e   : > { %v1746_v22 = vpop.eup %1745  ;;  %1706 = vmatpush3.bf16.msra.mxu0 %v1305_v21  ;;  %1707 = vmatprep.mubr.msk.bf16.mxu0 %vm1789_vm0, %v1788_v0  ;;  %v432_v0 = vsel %vm419_vm10, %v2262_v14, 0.0  ;;  %vm503_vm0 = vcmask 61444  }
 0x34f   : > { %v1297_v23 = vsel %vm415_vm9, %v1746_v22, 0.0 }
 0x350   : > { %1298 = vadd.xlane.f32.xlu1 %v1297_v23 }
 0x352   : > { %v1748_v25 = vpop.eup %1747 }
 0x353   : > { %v1300_v27 = vsel %vm419_vm10, %v1748_v25, 0.0  ;;  %v1303_v29 = vpack.c.bf16 %v1748_v25, %v1746_v22  ;;  %vm796_vm10 = vcmask 129094  }
 0x354   : > { %1301 = vadd.xlane.f32.xlu0 %v1300_v27  ;;  %430 = vadd.xlane.f32.xlu1 %v429_v28 }
 0x355   : > { %1708 = vmatmul.mubr.msk.bf16.vlgmr.msra.gmra.mrb[12].mxu0 %vm415_vm9, %v1303_v29  ;;  %vm793_vm9 = vcmask 128069  }
 0x358   : > { %433 = vadd.xlane.f32.xlu0 %v432_v0 }
 0x3cd   : > { %v717_v30 = vpop.xlane.xlu0 %716 }
 0x3cf   : > { %v720_v32 = vpop.xlane.xlu1 %719 }
 0x3d5   : > { %v1008_v31 = vpop.xlane.xlu0 %1007 }
 0x3d9   : > { %v1011_v13 = vpop.xlane.xlu0 %1010 }
 0x3dd   : > { %v1299_v33 = vpop.xlane.xlu1 %1298 }
 0x3e1   : > { %v431_v34 = vpop.xlane.xlu1 %430  ;;  %v1302_v35 = vpop.xlane.xlu0 %1301 }
 0x3e2   : > { %1749 = vrcp.f32 %v431_v34 }
 0x3e5   : > { %v434_v36 = vpop.xlane.xlu0 %433 }
 0x3e6   : > { %1751 = vrcp.f32 %v434_v36 }
 0x3e7   : > { %1753 = vrcp.f32 %v717_v30 }
 0x3e8   : > { %1755 = vrcp.f32 %v720_v32 }
 0x3e9   : > { %1757 = vrcp.f32 %v1008_v31 }
 0x3ea   : > { %1759 = vrcp.f32 %v1011_v13 }
 0x3eb   : > { %1761 = vrcp.f32 %v1299_v33 }
 0x3ec   : > { %v1750_v14 = vpop.eup %1749  ;;  %1763 = vrcp.f32 %v1302_v35 }
 0x3ed   : > { %v488_v37 = vmul.f32 %v1750_v14, %v2281_v24 }
 0x3ef   : > { %492 = vst.msk [vmem:[%s490_s22] sm:$0x1] %vm491_vm12, %v488_v37  ;;  %s2631_s22 = sld [smem:[#allocation18_spill]] }
 0x3f0   : > { %495 = vst.msk [vmem:[%s493_s19 - $0x1] sm:$0x2] %vm494_vm13, %v488_v37  ;;  %v1752_v24 = vpop.eup %1751  ;;  %s516_s19 = scalar_lea.vmem %s2254_s14, %s2627_s4  ;;  %s1794_s4 = smov 16  }
 0x3f1   : > { %498 = vst.msk [vmem:[%s496_s18 - $0x2] sm:$0x4] %vm497_vm14, %v488_v37  ;;  %v489_v38 = vmul.f32 %v1752_v24, %v2283_v26  ;;  %s520_s18 = scalar_lea.vmem %s2254_s14, %s2629_s20  ;;  %v1754_v26 = vpop.eup %1753  ;;  %s2635_s20 = sld [smem:[#allocation22_spill]] }
 0x3f2   : > { %501 = vst.msk [vmem:[%s499_s16 - $0x3] sm:$0x8] %vm500_vm15, %v488_v37  ;;  %s522_s16 = scalar_lea.vmem %s2254_s14, %s2630_s1  ;;  %v1756_v42 = vpop.eup %1755  ;;  %s2637_s1 = sld [smem:[#allocation24_spill]] }
 0x3f3   : > { %504 = vst.msk [vmem:[%s502_s23 - $0x4] sm:$0x10] %vm503_vm0, %v488_v37  ;;  %s526_s23 = scalar_lea.vmem %s2254_s14, %s2632_s25  ;;  %v1758_v46 = vpop.eup %1757  ;;  %s2634_s25 = sld [smem:[#allocation21_spill]] }
 0x3f4   : > { %507 = vst.msk [vmem:[%s505_s12 - $0x5] sm:$0x20] %vm506_vm1, %v488_v37  ;;  %s2633_s12 = sld [smem:[#allocation20_spill]]  ;;  %v1760_v52 = vpop.eup %1759 }
 0x3f5   : > { %510 = vst.msk [vmem:[%s508_s7 - $0x6] sm:$0x40] %vm509_vm2, %v488_v37  ;;  %s524_s29 = scalar_lea.vmem %s2254_s14, %s2631_s22  ;;  %v1762_v54 = vpop.eup %1761  ;;  %s1795_s7 = smov 24  }
 0x3f6   : > { %513 = vst.msk [vmem:[%s511_s15 - $0x7] sm:$0x80] %vm512_vm3, %v488_v37  ;;  %v1764_v59 = vpop.eup %1763  ;;  %s2638_s22 = sld [smem:[#allocation25_spill]]  ;;  %vm1090_vm3 = vcmask 195719  }
 0x3f7   : > { %515 = vst.msk [vmem:[%s514_s27] sm:$0x1] %vm491_vm12, %v489_v38  ;;  %s2639_s27 = sld [smem:[#allocation26_spill]]  ;;  %vm1069_vm12 = vcmask 188544  }
 0x3f8   : > { %517 = vst.msk [vmem:[%s516_s19 - $0x1] sm:$0x2] %vm494_vm13, %v489_v38  ;;  %vm1072_vm13 = vcmask 189569  }
 0x3f9   : > { %519 = vst.msk [vmem:[%s518_s2 - $0x2] sm:$0x4] %vm497_vm14, %v489_v38  ;;  %s780_s19 = scalar_lea.vmem %s2254_s14, %s2634_s25  ;;  %s2640_s2 = sld [smem:[#allocation27_spill]]  ;;  %vm1075_vm14 = vcmask 190594  }
 0x3fa   : > { %521 = vst.msk [vmem:[%s520_s18 - $0x3] sm:$0x8] %vm500_vm15, %v489_v38  ;;  %s777_s15 = scalar_lea.vmem %s2254_s14, %s2633_s12  ;;  %s783_s18 = scalar_lea.vmem %s2254_s14, %s2635_s20  ;;  %vm1078_vm15 = vcmask 191619  }
 0x3fb   : > { %523 = vst.msk [vmem:[%s522_s16 - $0x4] sm:$0x10] %vm503_vm0, %v489_v38  ;;  %s2641_s16 = sld [smem:[#allocation28_spill]]  ;;  %s2644_s25 = sld [smem:[#allocation31_spill]]  ;;  %vm1081_vm0 = vcmask 192644  }
 0x3fc   : > { %525 = vst.msk [vmem:[%s524_s29 - $0x5] sm:$0x20] %vm506_vm1, %v489_v38  ;;  %s786_s29 = scalar_lea.vmem %s2254_s14, %s2636_s0  ;;  %s792_s12 = scalar_lea.vmem %s2254_s14, %s2638_s22  ;;  %vm1084_vm1 = vcmask 193669  }
 0x3fd   : > { %527 = vst.msk [vmem:[%s526_s23 - $0x6] sm:$0x40] %vm509_vm2, %v489_v38  ;;  %s2642_s23 = sld [smem:[#allocation29_spill]]  ;;  %s2645_s20 = sld [smem:[#allocation32_spill]]  ;;  %vm1087_vm2 = vcmask 194694  }
 0x3fe   : > { %s795_s0 = scalar_lea.vmem %s2254_s14, %s2639_s27 }
 0x401   : > { %s805_s22 = scalar_lea.vmem %s2254_s14, %s2641_s16 }
 0x416   : > { %v762_v39 = vpop.f32.mrb[4].mxu0 }
 0x417   : > { %v771_v40 = vmul.f32 %v1754_v26, %v762_v39  ;;  %v1685_v41 = vpop.f32.mrb[5].mxu0 }
 0x418   : > { %v765_v43 = vpop.f32.mrb[6].mxu0 }
 0x419   : > { %v772_v44 = vmul.f32 %v1756_v42, %v765_v43  ;;  %774 = vrot.lane.b32.xlu1 %v771_v40, %s1793_s3  ;;  %v1686_v45 = vpop.f32.mrb[7].mxu0 }
 0x41b   : > { %802 = vrot.lane.b32.xlu0 %v772_v44, %s1793_s3  ;;  %s789_s3 = scalar_lea.vmem %s2254_s14, %s2637_s1  ;;  %s798_s1 = scalar_lea.vmem %s2254_s14, %s2640_s2 }
 0x41c   : > { %s811_s2 = scalar_lea.vmem %s2254_s14, %s2644_s25 }
 0x420   : > { %v1053_v47 = vpop.f32.mrb[8].mxu0 }
 0x421   : > { %v1062_v48 = vmul.f32 %v1758_v46, %v1053_v47  ;;  %v1697_v49 = vpop.f32.mrb[9].mxu0 }
 0x422   : > { %v1056_v50 = vpop.f32.mrb[10].mxu0 }
 0x423   : > { %1065 = vrot.lane.b32.xlu1 %v1062_v48, %s1794_s4  ;;  %v1698_v51 = vpop.f32.mrb[11].mxu0  ;;  %v1063_v53 = vmul.f32 %v1760_v52, %v1056_v50 }
 0x427   : > { %1093 = vrot.lane.b32.xlu1 %v1063_v53, %s1794_s4  ;;  %s2643_s4 = sld [smem:[#allocation30_spill]] }
 0x428   : > { %v1344_v55 = vpop.f32.mrb[12].mxu0 }
 0x429   : > { %v1353_v57 = vmul.f32 %v1762_v54, %v1344_v55  ;;  %v1709_v58 = vpop.f32.mrb[13].mxu0 }
 0x42a   : > { %v1347_v60 = vpop.f32.mrb[14].mxu0 }
 0x42b   : > { %v1354_v61 = vmul.f32 %v1764_v59, %v1347_v60  ;;  %1356 = vrot.lane.b32.xlu0 %v1353_v57, %s1795_s7  ;;  %v1710_v62 = vpop.f32.mrb[15].mxu0 }
 0x42d   : > { %1384 = vrot.lane.b32.xlu1 %v1354_v61, %s1795_s7  ;;  %s2646_s7 = sld [smem:[#allocation33_spill]]  ;;  %s809_s27 = scalar_lea.vmem %s2254_s14, %s2643_s4 }
 0x42e   : > { %s1068_s4 = scalar_lea.vmem %s2254_s14, %s2050_s8 }
 0x433   : > { %s815_s16 = scalar_lea.vmem %s2254_s14, %s2646_s7  ;;  %s1074_s7 = scalar_lea.vmem %s2254_s14, %s2649_s28 }
 0x48b   : > { %v775_v63 = vpop.permute.xlu1 %774 }
 0x48c   : > { %779 = vst.msk [vmem:[%s777_s15] sm:$0x1] %vm778_vm4, %v775_v63  ;;  %s2647_s15 = sld [smem:[#allocation34_spill]] }
 0x48d   : > { %782 = vst.msk [vmem:[%s780_s19 - $0x1] sm:$0x2] %vm781_vm5, %v775_v63  ;;  %s807_s19 = scalar_lea.vmem %s2254_s14, %s2642_s23  ;;  %v803_v1 = vpop.permute.xlu0 %802  ;;  %s2651_s23 = sld [smem:[#allocation38_spill]] }
 0x48e   : > { %785 = vst.msk [vmem:[%s783_s18 - $0x2] sm:$0x4] %vm784_vm6, %v775_v63  ;;  %s2648_s18 = sld [smem:[#allocation35_spill]] }
 0x48f   : > { %788 = vst.msk [vmem:[%s786_s29 - $0x3] sm:$0x8] %vm787_vm7, %v775_v63  ;;  %s813_s29 = scalar_lea.vmem %s2254_s14, %s2645_s20  ;;  %s2653_s20 = sld [smem:[#allocation40_spill]] }
 0x490   : > { %791 = vst.msk [vmem:[%s789_s3 - $0x4] sm:$0x10] %vm790_vm8, %v775_v63  ;;  %s2650_s3 = sld [smem:[#allocation37_spill]] }
 0x491   : > { %794 = vst.msk [vmem:[%s792_s12 - $0x5] sm:$0x20] %vm793_vm9, %v775_v63 }
 0x492   : > { %797 = vst.msk [vmem:[%s795_s0 - $0x6] sm:$0x40] %vm796_vm10, %v775_v63  ;;  %s817_s12 = scalar_lea.vmem %s2254_s14, %s2647_s15  ;;  %s2652_s0 = sld [smem:[#allocation39_spill]] }
 0x493   : > { %800 = vst.msk [vmem:[%s798_s1 - $0x7] sm:$0x80] %vm799_vm11, %v775_v63  ;;  %s2654_s1 = sld [smem:[#allocation41_spill]]  ;;  %s2655_s15 = sld [smem:[#allocation42_spill]]  ;;  %vm1381_vm11 = vcmask 261319  }
 0x494   : > { %806 = vst.msk [vmem:[%s805_s22] sm:$0x1] %vm778_vm4, %v803_v1  ;;  %s1071_s25 = scalar_lea.vmem %s2254_s14, %s2648_s18  ;;  %s2656_s22 = sld [smem:[#allocation43_spill]]  ;;  %vm1360_vm4 = vcmask 254144  }
 0x495   : > { %808 = vst.msk [vmem:[%s807_s19 - $0x1] sm:$0x2] %vm781_vm5, %v803_v1  ;;  %v1066_v2 = vpop.permute.xlu1 %1065  ;;  %s1080_s19 = scalar_lea.vmem %s2254_s14, %s2651_s23  ;;  %s2657_s18 = sld [smem:[#allocation44_spill]]  ;;  %vm1363_vm5 = vcmask 255169  }
 0x496   : > { %810 = vst.msk [vmem:[%s809_s27 - $0x2] sm:$0x4] %vm784_vm6, %v803_v1  ;;  %s1077_s8 = scalar_lea.vmem %s2254_s14, %s2650_s3  ;;  %s2658_s27 = sld [smem:[#allocation45_spill]]  ;;  %vm1366_vm6 = vcmask 256194  }
 0x497   : > { %812 = vst.msk [vmem:[%s811_s2 - $0x3] sm:$0x8] %vm787_vm7, %v803_v1  ;;  %s2659_s2 = sld [smem:[#allocation46_spill]]  ;;  %s2660_s3 = sld [smem:[#allocation47_spill]]  ;;  %vm1369_vm7 = vcmask 257219  }
 0x498   : > { %814 = vst.msk [vmem:[%s813_s29 - $0x4] sm:$0x10] %vm790_vm8, %v803_v1  ;;  %s1083_s28 = scalar_lea.vmem %s2254_s14, %s2652_s0  ;;  %s1086_s29 = scalar_lea.vmem %s2254_s14, %s2653_s20  ;;  %vm1372_vm8 = vcmask 258244  }
 0x499   : > { %816 = vst.msk [vmem:[%s815_s16 - $0x5] sm:$0x20] %vm793_vm9, %v803_v1  ;;  %s1089_s16 = scalar_lea.vmem %s2254_s14, %s2654_s1  ;;  %s2661_s23 = sld [smem:[#allocation48_spill]]  ;;  %v1094_v56 = vpop.permute.xlu1 %1093  ;;  %vm1375_vm9 = vcmask 259269  }
 0x49a   : > { %818 = vst.msk [vmem:[%s817_s12 - $0x6] sm:$0x40] %vm796_vm10, %v803_v1  ;;  %s1096_s12 = scalar_lea.vmem %s2254_s14, %s2655_s15  ;;  %s1359_s15 = scalar_lea.vmem %s2254_s14, %s2141_s9  ;;  %vm1378_vm10 = vcmask 260294  }
 0x49b   : > { %1070 = vst.msk [vmem:[%s1068_s4] sm:$0x1] %vm1069_vm12, %v1066_v2  ;;  %s1098_s4 = scalar_lea.vmem %s2254_s14, %s2656_s22  ;;  %s1100_s0 = scalar_lea.vmem %s2254_s14, %s2657_s18 }
 0x49c   : > { %1073 = vst.msk [vmem:[%s1071_s25 - $0x1] sm:$0x2] %vm1072_vm13, %v1066_v2  ;;  %s1102_s25 = scalar_lea.vmem %s2254_s14, %s2658_s27  ;;  %s1365_s22 = scalar_lea.vmem %s2254_s14, %s2149_s24 }
 0x49d   : > { %1076 = vst.msk [vmem:[%s1074_s7 - $0x2] sm:$0x4] %vm1075_vm14, %v1066_v2  ;;  %s1104_s20 = scalar_lea.vmem %s2254_s14, %s2659_s2  ;;  %s1106_s7 = scalar_lea.vmem %s2254_s14, %s2660_s3  ;;  %v1357_v3 = vpop.permute.xlu0 %1356 }
 0x49e   : > { %1079 = vst.msk [vmem:[%s1077_s8 - $0x3] sm:$0x8] %vm1078_vm15, %v1066_v2  ;;  %s1362_s8 = scalar_lea.vmem %s2254_s14, %s2146_s13  ;;  %s1368_s9 = scalar_lea.vmem %s2254_s14, %s2152_s11 }
 0x49f   : > { %1082 = vst.msk [vmem:[%s1080_s19 - $0x4] sm:$0x10] %vm1081_vm0, %v1066_v2  ;;  %s1108_s1 = scalar_lea.vmem %s2254_s14, %s2661_s23  ;;  %s1371_s13 = scalar_lea.vmem %s2254_s14, %s2155_s6  ;;  %v1385_v4 = vpop.permute.xlu1 %1384 }
 0x4a0   : > { %1085 = vst.msk [vmem:[%s1083_s28 - $0x5] sm:$0x20] %vm1084_vm1, %v1066_v2  ;;  %s1374_s24 = scalar_lea.vmem %s2254_s14, %s2159_s30  ;;  %s2662_s19 = sld [smem:[#allocation49_spill]] }
 0x4a1   : > { %1088 = vst.msk [vmem:[%s1086_s29 - $0x6] sm:$0x40] %vm1087_vm2, %v1066_v2  ;;  %s2663_s18 = sld [smem:[#allocation50_spill]]  ;;  %s1377_s11 = scalar_lea.vmem %s2254_s14, %s2162_s21 }
 0x4a2   : > { %1091 = vst.msk [vmem:[%s1089_s16 - $0x7] sm:$0x80] %vm1090_vm3, %v1066_v2  ;;  %s2664_s28 = sld [smem:[#allocation51_spill]]  ;;  %s1380_s6 = scalar_lea.vmem %s2254_s14, %s2165_s26 }
 0x4a3   : > { %1097 = vst.msk [vmem:[%s1096_s12] sm:$0x1] %vm1069_vm12, %v1094_v56  ;;  %s2665_s27 = sld [smem:[#allocation52_spill]]  ;;  %s1387_s30 = scalar_lea.vmem %s2254_s14, %s2168_s17 }
 0x4a4   : > { %1099 = vst.msk [vmem:[%s1098_s4 - $0x1] sm:$0x2] %vm1072_vm13, %v1094_v56  ;;  %s1389_s2 = scalar_lea.vmem %s2254_s14, %s2171_s5  ;;  %s1391_s29 = scalar_lea.vmem %s2254_s14, %s2174_s10 }
 0x4a5   : > { %1101 = vst.msk [vmem:[%s1100_s0 - $0x2] sm:$0x4] %vm1075_vm14, %v1094_v56 }
 0x4a6   : > { %1103 = vst.msk [vmem:[%s1102_s25 - $0x3] sm:$0x8] %vm1078_vm15, %v1094_v56  ;;  %s1393_s21 = scalar_lea.vmem %s2254_s14, %s2662_s19 }
 0x4a7   : > { %1105 = vst.msk [vmem:[%s1104_s20 - $0x4] sm:$0x10] %vm1081_vm0, %v1094_v56  ;;  %s1395_s3 = scalar_lea.vmem %s2254_s14, %s2663_s18 }
 0x4a8   : > { %1107 = vst.msk [vmem:[%s1106_s7 - $0x5] sm:$0x20] %vm1084_vm1, %v1094_v56  ;;  %s1397_s26 = scalar_lea.vmem %s2254_s14, %s2664_s28 }
 0x4a9   : > { %1109 = vst.msk [vmem:[%s1108_s1 - $0x6] sm:$0x40] %vm1087_vm2, %v1094_v56  ;;  %s1399_s16 = scalar_lea.vmem %s2254_s14, %s2665_s27 }
 0x4aa   : > { %1361 = vst.msk [vmem:[%s1359_s15] sm:$0x1] %vm1360_vm4, %v1357_v3 }
 0x4ab   : > { %1364 = vst.msk [vmem:[%s1362_s8 - $0x1] sm:$0x2] %vm1363_vm5, %v1357_v3 }
 0x4ac   : > { %1367 = vst.msk [vmem:[%s1365_s22 - $0x2] sm:$0x4] %vm1366_vm6, %v1357_v3 }
 0x4ad   : > { %1370 = vst.msk [vmem:[%s1368_s9 - $0x3] sm:$0x8] %vm1369_vm7, %v1357_v3 }
 0x4ae   : > { %1373 = vst.msk [vmem:[%s1371_s13 - $0x4] sm:$0x10] %vm1372_vm8, %v1357_v3 }
 0x4af   : > { %1376 = vst.msk [vmem:[%s1374_s24 - $0x5] sm:$0x20] %vm1375_vm9, %v1357_v3 }
 0x4b0   : > { %1379 = vst.msk [vmem:[%s1377_s11 - $0x6] sm:$0x40] %vm1378_vm10, %v1357_v3 }
 0x4b1   : > { %1382 = vst.msk [vmem:[%s1380_s6 - $0x7] sm:$0x80] %vm1381_vm11, %v1357_v3 }
 0x4b2   : > { %1388 = vst.msk [vmem:[%s1387_s30] sm:$0x1] %vm1360_vm4, %v1385_v4 }
 0x4b3   : > { %1390 = vst.msk [vmem:[%s1389_s2 - $0x1] sm:$0x2] %vm1363_vm5, %v1385_v4 }
 0x4b4   : > { %1392 = vst.msk [vmem:[%s1391_s29 - $0x2] sm:$0x4] %vm1366_vm6, %v1385_v4 }
 0x4b5   : > { %1394 = vst.msk [vmem:[%s1393_s21 - $0x3] sm:$0x8] %vm1369_vm7, %v1385_v4 }
 0x4b6   : > { %1396 = vst.msk [vmem:[%s1395_s3 - $0x4] sm:$0x10] %vm1372_vm8, %v1385_v4 }
 0x4b7   : > { %1398 = vst.msk [vmem:[%s1397_s26 - $0x5] sm:$0x20] %vm1375_vm9, %v1385_v4 }
 0x4b8   : > { %1400 = vst.msk [vmem:[%s1399_s16 - $0x6] sm:$0x40] %vm1378_vm10, %v1385_v4 }
 0x4b9 PF: > { %s2666_s17 = sld [smem:[#allocation5_spill]] }
 0x4bf   : > { %s20_s20 = sadd.s32 1, %s2666_s17  }
 0x4c0   : > { %p17_p9 = scmp.ge.s32.totalorder %s20_s20, 4  }
 0x4c2   :  { %19 = sbr.rel (!%p17_p9) target bundleno = 18 (0x12), region = 188 }

</bundles_post_ra>
